<compile_context>
chip_gen: v7x
topology: tpu7x:2x2x1
jax: 0.10.0
libtpu: 0.0.40
codegen_flags: <defaults>
</compile_context>

<pallas_src>
import functools
import warnings

import jax
import jax.numpy as jnp
from jax import lax
from jax.experimental import pallas as pl
from jax.experimental.pallas import tpu as pltpu


# ----------------------------------------------------------------------------
# Fused kernel: 1x1 conv (matmul) + training-mode BN + residual add + ReLU
# for one tile of output channels.
# ----------------------------------------------------------------------------
def fused_conv_bn_add_relu_kernel(x_ref, w_ref, r_ref, g_ref, b_ref, o_ref,
                                  *, m_total, eps):
    # bf16 casts happen here on the VPU (a handful of cycles, hidden under the
    # input DMA) instead of as separate XLA ops in the wrapper.
    x = x_ref[...].astype(jnp.bfloat16)            # (Cin, M)
    w = w_ref[...].astype(jnp.bfloat16)            # (tc, Cin); no-op if already bf16

    # 1x1 conv for this Cout tile: (tc, Cin) @ (Cin, M) -> (tc, M), f32 MXU acc.
    y = jnp.dot(w, x, preferred_element_type=jnp.float32)

    # Training-mode BatchNorm statistics for this tile's channels (rows).
    # Exact: the M (=N*H*W) axis is never tiled, so each row sees all samples.
    # NOTE: at M=256 this stats pass is free filler under the HBM stream; for
    # much larger M, ch_sum could instead be computed as w @ sum(x, axis=1)
    # (an MXU matvec) to keep the VPU/XLU off the critical slot.
    inv_m = 1.0 / m_total
    ch_sum = jnp.sum(y, axis=1, keepdims=True)            # (tc, 1)
    ch_sq = jnp.sum(y * y, axis=1, keepdims=True)         # (tc, 1)
    mean = ch_sum * inv_m
    var = jnp.maximum(ch_sq * inv_m - mean * mean, 0.0)   # biased variance
    inv_std = lax.rsqrt(var + eps)                        # EUP
    scale = g_ref[...] * inv_std                          # (tc, 1)
    shift = b_ref[...] - mean * scale                     # (tc, 1)

    # Fused affine BN + residual add + ReLU; y never leaves VMEM.
    o_ref[...] = jnp.maximum(r_ref[...] + y * scale + shift, 0.0)


def _grid_tiles_for_device():
    """2 parallel Cout tiles on multi-TensorCore chips, 1 (collapsed grid) otherwise."""
    try:
        kind = jax.devices()[0].device_kind.lower()
    except Exception:
        return 1
    # v5e / v6e ("lite") have a single TensorCore per chip -> collapse the grid
    # (removes per-grid-step overhead on this tiny problem).
    if "lite" in kind or "v5e" in kind or "v6e" in kind or "v6" in kind:
        return 1
    # v4 / v5p / v7x: 2 TensorCores -> one Cout tile per core ("parallel").
    return 2


@functools.partial(jax.jit, static_argnames=("eps", "tc"), donate_argnums=(1,))
def conv_bn_add_relu(x_nchw, res_nchw, weight, gamma, beta, *, eps=1e-5, tc=None):
    """x_nchw: (N, Cin, H, W) f32; res_nchw: (N, Cout, H, W) f32 (donated);
    weight: (Cout, Cin, 1, 1) — pass bf16 persistently for best perf;
    gamma/beta: (Cout,) f32."""
    N, Cin, H, W = x_nchw.shape
    Cout = weight.shape[0]
    M = N * H * W

    if tc is None:
        tiles = _grid_tiles_for_device()
        tc = Cout // tiles if (tiles > 1 and Cout % (tiles * 8) == 0) else Cout
    assert Cout % tc == 0 and tc % 8 == 0, "bad Cout tile size"

    # NCHW -> (channels, N*H*W).  For N == 1 these transposes are no-ops
    # (pure reshapes, no data movement); only N > 1 pays one transpose.
    x_mat = jnp.transpose(x_nchw, (1, 0, 2, 3)).reshape(Cin, M)      # f32, cast in-kernel
    r_mat = jnp.transpose(res_nchw, (1, 0, 2, 3)).reshape(Cout, M)   # f32
    w_mat = weight.reshape(Cout, Cin)                                # dtype as provided
    g_col = gamma.reshape(Cout, 1).astype(jnp.float32)
    b_col = beta.reshape(Cout, 1).astype(jnp.float32)

    kernel = functools.partial(
        fused_conv_bn_add_relu_kernel, m_total=float(M), eps=float(eps))

    cost = pl.CostEstimate(
        flops=2 * M * Cin * Cout + 8 * M * Cout,
        transcendentals=Cout,
        bytes_accessed=(x_mat.size * x_mat.dtype.itemsize
                        + w_mat.size * w_mat.dtype.itemsize
                        + r_mat.size * r_mat.dtype.itemsize
                        + Cout * M * 4 + Cout * 8),
    )

    out_mat = pl.pallas_call(
        kernel,
        out_shape=jax.ShapeDtypeStruct((Cout, M), jnp.float32),
        grid_spec=pltpu.PrefetchScalarGridSpec(
            num_scalar_prefetch=0,
            grid=(Cout // tc,),
            in_specs=[
                pl.BlockSpec((Cin, M), lambda j: (0, 0)),   # x: resident across grid
                pl.BlockSpec((tc, Cin), lambda j: (j, 0)),  # weight tile
                pl.BlockSpec((tc, M), lambda j: (j, 0)),    # residual tile
                pl.BlockSpec((tc, 1), lambda j: (j, 0)),    # gamma
                pl.BlockSpec((tc, 1), lambda j: (j, 0)),    # beta
            ],
            out_specs=pl.BlockSpec((tc, M), lambda j: (j, 0)),
        ),
        # Residual and output share shape/dtype and block index maps: reuse the
        # residual's HBM buffer for the output (no fresh (Cout, M) allocation).
        input_output_aliases={2: 0},
        compiler_params=pltpu.CompilerParams(
            dimension_semantics=("parallel",),   # Cout tiles independent -> megacore OK
            vmem_limit_bytes=32 * 1024 * 1024,   # working set < 12 MiB even at tc=Cout
        ),
        cost_estimate=cost,
    )(x_mat, w_mat, r_mat, g_col, b_col)

    # (Cout, N*H*W) -> NCHW (pure reshape for N == 1).
    return jnp.transpose(out_mat.reshape(Cout, N, H, W), (1, 0, 2, 3))


def _reference(x_nchw, res_nchw, weight, gamma, beta, eps=1e-5):
    """Pure-JAX reference matching the torch module in training mode.

    Conv inputs are cast to bf16 with f32 accumulation, matching the kernel's
    MXU precision, so the comparison isolates numerics of the fused epilogue.
    """
    y = lax.conv_general_dilated(
        x_nchw.astype(jnp.bfloat16), weight.astype(jnp.bfloat16),
        window_strides=(1, 1), padding="VALID",
        dimension_numbers=("NCHW", "OIHW", "NCHW"),
        preferred_element_type=jnp.float32)
    mean = jnp.mean(y, axis=(0, 2, 3), keepdims=True)
    var = jnp.mean((y - mean) ** 2, axis=(0, 2, 3), keepdims=True)
    yhat = (y - mean) * lax.rsqrt(var + eps)
    yhat = yhat * gamma.reshape(1, -1, 1, 1) + beta.reshape(1, -1, 1, 1)
    return jnp.maximum(res_nchw + yhat, 0.0)


if __name__ == "__main__":
    # Benign if XLA decides not to reuse the donated residual buffer.
    warnings.filterwarnings("ignore", message=".*[Dd]onat.*")

    # Channel dims fixed by the module (512 -> 1024); spatial reduced 28x28 -> 16x16.
    N, Cin, Cout, H, W = 1, 512, 1024, 16, 16

    key = jax.random.PRNGKey(0)
    k_x, k_r, k_w, k_g, k_b = jax.random.split(key, 5)

    x80 = jax.random.normal(k_x, (N, Cin, H, W), dtype=jnp.float32)
    x88 = jax.random.normal(k_r, (N, Cout, H, W), dtype=jnp.float32)

    # Deterministic synthetic parameters (shapes match the torch module).
    weight = jax.random.normal(k_w, (Cout, Cin, 1, 1), dtype=jnp.float32) * 0.05
    gamma = 1.0 + 0.1 * jax.random.normal(k_g, (Cout,), dtype=jnp.float32)
    beta = 0.1 * jax.random.normal(k_b, (Cout,), dtype=jnp.float32)

    # Persistent bf16 copy of the conv weight: cast ONCE here (parameter prep,
    # outside the jitted call), so the kernel streams 1 MiB of weights instead
    # of 2 MiB and no per-call cast op runs.
    weight_bf16 = weight.astype(jnp.bfloat16)

    # Reference computed BEFORE the fused call because x88 is donated to it.
    ref = jax.block_until_ready(_reference(x80, x88, weight, gamma, beta))

    # TODO(synk): BatchNorm running_mean/var (momentum) buffer updates are a
    # training-time side effect not reflected in the returned tensor; omitted.
    out = conv_bn_add_relu(x80, x88, weight_bf16, gamma, beta)
    out = jax.block_until_ready(out)

    assert out.shape == (N, Cout, H, W)
    max_err = float(jnp.max(jnp.abs(out - ref)))
    assert jnp.allclose(out, ref, atol=1e-2, rtol=1e-2), f"mismatch vs reference: {max_err}"

    print("KERNEL_OK")
</pallas_src>

<mosaic_0001>
module attributes {stable_mosaic.version = 11 : i64} {
  func.func @fused_conv_bn_add_relu_kernel(%arg0: i32, %arg1: memref<512x256xf32, #tpu.memory_space<vmem>>, %arg2: memref<512x512xbf16, #tpu.memory_space<vmem>>, %arg3: memref<512x256xf32, #tpu.memory_space<vmem>>, %arg4: memref<512x1xf32, #tpu.memory_space<vmem>>, %arg5: memref<512x1xf32, #tpu.memory_space<vmem>>, %arg6: memref<512x256xf32, #tpu.memory_space<vmem>>) attributes {dimension_semantics = [#tpu.dimension_semantics<parallel>], iteration_bounds = array<i64: 2>, scalar_prefetch = 0 : i64, scratch_operands = 0 : i64, tpu.core_type = #tpu.core_type<tc>, window_params = [{pipeline_mode = #tpu.pipeline_mode<synchronous>, transform_indices = @transform_0, window_bounds = array<i64: 512, 256>}, {transform_indices = @transform_1, window_bounds = array<i64: 512, 512>}, {transform_indices = @transform_2, window_bounds = array<i64: 512, 256>}, {transform_indices = @transform_3, window_bounds = array<i64: 512, 1>}, {transform_indices = @transform_4, window_bounds = array<i64: 512, 1>}, {transform_indices = @transform_5, window_bounds = array<i64: 512, 256>}]} {
    %c0 = arith.constant 0 : index
    %c0_0 = arith.constant 0 : index
    %0 = vector.load %arg1[%c0, %c0_0] : memref<512x256xf32, #tpu.memory_space<vmem>>, vector<512x256xf32>
    %1 = arith.truncf %0 : vector<512x256xf32> to vector<512x256xbf16>
    %c0_1 = arith.constant 0 : index
    %c0_2 = arith.constant 0 : index
    %2 = vector.load %arg2[%c0_1, %c0_2] : memref<512x512xbf16, #tpu.memory_space<vmem>>, vector<512x512xbf16>
    %cst = arith.constant dense<0.000000e+00> : vector<512x256xf32>
    %3 = tpu.matmul %2, %1, %cst {dimension_numbers = #tpu.dot_dimension_numbers<[1], [0], [0], [1], [0, 0, 1, 1], [], []>} : vector<512x512xbf16>, vector<512x256xbf16>, vector<512x256xf32> -> vector<512x256xf32>
    %cst_3 = arith.constant dense<0.000000e+00> : vector<512xf32>
    %4 = vector.multi_reduction <add>, %3, %cst_3 [1] : vector<512x256xf32> to vector<512xf32>
    %5 = vector.shape_cast %4 : vector<512xf32> to vector<512x1xf32>
    %6 = arith.mulf %3, %3 : vector<512x256xf32>
    %cst_4 = arith.constant dense<0.000000e+00> : vector<512xf32>
    %7 = vector.multi_reduction <add>, %6, %cst_4 [1] : vector<512x256xf32> to vector<512xf32>
    %8 = vector.shape_cast %7 : vector<512xf32> to vector<512x1xf32>
    %cst_5 = arith.constant 3.906250e-03 : f32
    %9 = vector.broadcast %cst_5 : f32 to vector<512x1xf32>
    %10 = arith.mulf %5, %9 : vector<512x1xf32>
    %cst_6 = arith.constant 3.906250e-03 : f32
    %11 = vector.broadcast %cst_6 : f32 to vector<512x1xf32>
    %12 = arith.mulf %8, %11 : vector<512x1xf32>
    %13 = arith.mulf %10, %10 : vector<512x1xf32>
    %14 = arith.subf %12, %13 : vector<512x1xf32>
    %cst_7 = arith.constant 0.000000e+00 : f32
    %15 = vector.broadcast %cst_7 : f32 to vector<512x1xf32>
    %16 = arith.maximumf %14, %15 : vector<512x1xf32>
    %cst_8 = arith.constant 9.99999974E-6 : f32
    %17 = vector.broadcast %cst_8 : f32 to vector<512x1xf32>
    %18 = arith.addf %16, %17 : vector<512x1xf32>
    %19 = math.rsqrt %18 : vector<512x1xf32>
    %c0_9 = arith.constant 0 : index
    %c0_10 = arith.constant 0 : index
    %20 = vector.load %arg4[%c0_9, %c0_10] : memref<512x1xf32, #tpu.memory_space<vmem>>, vector<512x1xf32>
    %21 = arith.mulf %20, %19 : vector<512x1xf32>
    %c0_11 = arith.constant 0 : index
    %c0_12 = arith.constant 0 : index
    %22 = vector.load %arg5[%c0_11, %c0_12] : memref<512x1xf32, #tpu.memory_space<vmem>>, vector<512x1xf32>
    %23 = arith.mulf %10, %21 : vector<512x1xf32>
    %24 = arith.subf %22, %23 : vector<512x1xf32>
    %c0_13 = arith.constant 0 : index
    %c0_14 = arith.constant 0 : index
    %25 = vector.load %arg3[%c0_13, %c0_14] : memref<512x256xf32, #tpu.memory_space<vmem>>, vector<512x256xf32>
    %26 = vector.broadcast %21 : vector<512x1xf32> to vector<512x256xf32>
    %27 = arith.mulf %3, %26 : vector<512x256xf32>
    %28 = arith.addf %25, %27 : vector<512x256xf32>
    %29 = vector.broadcast %24 : vector<512x1xf32> to vector<512x256xf32>
    %30 = arith.addf %28, %29 : vector<512x256xf32>
    %cst_15 = arith.constant 0.000000e+00 : f32
    %31 = vector.broadcast %cst_15 : f32 to vector<512x256xf32>
    %32 = arith.maximumf %30, %31 : vector<512x256xf32>
    %c0_16 = arith.constant 0 : index
    %c0_17 = arith.constant 0 : index
    %33 = vector.load %arg6[%c0_16, %c0_17] : memref<512x256xf32, #tpu.memory_space<vmem>>, vector<512x256xf32>
    tpu.vector_store %arg6[%c0_16, %c0_17], %32 {strides = array<i32>} : memref<512x256xf32, #tpu.memory_space<vmem>>, vector<512x256xf32>,
    return
  }
  func.func @transform_0(%arg0: i32) -> (i32, i32) {
    %c0_i32 = arith.constant 0 : i32
    %c0_i32_0 = arith.constant 0 : i32
    %c0_i32_1 = arith.constant 0 : i32
    return %c0_i32, %c0_i32_0 : i32, i32
  }
  func.func @transform_1(%arg0: i32) -> (i32, i32) {
    %c0_i32 = arith.constant 0 : i32
    %c0_i32_0 = arith.constant 0 : i32
    return %arg0, %c0_i32 : i32, i32
  }
  func.func @transform_2(%arg0: i32) -> (i32, i32) {
    %c0_i32 = arith.constant 0 : i32
    %c0_i32_0 = arith.constant 0 : i32
    return %arg0, %c0_i32 : i32, i32
  }
  func.func @transform_3(%arg0: i32) -> (i32, i32) {
    %c0_i32 = arith.constant 0 : i32
    %c0_i32_0 = arith.constant 0 : i32
    return %arg0, %c0_i32 : i32, i32
  }
  func.func @transform_4(%arg0: i32) -> (i32, i32) {
    %c0_i32 = arith.constant 0 : i32
    %c0_i32_0 = arith.constant 0 : i32
    return %arg0, %c0_i32 : i32, i32
  }
  func.func @transform_5(%arg0: i32) -> (i32, i32) {
    %c0_i32 = arith.constant 0 : i32
    %c0_i32_0 = arith.constant 0 : i32
    return %arg0, %c0_i32 : i32, i32
  }
}

</mosaic_0001>

<bundles_post_ra>
// kernel: conv_bn_add_relu.1
= control target key start
LH: loop header
LB: loop body
LE: loop exit
PB: predicated region body
PF: predicated region fallthrough
CT: control target
= control target key end

     0   :  { %s5399_s18 = smov 0   ;;  %s8186_s0 = inlined_call_operand.vmem [shape: f32[512,256], index: 0, kind: input, shape index: {}]   ;;  %s8187_s1 = inlined_call_operand.vmem [shape: bf16[1024,512], index: 1, kind: input, shape index: {}]   ;;  %s8188_s2 = inlined_call_operand.vmem [shape: f32[1024,256], index: 2, kind: input, shape index: {}, may-alias: {2,5}]   ;;  %s8189_s3 = inlined_call_operand.vmem [shape: f32[1024,1], index: 3, kind: input, shape index: {}]   ;;  %s8190_s4 = inlined_call_operand.vmem [shape: f32[1024,1], index: 4, kind: input, shape index: {}]   ;;  %s8191_s5 = inlined_call_operand.vmem [shape: f32[1024,256], index: 5, kind: output, shape index: {}, may-alias: {2,5}]  }
   0x1 LB: > { %s4750_s19 = sadd.s32 4294967295, %s5366_s18   ;;  %p4754_p0 = scmp.ge.s32.totalorder %s5366_s18, 1  ;;  %s5366_s18 = sphi %s5399_s18, %s15_s18  }
   0x2   : > { %p223_p1 = scmp.lt.s32.totalorder %s5366_s18, 3 }
   0x4   : > { %p224_p2 = pnand %p4754_p0, %p223_p1 }
   0x6   : > { %227 = sbr.rel (%p224_p2) target bundleno = 1464 (0x5b8), region = 40 }
   0xd   : > { %v303_v0 = vld [vmem:[%s8186_s0 + $0x8] sm:$0xff]  ;;  %v305_v1 = vld [vmem:[%s8186_s0 + $0x18] sm:$0xff]  ;;  %v302_v5 = vld [vmem:[%s8186_s0] sm:$0xff]  ;;  %s4755_s12 = sshll.u32 %s4750_s19, 6 }
   0xe   : > { %v367_v2 = vld [vmem:[%s8186_s0 + $0x208] sm:$0xff]  ;;  %v431_v3 = vpack.c.bf16 %v305_v1, %v303_v0  ;;  %v369_v4 = vld [vmem:[%s8186_s0 + $0x218] sm:$0xff]  ;;  %v304_v6 = vld [vmem:[%s8186_s0 + $0x10] sm:$0xff]  ;;  %p270_p3 = scmp.lt.s32.totalorder %s4755_s12, 127 }
   0xf   : > { %v463_v7 = vpack.c.bf16 %v369_v4, %v367_v2  ;;  %v430_v8 = vpack.c.bf16 %v304_v6, %v302_v5  ;;  %v366_v9 = vld [vmem:[%s8186_s0 + $0x200] sm:$0xff]  ;;  %v368_v10 = vld [vmem:[%s8186_s0 + $0x210] sm:$0xff]  ;;  %v307_v11 = vld [vmem:[%s8186_s0 + $0x28] sm:$0xff] }
  0x10   : > { %1262 = vmatprep.subr.bf16.mxu1 %v431_v3  ;;  %v462_v12 = vpack.c.bf16 %v368_v10, %v366_v9  ;;  %v309_v13 = vld [vmem:[%s8186_s0 + $0x38] sm:$0xff]  ;;  %v371_v14 = vld [vmem:[%s8186_s0 + $0x228] sm:$0xff]  ;;  %v306_v18 = vld [vmem:[%s8186_s0 + $0x20] sm:$0xff]  ;;  %s8913_s12 = smov (!%p270_p3, %s4755_s12), 127 }
  0x11   : > { %v373_v15 = vld [vmem:[%s8186_s0 + $0x238] sm:$0xff]  ;;  %1615 = vmatprep.subr.bf16.mxu0 %v463_v7  ;;  %1263 = vmatpush1.bf16.msra.mxu1 %v430_v8  ;;  %v433_v16 = vpack.c.bf16 %v309_v13, %v307_v11  ;;  %v308_v19 = vld [vmem:[%s8186_s0 + $0x30] sm:$0xff]  ;;  %v370_v20 = vld [vmem:[%s8186_s0 + $0x220] sm:$0xff]  ;;  %s5674_s8 = sshll.u32 %s8913_s12, 4  ;;  %s4762_s9 = sshll.u32 %s8913_s12, 3 }
  0x12   : > { %v465_v17 = vpack.c.bf16 %v373_v15, %v371_v14  ;;  %1616 = vmatpush1.bf16.msra.mxu0 %v462_v12  ;;  %v432_v21 = vpack.c.bf16 %v308_v19, %v306_v18  ;;  %v372_v22 = vld [vmem:[%s8186_s0 + $0x230] sm:$0xff]  ;;  %v311_v23 = vld [vmem:[%s8186_s0 + $0x48] sm:$0xff]  ;;  %v313_v24 = vld [vmem:[%s8186_s0 + $0x58] sm:$0xff]  ;;  %s5704_s29 = scalar_lea.vmem %s8187_s1, %s5674_s8  ;;  %s6383_s13 = scalar_lea.vmem %s8189_s3, %s4762_s9 }
  0x13   : > { %1264 = vmatprep.subr.bf16.mxu1 %v433_v16  ;;  %v464_v25 = vpack.c.bf16 %v372_v22, %v370_v20  ;;  %v435_v26 = vpack.c.bf16 %v313_v24, %v311_v23  ;;  %v375_v27 = vld [vmem:[%s8186_s0 + $0x248] sm:$0xff]  ;;  %v377_v28 = vld [vmem:[%s8186_s0 + $0x258] sm:$0xff]  ;;  %v310_v29 = vld [vmem:[%s8186_s0 + $0x40] sm:$0xff]  ;;  %s6404_s15 = scalar_lea.vmem %s8190_s4, %s4762_s9  ;;  %s6614_s20 = scalar_lea.vmem %s8188_s2, %s5674_s8 }
  0x14   : > { %1617 = vmatprep.subr.bf16.mxu0 %v465_v17  ;;  %v467_v30 = vpack.c.bf16 %v377_v28, %v375_v27  ;;  %v312_v31 = vld [vmem:[%s8186_s0 + $0x50] sm:$0xff]  ;;  %v374_v32 = vld [vmem:[%s8186_s0 + $0x240] sm:$0xff]  ;;  %v315_v35 = vld [vmem:[%s8186_s0 + $0x68] sm:$0xff]  ;;  %s7019_s22 = scalar_lea.vmem %s8191_s5, %s5674_s8 }
  0x15   : > { %v376_v33 = vld [vmem:[%s8186_s0 + $0x250] sm:$0xff]  ;;  %1265 = vmatpush1.bf16.msra.mxu1 %v432_v21  ;;  %v434_v34 = vpack.c.bf16 %v312_v31, %v310_v29  ;;  %v317_v36 = vld [vmem:[%s8186_s0 + $0x78] sm:$0xff]  ;;  %v379_v37 = vld [vmem:[%s8186_s0 + $0x268] sm:$0xff] }
  0x16   : > { %1618 = vmatpush1.bf16.msra.mxu0 %v464_v25  ;;  %1266 = vmatprep.subr.bf16.mxu1 %v435_v26  ;;  %v466_v38 = vpack.c.bf16 %v376_v33, %v374_v32  ;;  %v437_v39 = vpack.c.bf16 %v317_v36, %v315_v35  ;;  %v381_v40 = vld [vmem:[%s8186_s0 + $0x278] sm:$0xff]  ;;  %v314_v41 = vld [vmem:[%s8186_s0 + $0x60] sm:$0xff]  ;;  %v316_v42 = vld [vmem:[%s8186_s0 + $0x70] sm:$0xff] }
  0x17   : > { %1619 = vmatprep.subr.bf16.mxu0 %v467_v30  ;;  %v469_v43 = vpack.c.bf16 %v381_v40, %v379_v37  ;;  %v378_v44 = vld [vmem:[%s8186_s0 + $0x260] sm:$0xff]  ;;  %v380_v45 = vld [vmem:[%s8186_s0 + $0x270] sm:$0xff]  ;;  %v319_v46 = vld [vmem:[%s8186_s0 + $0x88] sm:$0xff]  ;;  %v436_v50 = vpack.c.bf16 %v316_v42, %v314_v41 }
  0x18   : > { %v321_v47 = vld [vmem:[%s8186_s0 + $0x98] sm:$0xff]  ;;  %v383_v48 = vld [vmem:[%s8186_s0 + $0x288] sm:$0xff]  ;;  %v468_v51 = vpack.c.bf16 %v380_v45, %v378_v44  ;;  %v318_v53 = vld [vmem:[%s8186_s0 + $0x80] sm:$0xff] }
  0x19   : > { %v385_v49 = vld [vmem:[%s8186_s0 + $0x298] sm:$0xff]  ;;  %1267 = vmatpush1.bf16.msra.mxu1 %v434_v34  ;;  %v439_v52 = vpack.c.bf16 %v321_v47, %v319_v46  ;;  %v320_v54 = vld [vmem:[%s8186_s0 + $0x90] sm:$0xff]  ;;  %v382_v55 = vld [vmem:[%s8186_s0 + $0x280] sm:$0xff] }
  0x1a   : > { %1620 = vmatpush1.bf16.msra.mxu0 %v466_v38  ;;  %1268 = vmatprep.subr.bf16.mxu1 %v437_v39  ;;  %v471_v56 = vpack.c.bf16 %v385_v49, %v383_v48  ;;  %v384_v57 = vld [vmem:[%s8186_s0 + $0x290] sm:$0xff]  ;;  %v323_v58 = vld [vmem:[%s8186_s0 + $0xa8] sm:$0xff]  ;;  %v325_v59 = vld [vmem:[%s8186_s0 + $0xb8] sm:$0xff]  ;;  %v438_v62 = vpack.c.bf16 %v320_v54, %v318_v53 }
  0x1b   : > { %1621 = vmatprep.subr.bf16.mxu0 %v469_v43  ;;  %v387_v60 = vld [vmem:[%s8186_s0 + $0x2a8] sm:$0xff]  ;;  %v389_v61 = vld [vmem:[%s8186_s0 + $0x2b8] sm:$0xff]  ;;  %v470_v63 = vpack.c.bf16 %v384_v57, %v382_v55  ;;  %v441_v0 = vpack.c.bf16 %v325_v59, %v323_v58  ;;  %v322_v1 = vld [vmem:[%s8186_s0 + $0xa0] sm:$0xff] }
  0x1c   : > { %v324_v2 = vld [vmem:[%s8186_s0 + $0xb0] sm:$0xff]  ;;  %v386_v3 = vld [vmem:[%s8186_s0 + $0x2a0] sm:$0xff]  ;;  %v473_v4 = vpack.c.bf16 %v389_v61, %v387_v60  ;;  %v327_v6 = vld [vmem:[%s8186_s0 + $0xc8] sm:$0xff] }
  0x1d   : > { %1269 = vmatpush1.bf16.msra.mxu1 %v436_v50  ;;  %v388_v5 = vld [vmem:[%s8186_s0 + $0x2b0] sm:$0xff]  ;;  %v329_v7 = vld [vmem:[%s8186_s0 + $0xd8] sm:$0xff]  ;;  %v391_v8 = vld [vmem:[%s8186_s0 + $0x2c8] sm:$0xff]  ;;  %v440_v10 = vpack.c.bf16 %v324_v2, %v322_v1 }
  0x1e   : > { %1622 = vmatpush1.bf16.msra.mxu0 %v468_v51  ;;  %1270 = vmatprep.subr.bf16.mxu1 %v439_v52  ;;  %v393_v9 = vld [vmem:[%s8186_s0 + $0x2d8] sm:$0xff]  ;;  %v472_v11 = vpack.c.bf16 %v388_v5, %v386_v3  ;;  %v443_v12 = vpack.c.bf16 %v329_v7, %v327_v6  ;;  %v326_v13 = vld [vmem:[%s8186_s0 + $0xc0] sm:$0xff]  ;;  %v328_v14 = vld [vmem:[%s8186_s0 + $0xd0] sm:$0xff] }
  0x1f   : > { %1623 = vmatprep.subr.bf16.mxu0 %v471_v56  ;;  %v390_v15 = vld [vmem:[%s8186_s0 + $0x2c0] sm:$0xff]  ;;  %v475_v16 = vpack.c.bf16 %v393_v9, %v391_v8  ;;  %v392_v17 = vld [vmem:[%s8186_s0 + $0x2d0] sm:$0xff]  ;;  %v331_v18 = vld [vmem:[%s8186_s0 + $0xe8] sm:$0xff]  ;;  %v442_v22 = vpack.c.bf16 %v328_v14, %v326_v13 }
  0x20   : > { %v333_v19 = vld [vmem:[%s8186_s0 + $0xf8] sm:$0xff]  ;;  %v395_v20 = vld [vmem:[%s8186_s0 + $0x2e8] sm:$0xff]  ;;  %v474_v23 = vpack.c.bf16 %v392_v17, %v390_v15  ;;  %v330_v25 = vld [vmem:[%s8186_s0 + $0xe0] sm:$0xff] }
  0x21   : > { %1271 = vmatpush1.bf16.msra.mxu1 %v438_v62  ;;  %v397_v21 = vld [vmem:[%s8186_s0 + $0x2f8] sm:$0xff]  ;;  %v445_v24 = vpack.c.bf16 %v333_v19, %v331_v18  ;;  %v332_v26 = vld [vmem:[%s8186_s0 + $0xf0] sm:$0xff]  ;;  %v394_v27 = vld [vmem:[%s8186_s0 + $0x2e0] sm:$0xff] }
  0x22   : > { %1624 = vmatpush1.bf16.msra.mxu0 %v470_v63  ;;  %1272 = vmatprep.subr.bf16.mxu1 %v441_v0  ;;  %v477_v28 = vpack.c.bf16 %v397_v21, %v395_v20  ;;  %v396_v29 = vld [vmem:[%s8186_s0 + $0x2f0] sm:$0xff]  ;;  %v335_v30 = vld [vmem:[%s8186_s0 + $0x108] sm:$0xff]  ;;  %v337_v31 = vld [vmem:[%s8186_s0 + $0x118] sm:$0xff]  ;;  %v444_v34 = vpack.c.bf16 %v332_v26, %v330_v25 }
  0x23   : > { %1625 = vmatprep.subr.bf16.mxu0 %v473_v4  ;;  %v399_v32 = vld [vmem:[%s8186_s0 + $0x308] sm:$0xff]  ;;  %v401_v33 = vld [vmem:[%s8186_s0 + $0x318] sm:$0xff]  ;;  %v476_v35 = vpack.c.bf16 %v396_v29, %v394_v27  ;;  %v447_v36 = vpack.c.bf16 %v337_v31, %v335_v30  ;;  %v334_v37 = vld [vmem:[%s8186_s0 + $0x100] sm:$0xff] }
  0x24   : > { %v336_v38 = vld [vmem:[%s8186_s0 + $0x110] sm:$0xff]  ;;  %v398_v39 = vld [vmem:[%s8186_s0 + $0x300] sm:$0xff]  ;;  %v479_v40 = vpack.c.bf16 %v401_v33, %v399_v32  ;;  %v339_v42 = vld [vmem:[%s8186_s0 + $0x128] sm:$0xff] }
  0x25   : > { %1273 = vmatpush1.bf16.msra.mxu1 %v440_v10  ;;  %v400_v41 = vld [vmem:[%s8186_s0 + $0x310] sm:$0xff]  ;;  %v341_v43 = vld [vmem:[%s8186_s0 + $0x138] sm:$0xff]  ;;  %v403_v44 = vld [vmem:[%s8186_s0 + $0x328] sm:$0xff]  ;;  %v446_v46 = vpack.c.bf16 %v336_v38, %v334_v37 }
  0x26   : > { %1626 = vmatpush1.bf16.msra.mxu0 %v472_v11  ;;  %1274 = vmatprep.subr.bf16.mxu1 %v443_v12  ;;  %v405_v45 = vld [vmem:[%s8186_s0 + $0x338] sm:$0xff]  ;;  %v478_v47 = vpack.c.bf16 %v400_v41, %v398_v39  ;;  %v449_v48 = vpack.c.bf16 %v341_v43, %v339_v42  ;;  %v338_v49 = vld [vmem:[%s8186_s0 + $0x120] sm:$0xff]  ;;  %v340_v50 = vld [vmem:[%s8186_s0 + $0x130] sm:$0xff] }
  0x27   : > { %1627 = vmatprep.subr.bf16.mxu0 %v475_v16  ;;  %v402_v51 = vld [vmem:[%s8186_s0 + $0x320] sm:$0xff]  ;;  %v481_v52 = vpack.c.bf16 %v405_v45, %v403_v44  ;;  %v404_v53 = vld [vmem:[%s8186_s0 + $0x330] sm:$0xff]  ;;  %v343_v54 = vld [vmem:[%s8186_s0 + $0x148] sm:$0xff]  ;;  %v448_v58 = vpack.c.bf16 %v340_v50, %v338_v49 }
  0x28   : > { %v345_v55 = vld [vmem:[%s8186_s0 + $0x158] sm:$0xff]  ;;  %v407_v56 = vld [vmem:[%s8186_s0 + $0x348] sm:$0xff]  ;;  %v480_v59 = vpack.c.bf16 %v404_v53, %v402_v51  ;;  %v342_v61 = vld [vmem:[%s8186_s0 + $0x140] sm:$0xff] }
  0x29   : > { %1275 = vmatpush1.bf16.msra.mxu1 %v442_v22  ;;  %v409_v57 = vld [vmem:[%s8186_s0 + $0x358] sm:$0xff]  ;;  %v451_v60 = vpack.c.bf16 %v345_v55, %v343_v54  ;;  %v344_v62 = vld [vmem:[%s8186_s0 + $0x150] sm:$0xff]  ;;  %v406_v63 = vld [vmem:[%s8186_s0 + $0x340] sm:$0xff] }
  0x2a   : > { %1628 = vmatpush1.bf16.msra.mxu0 %v474_v23  ;;  %1276 = vmatprep.subr.bf16.mxu1 %v445_v24  ;;  %v483_v0 = vpack.c.bf16 %v409_v57, %v407_v56  ;;  %v408_v1 = vld [vmem:[%s8186_s0 + $0x350] sm:$0xff]  ;;  %v347_v2 = vld [vmem:[%s8186_s0 + $0x168] sm:$0xff]  ;;  %v349_v3 = vld [vmem:[%s8186_s0 + $0x178] sm:$0xff]  ;;  %v450_v6 = vpack.c.bf16 %v344_v62, %v342_v61 }
  0x2b   : > { %1629 = vmatprep.subr.bf16.mxu0 %v477_v28  ;;  %v411_v4 = vld [vmem:[%s8186_s0 + $0x368] sm:$0xff]  ;;  %v413_v5 = vld [vmem:[%s8186_s0 + $0x378] sm:$0xff]  ;;  %v346_v7 = vld [vmem:[%s8186_s0 + $0x160] sm:$0xff]  ;;  %v482_v10 = vpack.c.bf16 %v408_v1, %v406_v63  ;;  %v453_v11 = vpack.c.bf16 %v349_v3, %v347_v2 }
  0x2c   : > { %v348_v8 = vld [vmem:[%s8186_s0 + $0x170] sm:$0xff]  ;;  %v410_v9 = vld [vmem:[%s8186_s0 + $0x360] sm:$0xff]  ;;  %v351_v13 = vld [vmem:[%s8186_s0 + $0x188] sm:$0xff]  ;;  %v485_v15 = vpack.c.bf16 %v413_v5, %v411_v4 }
  0x2d   : > { %1277 = vmatpush1.bf16.msra.mxu1 %v444_v34  ;;  %v412_v12 = vld [vmem:[%s8186_s0 + $0x370] sm:$0xff]  ;;  %v353_v14 = vld [vmem:[%s8186_s0 + $0x198] sm:$0xff]  ;;  %v415_v16 = vld [vmem:[%s8186_s0 + $0x388] sm:$0xff]  ;;  %v452_v21 = vpack.c.bf16 %v348_v8, %v346_v7 }
  0x2e   : > { %1630 = vmatpush1.bf16.msra.mxu0 %v476_v35  ;;  %1278 = vmatprep.subr.bf16.mxu1 %v447_v36  ;;  %v417_v17 = vld [vmem:[%s8186_s0 + $0x398] sm:$0xff]  ;;  %v350_v18 = vld [vmem:[%s8186_s0 + $0x180] sm:$0xff]  ;;  %v352_v19 = vld [vmem:[%s8186_s0 + $0x190] sm:$0xff]  ;;  %v484_v26 = vpack.c.bf16 %v412_v12, %v410_v9  ;;  %v455_v27 = vpack.c.bf16 %v353_v14, %v351_v13 }
  0x2f   : > { %1631 = vmatprep.subr.bf16.mxu0 %v479_v40  ;;  %v5042_v20 = vld [vmem:[%s5704_s29 + $0x4] ss:$16 sps:$4 sm:$0xff]   ;;  %v355_v24 = vld [vmem:[%s8186_s0 + $0x1a8] sm:$0xff]  ;;  %v357_v25 = vld [vmem:[%s8186_s0 + $0x1b8] sm:$0xff]  ;;  %v487_v29 = vpack.c.bf16 %v417_v17, %v415_v16  ;;  %v454_v34 = vpack.c.bf16 %v352_v19, %v350_v18 }
  0x30   : > { %v414_v22 = vld [vmem:[%s8186_s0 + $0x380] sm:$0xff]  ;;  %v416_v23 = vld [vmem:[%s8186_s0 + $0x390] sm:$0xff]  ;;  %v5045_v28 = vld [vmem:[%s5704_s29 + $0xc] ss:$16 sps:$4 sm:$0xff]   ;;  %1294 = vmatprep.mubr.bf16.mxu1 %v5042_v20  ;;  %v457_v39 = vpack.c.bf16 %v357_v25, %v355_v24 }
  0x31   : > { %1279 = vmatpush1.bf16.msra.mxu1 %v446_v46  ;;  %v419_v30 = vld [vmem:[%s8186_s0 + $0x3a8] sm:$0xff]  ;;  %v421_v31 = vld [vmem:[%s8186_s0 + $0x3b8] sm:$0xff]  ;;  %v354_v32 = vld [vmem:[%s8186_s0 + $0x1a0] sm:$0xff]  ;;  %1647 = vmatprep.mubr.bf16.mxu0 %v5045_v28  ;;  %v486_v38 = vpack.c.bf16 %v416_v23, %v414_v22 }
  0x32   : > { %1632 = vmatpush1.bf16.msra.mxu0 %v478_v47  ;;  %1280 = vmatprep.subr.bf16.mxu1 %v449_v48  ;;  %v356_v33 = vld [vmem:[%s8186_s0 + $0x1b0] sm:$0xff]  ;;  %v418_v35 = vld [vmem:[%s8186_s0 + $0x3a0] sm:$0xff]  ;;  %v359_v37 = vld [vmem:[%s8186_s0 + $0x1c8] sm:$0xff]  ;;  %v489_v41 = vpack.c.bf16 %v421_v31, %v419_v30 }
  0x33   : > { %1633 = vmatprep.subr.bf16.mxu0 %v481_v52  ;;  %v420_v36 = vld [vmem:[%s8186_s0 + $0x3b0] sm:$0xff]  ;;  %v361_v40 = vld [vmem:[%s8186_s0 + $0x1d8] sm:$0xff]  ;;  %v423_v42 = vld [vmem:[%s8186_s0 + $0x3c8] sm:$0xff]  ;;  %v456_v46 = vpack.c.bf16 %v356_v33, %v354_v32 }
  0x34   : > { %v425_v43 = vld [vmem:[%s8186_s0 + $0x3d8] sm:$0xff]  ;;  %v358_v44 = vld [vmem:[%s8186_s0 + $0x1c0] sm:$0xff]  ;;  %v360_v45 = vld [vmem:[%s8186_s0 + $0x1d0] sm:$0xff]  ;;  %v488_v49 = vpack.c.bf16 %v420_v36, %v418_v35  ;;  %v459_v50 = vpack.c.bf16 %v361_v40, %v359_v37 }
  0x35   : > { %1281 = vmatpush1.bf16.msra.mxu1 %v448_v58  ;;  %v422_v47 = vld [vmem:[%s8186_s0 + $0x3c0] sm:$0xff]  ;;  %v424_v48 = vld [vmem:[%s8186_s0 + $0x3d0] sm:$0xff]  ;;  %v363_v51 = vld [vmem:[%s8186_s0 + $0x1e8] sm:$0xff]  ;;  %v491_v52 = vpack.c.bf16 %v425_v43, %v423_v42  ;;  %v458_v56 = vpack.c.bf16 %v360_v45, %v358_v44 }
  0x36   : > { %1634 = vmatpush1.bf16.msra.mxu0 %v480_v59  ;;  %1282 = vmatprep.subr.bf16.mxu1 %v451_v60  ;;  %v365_v53 = vld [vmem:[%s8186_s0 + $0x1f8] sm:$0xff]  ;;  %v427_v54 = vld [vmem:[%s8186_s0 + $0x3e8] sm:$0xff]  ;;  %v362_v57 = vld [vmem:[%s8186_s0 + $0x1e0] sm:$0xff]  ;;  %v490_v58 = vpack.c.bf16 %v424_v48, %v422_v47 }
  0x37   : > { %1635 = vmatprep.subr.bf16.mxu0 %v483_v0  ;;  %v429_v55 = vld [vmem:[%s8186_s0 + $0x3f8] sm:$0xff]  ;;  %v461_v59 = vpack.c.bf16 %v365_v53, %v363_v51  ;;  %v364_v60 = vld [vmem:[%s8186_s0 + $0x1f0] sm:$0xff]  ;;  %v426_v62 = vld [vmem:[%s8186_s0 + $0x3e0] sm:$0xff] }
  0x38   : > { %v493_v61 = vpack.c.bf16 %v429_v55, %v427_v54  ;;  %v428_v63 = vld [vmem:[%s8186_s0 + $0x3f0] sm:$0xff]  ;;  %v460_v0 = vpack.c.bf16 %v364_v60, %v362_v57  ;;  %v5043_v3 = vld [vmem:[%s5704_s29 + $0x8] ss:$16 sps:$4 sm:$0xff]   ;;  %v5048_v5 = vld [vmem:[%s5704_s29 + $0x2c] ss:$16 sps:$4 sm:$0xff]  }
  0x39   : > { %1283 = vmatpush1.bf16.msra.mxu1 %v450_v6  ;;  %v492_v1 = vpack.c.bf16 %v428_v63, %v426_v62  ;;  %v5040_v2 = vld [vmem:[%s5704_s29] ss:$16 sps:$4 sm:$0xff]   ;;  %v5046_v4 = vld [vmem:[%s5704_s29 + $0x24] ss:$16 sps:$4 sm:$0xff]   ;;  %v5051_v7 = vld [vmem:[%s5704_s29 + $0x28] ss:$16 sps:$4 sm:$0xff]  }
  0x3a   : > { %1636 = vmatpush1.bf16.msra.mxu0 %v482_v10  ;;  %1284 = vmatprep.subr.bf16.mxu1 %v453_v11  ;;  %v5050_v6 = vld [vmem:[%s5704_s29 + $0x20] ss:$16 sps:$4 sm:$0xff]   ;;  %v5052_v8 = vld [vmem:[%s5704_s29 + $0x44] ss:$16 sps:$4 sm:$0xff]   ;;  %v5054_v9 = vld [vmem:[%s5704_s29 + $0x4c] ss:$16 sps:$4 sm:$0xff]  }
  0x3b   : > { %1637 = vmatprep.subr.bf16.mxu0 %v485_v15  ;;  %v5056_v10 = vld [vmem:[%s5704_s29 + $0x40] ss:$16 sps:$4 sm:$0xff]   ;;  %v5057_v11 = vld [vmem:[%s5704_s29 + $0x48] ss:$16 sps:$4 sm:$0xff]   ;;  %v5058_v12 = vld [vmem:[%s5704_s29 + $0x64] ss:$16 sps:$4 sm:$0xff]  }
  0x3c   : > { %v5060_v13 = vld [vmem:[%s5704_s29 + $0x6c] ss:$16 sps:$4 sm:$0xff]   ;;  %v5062_v14 = vld [vmem:[%s5704_s29 + $0x60] ss:$16 sps:$4 sm:$0xff]   ;;  %v5063_v15 = vld [vmem:[%s5704_s29 + $0x68] ss:$16 sps:$4 sm:$0xff]  }
  0x3d   : > { %1285 = vmatpush1.bf16.msra.mxu1 %v452_v21  ;;  %v5064_v16 = vld [vmem:[%s5704_s29 + $0x84] ss:$16 sps:$4 sm:$0xff]   ;;  %v5066_v17 = vld [vmem:[%s5704_s29 + $0x8c] ss:$16 sps:$4 sm:$0xff]   ;;  %v5068_v18 = vld [vmem:[%s5704_s29 + $0x80] ss:$16 sps:$4 sm:$0xff]  }
  0x3e   : > { %1638 = vmatpush1.bf16.msra.mxu0 %v484_v26  ;;  %1286 = vmatprep.subr.bf16.mxu1 %v455_v27  ;;  %v5069_v19 = vld [vmem:[%s5704_s29 + $0x88] ss:$16 sps:$4 sm:$0xff]   ;;  %v5070_v20 = vld [vmem:[%s5704_s29 + $0xa4] ss:$16 sps:$4 sm:$0xff]   ;;  %v5072_v21 = vld [vmem:[%s5704_s29 + $0xac] ss:$16 sps:$4 sm:$0xff]  }
  0x3f   : > { %1639 = vmatprep.subr.bf16.mxu0 %v487_v29  ;;  %v5074_v22 = vld [vmem:[%s5704_s29 + $0xa0] ss:$16 sps:$4 sm:$0xff]   ;;  %v5075_v23 = vld [vmem:[%s5704_s29 + $0xa8] ss:$16 sps:$4 sm:$0xff]   ;;  %v5076_v24 = vld [vmem:[%s5704_s29 + $0xc4] ss:$16 sps:$4 sm:$0xff]  }
  0x40   : > { %v5078_v25 = vld [vmem:[%s5704_s29 + $0xcc] ss:$16 sps:$4 sm:$0xff]   ;;  %v5080_v26 = vld [vmem:[%s5704_s29 + $0xc0] ss:$16 sps:$4 sm:$0xff]   ;;  %v5081_v27 = vld [vmem:[%s5704_s29 + $0xc8] ss:$16 sps:$4 sm:$0xff]  }
  0x41   : > { %1287 = vmatpush1.bf16.msra.mxu1 %v454_v34  ;;  %v5082_v28 = vld [vmem:[%s5704_s29 + $0xe4] ss:$16 sps:$4 sm:$0xff]   ;;  %v5084_v29 = vld [vmem:[%s5704_s29 + $0xec] ss:$16 sps:$4 sm:$0xff]   ;;  %v5086_v30 = vld [vmem:[%s5704_s29 + $0xe0] ss:$16 sps:$4 sm:$0xff]  }
  0x42   : > { %1640 = vmatpush1.bf16.msra.mxu0 %v486_v38  ;;  %1288 = vmatprep.subr.bf16.mxu1 %v457_v39  ;;  %v5087_v31 = vld [vmem:[%s5704_s29 + $0xe8] ss:$16 sps:$4 sm:$0xff]   ;;  %v5088_v32 = vld [vmem:[%s5704_s29 + $0x104] ss:$16 sps:$4 sm:$0xff]   ;;  %v5090_v33 = vld [vmem:[%s5704_s29 + $0x10c] ss:$16 sps:$4 sm:$0xff]  }
  0x43   : > { %1641 = vmatprep.subr.bf16.mxu0 %v489_v41  ;;  %v5092_v34 = vld [vmem:[%s5704_s29 + $0x100] ss:$16 sps:$4 sm:$0xff]   ;;  %v5093_v35 = vld [vmem:[%s5704_s29 + $0x108] ss:$16 sps:$4 sm:$0xff]   ;;  %v5094_v36 = vld [vmem:[%s5704_s29 + $0x124] ss:$16 sps:$4 sm:$0xff]  }
  0x44   : > { %v5096_v37 = vld [vmem:[%s5704_s29 + $0x12c] ss:$16 sps:$4 sm:$0xff]   ;;  %v5098_v38 = vld [vmem:[%s5704_s29 + $0x120] ss:$16 sps:$4 sm:$0xff]   ;;  %v5099_v39 = vld [vmem:[%s5704_s29 + $0x128] ss:$16 sps:$4 sm:$0xff]  }
  0x45   : > { %1289 = vmatpush1.bf16.msra.mxu1 %v456_v46  ;;  %v5100_v40 = vld [vmem:[%s5704_s29 + $0x144] ss:$16 sps:$4 sm:$0xff]   ;;  %v5102_v41 = vld [vmem:[%s5704_s29 + $0x14c] ss:$16 sps:$4 sm:$0xff]   ;;  %v5104_v42 = vld [vmem:[%s5704_s29 + $0x140] ss:$16 sps:$4 sm:$0xff]  }
  0x46   : > { %1642 = vmatpush1.bf16.msra.mxu0 %v488_v49  ;;  %1290 = vmatprep.subr.bf16.mxu1 %v459_v50  ;;  %v5105_v43 = vld [vmem:[%s5704_s29 + $0x148] ss:$16 sps:$4 sm:$0xff]   ;;  %v5106_v44 = vld [vmem:[%s5704_s29 + $0x164] ss:$16 sps:$4 sm:$0xff]   ;;  %v5108_v45 = vld [vmem:[%s5704_s29 + $0x16c] ss:$16 sps:$4 sm:$0xff]  }
  0x47   : > { %1643 = vmatprep.subr.bf16.mxu0 %v491_v52  ;;  %v5110_v46 = vld [vmem:[%s5704_s29 + $0x160] ss:$16 sps:$4 sm:$0xff]   ;;  %v5111_v47 = vld [vmem:[%s5704_s29 + $0x168] ss:$16 sps:$4 sm:$0xff]   ;;  %v5112_v48 = vld [vmem:[%s5704_s29 + $0x184] ss:$16 sps:$4 sm:$0xff]  }
  0x48   : > { %v5114_v49 = vld [vmem:[%s5704_s29 + $0x18c] ss:$16 sps:$4 sm:$0xff]   ;;  %v5116_v50 = vld [vmem:[%s5704_s29 + $0x180] ss:$16 sps:$4 sm:$0xff]   ;;  %v5117_v51 = vld [vmem:[%s5704_s29 + $0x188] ss:$16 sps:$4 sm:$0xff]  }
  0x49   : > { %1291 = vmatpush1.bf16.msra.mxu1 %v458_v56  ;;  %v5118_v52 = vld [vmem:[%s5704_s29 + $0x1a4] ss:$16 sps:$4 sm:$0xff]   ;;  %v5120_v53 = vld [vmem:[%s5704_s29 + $0x1ac] ss:$16 sps:$4 sm:$0xff]   ;;  %v5122_v54 = vld [vmem:[%s5704_s29 + $0x1a0] ss:$16 sps:$4 sm:$0xff]  }
  0x4a   : > { %1644 = vmatpush1.bf16.msra.mxu0 %v490_v58  ;;  %1292 = vmatprep.subr.bf16.mxu1 %v461_v59  ;;  %v5123_v55 = vld [vmem:[%s5704_s29 + $0x1a8] ss:$16 sps:$4 sm:$0xff]   ;;  %v5124_v56 = vld [vmem:[%s5704_s29 + $0x1c4] ss:$16 sps:$4 sm:$0xff]   ;;  %v5126_v57 = vld [vmem:[%s5704_s29 + $0x1cc] ss:$16 sps:$4 sm:$0xff]  }
  0x4b   : > { %1645 = vmatprep.subr.bf16.mxu0 %v493_v61  ;;  %v5128_v58 = vld [vmem:[%s5704_s29 + $0x1c0] ss:$16 sps:$4 sm:$0xff]   ;;  %v5129_v59 = vld [vmem:[%s5704_s29 + $0x1c8] ss:$16 sps:$4 sm:$0xff]   ;;  %v5130_v60 = vld [vmem:[%s5704_s29 + $0x1e4] ss:$16 sps:$4 sm:$0xff]  }
  0x4c   : > { %v5132_v61 = vld [vmem:[%s5704_s29 + $0x1ec] ss:$16 sps:$4 sm:$0xff]   ;;  %v5134_v62 = vld [vmem:[%s5704_s29 + $0x1e0] ss:$16 sps:$4 sm:$0xff]   ;;  %v5135_v63 = vld [vmem:[%s5704_s29 + $0x1e8] ss:$16 sps:$4 sm:$0xff]  }
  0x4d   : > { %1293 = vmatpush1.bf16.msra.mxu1 %v460_v0  ;;  %v5136_v0 = vld [vmem:[%s5704_s29 + $0x204] ss:$16 sps:$4 sm:$0xff]  }
  0x4e   : > { %1646 = vmatpush1.bf16.msra.mxu0 %v492_v1  ;;  %v5138_v1 = vld [vmem:[%s5704_s29 + $0x20c] ss:$16 sps:$4 sm:$0xff]  }
  0x50   : > { %1295 = vmatmul.mubr.bf16.vlgmr.msra.gmra.mrb[0].mxu1 %v5040_v2  ;;  %v5140_v2 = vld [vmem:[%s5704_s29 + $0x200] ss:$16 sps:$4 sm:$0xff]  }
  0x51   : > { %1648 = vmatmul.mubr.bf16.vlgmr.msra.gmra.mrb[0].mxu0 %v5043_v3  ;;  %1304 = vmatprep.mubr.bf16.mxu1 %v5046_v4  ;;  %v5141_v3 = vld [vmem:[%s5704_s29 + $0x208] ss:$16 sps:$4 sm:$0xff]   ;;  %v5142_v4 = vld [vmem:[%s5704_s29 + $0x224] ss:$16 sps:$4 sm:$0xff]  }
  0x52   : > { %1657 = vmatprep.mubr.bf16.mxu0 %v5048_v5  ;;  %v5144_v5 = vld [vmem:[%s5704_s29 + $0x22c] ss:$16 sps:$4 sm:$0xff]  }
  0x58   : > { %1305 = vmatmul.mubr.bf16.gmra.mrb[4].mxu1 %v5050_v6  ;;  %v5146_v6 = vld [vmem:[%s5704_s29 + $0x220] ss:$16 sps:$4 sm:$0xff]  }
  0x59   : > { %1658 = vmatmul.mubr.bf16.gmra.mrb[4].mxu0 %v5051_v7  ;;  %1314 = vmatprep.mubr.bf16.mxu1 %v5052_v8  ;;  %v5147_v7 = vld [vmem:[%s5704_s29 + $0x228] ss:$16 sps:$4 sm:$0xff]   ;;  %v5148_v8 = vld [vmem:[%s5704_s29 + $0x244] ss:$16 sps:$4 sm:$0xff]  }
  0x5a   : > { %1667 = vmatprep.mubr.bf16.mxu0 %v5054_v9  ;;  %v5150_v9 = vld [vmem:[%s5704_s29 + $0x24c] ss:$16 sps:$4 sm:$0xff]  }
  0x60   : > { %1315 = vmatmul.mubr.bf16.gmra.mrb[8].mxu1 %v5056_v10  ;;  %v5152_v10 = vld [vmem:[%s5704_s29 + $0x240] ss:$16 sps:$4 sm:$0xff]  }
  0x61   : > { %1668 = vmatmul.mubr.bf16.gmra.mrb[8].mxu0 %v5057_v11  ;;  %1324 = vmatprep.mubr.bf16.mxu1 %v5058_v12  ;;  %v5153_v11 = vld [vmem:[%s5704_s29 + $0x248] ss:$16 sps:$4 sm:$0xff]   ;;  %v5154_v12 = vld [vmem:[%s5704_s29 + $0x264] ss:$16 sps:$4 sm:$0xff]  }
  0x62   : > { %1677 = vmatprep.mubr.bf16.mxu0 %v5060_v13  ;;  %v5156_v13 = vld [vmem:[%s5704_s29 + $0x26c] ss:$16 sps:$4 sm:$0xff]  }
  0x68   : > { %1325 = vmatmul.mubr.bf16.gmra.mrb[12].mxu1 %v5062_v14  ;;  %v5158_v14 = vld [vmem:[%s5704_s29 + $0x260] ss:$16 sps:$4 sm:$0xff]  }
  0x69   : > { %1678 = vmatmul.mubr.bf16.gmra.mrb[12].mxu0 %v5063_v15  ;;  %1334 = vmatprep.mubr.bf16.mxu1 %v5064_v16  ;;  %v5159_v15 = vld [vmem:[%s5704_s29 + $0x268] ss:$16 sps:$4 sm:$0xff]   ;;  %v5160_v16 = vld [vmem:[%s5704_s29 + $0x284] ss:$16 sps:$4 sm:$0xff]  }
  0x6a   : > { %1687 = vmatprep.mubr.bf16.mxu0 %v5066_v17  ;;  %v5162_v17 = vld [vmem:[%s5704_s29 + $0x28c] ss:$16 sps:$4 sm:$0xff]  }
  0x70   : > { %1335 = vmatmul.mubr.bf16.gmra.mrb[16].mxu1 %v5068_v18  ;;  %v5164_v18 = vld [vmem:[%s5704_s29 + $0x280] ss:$16 sps:$4 sm:$0xff]  }
  0x71   : > { %1688 = vmatmul.mubr.bf16.gmra.mrb[16].mxu0 %v5069_v19  ;;  %1344 = vmatprep.mubr.bf16.mxu1 %v5070_v20  ;;  %v5165_v19 = vld [vmem:[%s5704_s29 + $0x288] ss:$16 sps:$4 sm:$0xff]   ;;  %v5166_v20 = vld [vmem:[%s5704_s29 + $0x2a4] ss:$16 sps:$4 sm:$0xff]  }
  0x72   : > { %1697 = vmatprep.mubr.bf16.mxu0 %v5072_v21  ;;  %v5168_v21 = vld [vmem:[%s5704_s29 + $0x2ac] ss:$16 sps:$4 sm:$0xff]  }
  0x78   : > { %1345 = vmatmul.mubr.bf16.gmra.mrb[20].mxu1 %v5074_v22  ;;  %v5170_v22 = vld [vmem:[%s5704_s29 + $0x2a0] ss:$16 sps:$4 sm:$0xff]  }
  0x79   : > { %1698 = vmatmul.mubr.bf16.gmra.mrb[20].mxu0 %v5075_v23  ;;  %1354 = vmatprep.mubr.bf16.mxu1 %v5076_v24  ;;  %v5171_v23 = vld [vmem:[%s5704_s29 + $0x2a8] ss:$16 sps:$4 sm:$0xff]   ;;  %v5172_v24 = vld [vmem:[%s5704_s29 + $0x2c4] ss:$16 sps:$4 sm:$0xff]  }
  0x7a   : > { %1707 = vmatprep.mubr.bf16.mxu0 %v5078_v25  ;;  %v5174_v25 = vld [vmem:[%s5704_s29 + $0x2cc] ss:$16 sps:$4 sm:$0xff]  }
  0x80   : > { %1355 = vmatmul.mubr.bf16.gmra.mrb[24].mxu1 %v5080_v26  ;;  %v5176_v26 = vld [vmem:[%s5704_s29 + $0x2c0] ss:$16 sps:$4 sm:$0xff]  }
  0x81   : > { %1708 = vmatmul.mubr.bf16.gmra.mrb[24].mxu0 %v5081_v27  ;;  %1364 = vmatprep.mubr.bf16.mxu1 %v5082_v28  ;;  %v5177_v27 = vld [vmem:[%s5704_s29 + $0x2c8] ss:$16 sps:$4 sm:$0xff]   ;;  %v5178_v28 = vld [vmem:[%s5704_s29 + $0x2e4] ss:$16 sps:$4 sm:$0xff]  }
  0x82   : > { %1717 = vmatprep.mubr.bf16.mxu0 %v5084_v29  ;;  %v5180_v29 = vld [vmem:[%s5704_s29 + $0x2ec] ss:$16 sps:$4 sm:$0xff]  }
  0x88   : > { %1365 = vmatmul.mubr.bf16.gmra.mrb[28].mxu1 %v5086_v30  ;;  %v5182_v30 = vld [vmem:[%s5704_s29 + $0x2e0] ss:$16 sps:$4 sm:$0xff]  }
  0x89   : > { %1718 = vmatmul.mubr.bf16.gmra.mrb[28].mxu0 %v5087_v31  ;;  %1374 = vmatprep.mubr.bf16.mxu1 %v5088_v32  ;;  %v5183_v31 = vld [vmem:[%s5704_s29 + $0x2e8] ss:$16 sps:$4 sm:$0xff]  }
  0x8a   : > { %1727 = vmatprep.mubr.bf16.mxu0 %v5090_v33 }
  0x90   : > { %1375 = vmatmul.mubr.bf16.gmra.mrb[32].mxu1 %v5092_v34 }
  0x91   : > { %1728 = vmatmul.mubr.bf16.gmra.mrb[32].mxu0 %v5093_v35  ;;  %1384 = vmatprep.mubr.bf16.mxu1 %v5094_v36 }
  0x92   : > { %1737 = vmatprep.mubr.bf16.mxu0 %v5096_v37 }
  0x98   : > { %1385 = vmatmul.mubr.bf16.gmra.mrb[36].mxu1 %v5098_v38 }
  0x99   : > { %1738 = vmatmul.mubr.bf16.gmra.mrb[36].mxu0 %v5099_v39  ;;  %1394 = vmatprep.mubr.bf16.mxu1 %v5100_v40 }
  0x9a   : > { %1747 = vmatprep.mubr.bf16.mxu0 %v5102_v41 }
  0xa0   : > { %1395 = vmatmul.mubr.bf16.gmra.mrb[40].mxu1 %v5104_v42 }
  0xa1   : > { %1748 = vmatmul.mubr.bf16.gmra.mrb[40].mxu0 %v5105_v43  ;;  %1404 = vmatprep.mubr.bf16.mxu1 %v5106_v44 }
  0xa2   : > { %1757 = vmatprep.mubr.bf16.mxu0 %v5108_v45 }
  0xa8   : > { %1405 = vmatmul.mubr.bf16.gmra.mrb[44].mxu1 %v5110_v46 }
  0xa9   : > { %1758 = vmatmul.mubr.bf16.gmra.mrb[44].mxu0 %v5111_v47  ;;  %1414 = vmatprep.mubr.bf16.mxu1 %v5112_v48 }
  0xaa   : > { %1767 = vmatprep.mubr.bf16.mxu0 %v5114_v49 }
  0xb0   : > { %1415 = vmatmul.mubr.bf16.gmra.mrb[48].mxu1 %v5116_v50 }
  0xb1   : > { %1768 = vmatmul.mubr.bf16.gmra.mrb[48].mxu0 %v5117_v51  ;;  %1424 = vmatprep.mubr.bf16.mxu1 %v5118_v52 }
  0xb2   : > { %1777 = vmatprep.mubr.bf16.mxu0 %v5120_v53 }
  0xb8   : > { %1425 = vmatmul.mubr.bf16.gmra.mrb[52].mxu1 %v5122_v54 }
  0xb9   : > { %1778 = vmatmul.mubr.bf16.gmra.mrb[52].mxu0 %v5123_v55  ;;  %1434 = vmatprep.mubr.bf16.mxu1 %v5124_v56 }
  0xba   : > { %1787 = vmatprep.mubr.bf16.mxu0 %v5126_v57 }
  0xc0   : > { %1435 = vmatmul.mubr.bf16.gmra.mrb[56].mxu1 %v5128_v58 }
  0xc1   : > { %1788 = vmatmul.mubr.bf16.gmra.mrb[56].mxu0 %v5129_v59  ;;  %1444 = vmatprep.mubr.bf16.mxu1 %v5130_v60 }
  0xc2   : > { %1797 = vmatprep.mubr.bf16.mxu0 %v5132_v61 }
  0xc8   : > { %1445 = vmatmul.mubr.bf16.gmra.mrb[60].mxu1 %v5134_v62 }
  0xc9   : > { %1798 = vmatmul.mubr.bf16.gmra.mrb[60].mxu0 %v5135_v63  ;;  %1454 = vmatprep.mubr.bf16.mxu1 %v5136_v0 }
  0xca   : > { %1807 = vmatprep.mubr.bf16.mxu0 %v5138_v1 }
  0xd0   : > { %1455 = vmatmul.mubr.bf16.gmra.mrb[64].mxu1 %v5140_v2 }
  0xd1   : > { %1808 = vmatmul.mubr.bf16.gmra.mrb[64].mxu0 %v5141_v3  ;;  %1464 = vmatprep.mubr.bf16.mxu1 %v5142_v4 }
  0xd2   : > { %1817 = vmatprep.mubr.bf16.mxu0 %v5144_v5 }
  0xd8   : > { %1465 = vmatmul.mubr.bf16.gmra.mrb[68].mxu1 %v5146_v6 }
  0xd9   : > { %1818 = vmatmul.mubr.bf16.gmra.mrb[68].mxu0 %v5147_v7  ;;  %1474 = vmatprep.mubr.bf16.mxu1 %v5148_v8 }
  0xda   : > { %1827 = vmatprep.mubr.bf16.mxu0 %v5150_v9 }
  0xe0   : > { %1475 = vmatmul.mubr.bf16.gmra.mrb[72].mxu1 %v5152_v10 }
  0xe1   : > { %1828 = vmatmul.mubr.bf16.gmra.mrb[72].mxu0 %v5153_v11  ;;  %1484 = vmatprep.mubr.bf16.mxu1 %v5154_v12 }
  0xe2   : > { %1837 = vmatprep.mubr.bf16.mxu0 %v5156_v13 }
  0xe8   : > { %1485 = vmatmul.mubr.bf16.gmra.mrb[76].mxu1 %v5158_v14 }
  0xe9   : > { %1838 = vmatmul.mubr.bf16.gmra.mrb[76].mxu0 %v5159_v15  ;;  %1494 = vmatprep.mubr.bf16.mxu1 %v5160_v16 }
  0xea   : > { %1847 = vmatprep.mubr.bf16.mxu0 %v5162_v17 }
  0xf0   : > { %1495 = vmatmul.mubr.bf16.gmra.mrb[80].mxu1 %v5164_v18 }
  0xf1   : > { %1848 = vmatmul.mubr.bf16.gmra.mrb[80].mxu0 %v5165_v19  ;;  %1504 = vmatprep.mubr.bf16.mxu1 %v5166_v20 }
  0xf2   : > { %1857 = vmatprep.mubr.bf16.mxu0 %v5168_v21 }
  0xf8   : > { %1505 = vmatmul.mubr.bf16.gmra.mrb[84].mxu1 %v5170_v22 }
  0xf9   : > { %1858 = vmatmul.mubr.bf16.gmra.mrb[84].mxu0 %v5171_v23  ;;  %1514 = vmatprep.mubr.bf16.mxu1 %v5172_v24 }
  0xfa   : > { %1867 = vmatprep.mubr.bf16.mxu0 %v5174_v25 }
 0x100   : > { %1515 = vmatmul.mubr.bf16.gmra.mrb[88].mxu1 %v5176_v26 }
 0x101   : > { %1868 = vmatmul.mubr.bf16.gmra.mrb[88].mxu0 %v5177_v27  ;;  %1524 = vmatprep.mubr.bf16.mxu1 %v5178_v28 }
 0x102   : > { %1877 = vmatprep.mubr.bf16.mxu0 %v5180_v29 }
 0x108   : > { %1525 = vmatmul.mubr.bf16.gmra.mrb[92].mxu1 %v5182_v30 }
 0x109   : > { %1878 = vmatmul.mubr.bf16.gmra.mrb[92].mxu0 %v5183_v31 }
 0x123   : > { %v1296_v32 = vpop.f32.mrb[0].mxu1 }
 0x124   : > { %v1649_v33 = vpop.f32.mrb[0].mxu0  ;;  %v1298_v34 = vpop.f32.mrb[1].mxu1 }
 0x125   : > { %v5901_v35 = vadd.f32 %v1649_v33, %v1296_v32  ;;  %v1651_v36 = vpop.f32.mrb[1].mxu0  ;;  %v1300_v37 = vpop.f32.mrb[2].mxu1 }
 0x126   : > { %v5903_v38 = vadd.f32 %v1651_v36, %v1298_v34  ;;  %v1653_v39 = vpop.f32.mrb[2].mxu0  ;;  %v1302_v40 = vpop.f32.mrb[3].mxu1 }
 0x127   : > { %v5905_v41 = vadd.f32 %v1653_v39, %v1300_v37  ;;  %v1655_v42 = vpop.f32.mrb[3].mxu0  ;;  %v2160_v48 = vmul.f32 %v5901_v35, %v5901_v35 }
 0x128   : > { %v5907_v43 = vadd.f32 %v1655_v42, %v1302_v40  ;;  %v1968_v44 = vadd.f32 %v5903_v38, %v5901_v35  ;;  %v2161_v49 = vmul.f32 %v5903_v38, %v5903_v38 }
 0x129   : > { %v2162_v45 = vmul.f32 %v5905_v41, %v5905_v41 }
 0x12a   : > { %1969 = vadd.xlane.f32.xlu0 %v1968_v44  ;;  %v2163_v46 = vmul.f32 %v5907_v43, %v5907_v43  ;;  %v1971_v53 = vadd.f32 %v5907_v43, %v5905_v41  ;;  %v2288_v62 = vadd.f32 %v2161_v49, %v2160_v48 }
 0x12b   : > { %v1306_v47 = vpop.f32.mrb[4].mxu1 }
 0x12c   : > { %v1659_v50 = vpop.f32.mrb[4].mxu0  ;;  %v1308_v51 = vpop.f32.mrb[5].mxu1  ;;  %v2291_v52 = vadd.f32 %v2163_v46, %v2162_v45 }
 0x12d   : > { %v5921_v54 = vadd.f32 %v1659_v50, %v1306_v47  ;;  %v1661_v55 = vpop.f32.mrb[5].mxu0  ;;  %v1310_v56 = vpop.f32.mrb[6].mxu1 }
 0x12e   : > { %v5923_v57 = vadd.f32 %v1661_v55, %v1308_v51  ;;  %v1663_v58 = vpop.f32.mrb[6].mxu0  ;;  %2292 = vadd.xlane.f32.xlu1 %v2291_v52  ;;  %1972 = vadd.xlane.f32.xlu0 %v1971_v53  ;;  %v1312_v59 = vpop.f32.mrb[7].mxu1 }
 0x12f   : > { %v5925_v60 = vadd.f32 %v1663_v58, %v1310_v56  ;;  %v1665_v61 = vpop.f32.mrb[7].mxu0  ;;  %v2164_v1 = vmul.f32 %v5921_v54, %v5921_v54 }
 0x130   : > { %v5927_v63 = vadd.f32 %v1665_v61, %v1312_v59  ;;  %v1974_v0 = vadd.f32 %v5923_v57, %v5921_v54  ;;  %v2165_v2 = vmul.f32 %v5923_v57, %v5923_v57 }
 0x131   : > { %v2166_v8 = vmul.f32 %v5925_v60, %v5925_v60 }
 0x132   : > { %2289 = vadd.xlane.f32.xlu0 %v2288_v62  ;;  %1975 = vadd.xlane.f32.xlu1 %v1974_v0  ;;  %v2294_v6 = vadd.f32 %v2165_v2, %v2164_v1  ;;  %v1977_v7 = vadd.f32 %v5927_v63, %v5925_v60  ;;  %v2167_v9 = vmul.f32 %v5927_v63, %v5927_v63 }
 0x133   : > { %v1316_v3 = vpop.f32.mrb[8].mxu1 }
 0x134   : > { %v1669_v4 = vpop.f32.mrb[8].mxu0  ;;  %v1318_v5 = vpop.f32.mrb[9].mxu1  ;;  %v2297_v20 = vadd.f32 %v2167_v9, %v2166_v8 }
 0x135   : > { %v5941_v10 = vadd.f32 %v1669_v4, %v1316_v3  ;;  %v1671_v11 = vpop.f32.mrb[9].mxu0  ;;  %v1320_v12 = vpop.f32.mrb[10].mxu1 }
 0x136   : > { %v5943_v13 = vadd.f32 %v1671_v11, %v1318_v5  ;;  %v1673_v14 = vpop.f32.mrb[10].mxu0  ;;  %2295 = vadd.xlane.f32.xlu0 %v2294_v6  ;;  %1978 = vadd.xlane.f32.xlu1 %v1977_v7  ;;  %v1322_v15 = vpop.f32.mrb[11].mxu1 }
 0x137   : > { %v5945_v16 = vadd.f32 %v1673_v14, %v1320_v12  ;;  %v1675_v17 = vpop.f32.mrb[11].mxu0  ;;  %v2168_v18 = vmul.f32 %v5941_v10, %v5941_v10 }
 0x138   : > { %v5949_v19 = vadd.f32 %v1675_v17, %v1322_v15  ;;  %v1980_v21 = vadd.f32 %v5943_v13, %v5941_v10  ;;  %v2169_v22 = vmul.f32 %v5943_v13, %v5943_v13 }
 0x139   : > { %v2170_v28 = vmul.f32 %v5945_v16, %v5945_v16 }
 0x13a   : > { %2298 = vadd.xlane.f32.xlu1 %v2297_v20  ;;  %1981 = vadd.xlane.f32.xlu0 %v1980_v21  ;;  %v2300_v23 = vadd.f32 %v2169_v22, %v2168_v18  ;;  %v1983_v27 = vadd.f32 %v5949_v19, %v5945_v16  ;;  %v2171_v29 = vmul.f32 %v5949_v19, %v5949_v19 }
 0x13b   : > { %v1326_v24 = vpop.f32.mrb[12].mxu1 }
 0x13c   : > { %v1679_v25 = vpop.f32.mrb[12].mxu0  ;;  %v1328_v26 = vpop.f32.mrb[13].mxu1  ;;  %v2303_v44 = vadd.f32 %v2171_v29, %v2170_v28 }
 0x13d   : > { %v5961_v30 = vadd.f32 %v1679_v25, %v1326_v24  ;;  %v1681_v31 = vpop.f32.mrb[13].mxu0  ;;  %v1330_v32 = vpop.f32.mrb[14].mxu1 }
 0x13e   : > { %v5963_v33 = vadd.f32 %v1681_v31, %v1328_v26  ;;  %v1683_v34 = vpop.f32.mrb[14].mxu0  ;;  %2301 = vadd.xlane.f32.xlu0 %v2300_v23  ;;  %1984 = vadd.xlane.f32.xlu1 %v1983_v27  ;;  %v1332_v36 = vpop.f32.mrb[15].mxu1 }
 0x13f   : > { %v5965_v37 = vadd.f32 %v1683_v34, %v1330_v32  ;;  %v1685_v39 = vpop.f32.mrb[15].mxu0  ;;  %v2172_v40 = vmul.f32 %v5961_v30, %v5961_v30 }
 0x140   : > { %8307 = vst [vmem:[#allocation2_spill] sm:$0xff] %v5963_v33  ;;  %v5969_v42 = vadd.f32 %v1685_v39, %v1332_v36  ;;  %v1986_v45 = vadd.f32 %v5963_v33, %v5961_v30  ;;  %v2173_v46 = vmul.f32 %v5963_v33, %v5963_v33  ;;  %v5184_v36 = vld [vmem:[%s5704_s29 + $0x304] ss:$16 sps:$4 sm:$0xff]   ;;  %v5186_v39 = vld [vmem:[%s5704_s29 + $0x30c] ss:$16 sps:$4 sm:$0xff]  }
 0x141   : > { %8308 = vst [vmem:[#allocation3_spill] sm:$0xff] %v5965_v37  ;;  %v2174_v52 = vmul.f32 %v5965_v37, %v5965_v37  ;;  %1534 = vmatprep.mubr.bf16.mxu1 %v5184_v36  ;;  %1887 = vmatprep.mubr.bf16.mxu0 %v5186_v39  ;;  %v5219_v33 = vld [vmem:[%s5704_s29 + $0x3a8] ss:$16 sps:$4 sm:$0xff]  }
 0x142   : > { %8309 = vst [vmem:[#allocation4_spill] sm:$0xff] %v5969_v42  ;;  %2304 = vadd.xlane.f32.xlu1 %v2303_v44  ;;  %1987 = vadd.xlane.f32.xlu0 %v1986_v45  ;;  %v2306_v47 = vadd.f32 %v2173_v46, %v2172_v40  ;;  %v1989_v51 = vadd.f32 %v5969_v42, %v5965_v37 }
 0x143   : > { %v1336_v48 = vpop.f32.mrb[16].mxu1  ;;  %v2175_v53 = vmul.f32 %v5969_v42, %v5969_v42  ;;  %v5204_v42 = vld [vmem:[%s5704_s29 + $0x36c] ss:$16 sps:$4 sm:$0xff]  }
 0x144   : > { %v1689_v49 = vpop.f32.mrb[16].mxu0  ;;  %v1338_v50 = vpop.f32.mrb[17].mxu1 }
 0x145   : > { %v5981_v55 = vadd.f32 %v1689_v49, %v1336_v48  ;;  %v1691_v56 = vpop.f32.mrb[17].mxu0  ;;  %v1340_v58 = vpop.f32.mrb[18].mxu1  ;;  %v2309_v4 = vadd.f32 %v2175_v53, %v2174_v52  ;;  %v5188_v48 = vld [vmem:[%s5704_s29 + $0x300] ss:$16 sps:$4 sm:$0xff]   ;;  %v5189_v49 = vld [vmem:[%s5704_s29 + $0x308] ss:$16 sps:$4 sm:$0xff]  }
 0x146   : > { %v5983_v59 = vadd.f32 %v1691_v56, %v1338_v50  ;;  %v1693_v61 = vpop.f32.mrb[18].mxu0  ;;  %2307 = vadd.xlane.f32.xlu0 %v2306_v47  ;;  %1990 = vadd.xlane.f32.xlu1 %v1989_v51  ;;  %v1342_v62 = vpop.f32.mrb[19].mxu1 }
 0x147   : > { %8310 = vst [vmem:[#allocation5_spill] sm:$0xff] %v5981_v55  ;;  %v5985_v0 = vadd.f32 %v1693_v61, %v1340_v58  ;;  %v1695_v1 = vpop.f32.mrb[19].mxu0  ;;  %v2176_v2 = vmul.f32 %v5981_v55, %v5981_v55  ;;  %1535 = vmatmul.mubr.bf16.gmra.mrb[96].mxu1 %v5188_v48  ;;  %1888 = vmatmul.mubr.bf16.gmra.mrb[96].mxu0 %v5189_v49 }
 0x148   : > { %8311 = vst [vmem:[#allocation6_spill] sm:$0xff] %v5983_v59  ;;  %v5989_v3 = vadd.f32 %v1695_v1, %v1342_v62  ;;  %v1992_v5 = vadd.f32 %v5983_v59, %v5981_v55  ;;  %v2177_v6 = vmul.f32 %v5983_v59, %v5983_v59  ;;  %v5202_v59 = vld [vmem:[%s5704_s29 + $0x364] ss:$16 sps:$4 sm:$0xff]  }
 0x149   : > { %8312 = vst [vmem:[#allocation7_spill] sm:$0xff] %v5985_v0  ;;  %v2178_v14 = vmul.f32 %v5985_v0, %v5985_v0 }
 0x14a   : > { %8313 = vst [vmem:[#allocation8_spill] sm:$0xff] %v5989_v3  ;;  %2310 = vadd.xlane.f32.xlu1 %v2309_v4  ;;  %1993 = vadd.xlane.f32.xlu0 %v1992_v5  ;;  %v2312_v7 = vadd.f32 %v2177_v6, %v2176_v2  ;;  %v1995_v12 = vadd.f32 %v5989_v3, %v5985_v0 }
 0x14b   : > { %v1346_v8 = vpop.f32.mrb[20].mxu1  ;;  %v2179_v15 = vmul.f32 %v5989_v3, %v5989_v3 }
 0x14c   : > { %v1699_v9 = vpop.f32.mrb[20].mxu0  ;;  %v1348_v11 = vpop.f32.mrb[21].mxu1 }
 0x14d   : > { %v6001_v17 = vadd.f32 %v1699_v9, %v1346_v8  ;;  %v1701_v18 = vpop.f32.mrb[21].mxu0  ;;  %v1350_v20 = vpop.f32.mrb[22].mxu1  ;;  %v2315_v28 = vadd.f32 %v2179_v15, %v2178_v14 }
 0x14e   : > { %v6003_v21 = vadd.f32 %v1701_v18, %v1348_v11  ;;  %v1703_v22 = vpop.f32.mrb[22].mxu0  ;;  %2313 = vadd.xlane.f32.xlu0 %v2312_v7  ;;  %1996 = vadd.xlane.f32.xlu1 %v1995_v12  ;;  %v1352_v23 = vpop.f32.mrb[23].mxu1 }
 0x14f   : > { %8314 = vst [vmem:[#allocation9_spill] sm:$0xff] %v6001_v17  ;;  %v6005_v24 = vadd.f32 %v1703_v22, %v1350_v20  ;;  %v1705_v25 = vpop.f32.mrb[23].mxu0  ;;  %v2180_v26 = vmul.f32 %v6001_v17, %v6001_v17 }
 0x150   : > { %8315 = vst [vmem:[#allocation10_spill] sm:$0xff] %v6003_v21  ;;  %v6009_v27 = vadd.f32 %v1705_v25, %v1352_v23  ;;  %v1998_v29 = vadd.f32 %v6003_v21, %v6001_v17  ;;  %v2181_v31 = vmul.f32 %v6003_v21, %v6003_v21 }
 0x151   : > { %8316 = vst [vmem:[#allocation11_spill] sm:$0xff] %v6005_v24  ;;  %v2182_v46 = vmul.f32 %v6005_v24, %v6005_v24 }
 0x152   : > { %8317 = vst [vmem:[#allocation12_spill] sm:$0xff] %v6009_v27  ;;  %2316 = vadd.xlane.f32.xlu1 %v2315_v28  ;;  %1999 = vadd.xlane.f32.xlu0 %v1998_v29  ;;  %v2318_v32 = vadd.f32 %v2181_v31, %v2180_v26  ;;  %v2001_v45 = vadd.f32 %v6009_v27, %v6005_v24 }
 0x153   : > { %v1356_v34 = vpop.f32.mrb[24].mxu1  ;;  %v2183_v47 = vmul.f32 %v6009_v27, %v6009_v27 }
 0x154   : > { %v1709_v40 = vpop.f32.mrb[24].mxu0  ;;  %v1358_v44 = vpop.f32.mrb[25].mxu1 }
 0x155   : > { %v6025_v50 = vadd.f32 %v1709_v40, %v1356_v34  ;;  %v1711_v51 = vpop.f32.mrb[25].mxu0  ;;  %v1360_v52 = vpop.f32.mrb[26].mxu1  ;;  %v2321_v4 = vadd.f32 %v2183_v47, %v2182_v46 }
 0x156   : > { %v6027_v53 = vadd.f32 %v1711_v51, %v1358_v44  ;;  %v1713_v56 = vpop.f32.mrb[26].mxu0  ;;  %2319 = vadd.xlane.f32.xlu0 %v2318_v32  ;;  %2002 = vadd.xlane.f32.xlu1 %v2001_v45  ;;  %v1362_v58 = vpop.f32.mrb[27].mxu1  ;;  %v5368_v45 = vmov 0  }
 0x157   : > { %8318 = vst [vmem:[#allocation13_spill] sm:$0xff] %v6025_v50  ;;  %v6029_v61 = vadd.f32 %v1713_v56, %v1360_v52  ;;  %v1715_v62 = vpop.f32.mrb[27].mxu0  ;;  %v2184_v1 = vmul.f32 %v6025_v50, %v6025_v50  ;;  %5039 = vset.pattern.permute.xlu1 %v5368_v45  ;;  %5038 = vset.pattern.permute.xlu0 %v5368_v45 }
 0x158   : > { %8319 = vst [vmem:[#allocation14_spill] sm:$0xff] %v6027_v53  ;;  %v6033_v2 = vadd.f32 %v1715_v62, %v1362_v58  ;;  %v2004_v5 = vadd.f32 %v6027_v53, %v6025_v50  ;;  %v2185_v6 = vmul.f32 %v6027_v53, %v6027_v53 }
 0x159   : > { %8320 = vst [vmem:[#allocation15_spill] sm:$0xff] %v6029_v61  ;;  %v2186_v14 = vmul.f32 %v6029_v61, %v6029_v61 }
 0x15a   : > { %8321 = vst [vmem:[#allocation16_spill] sm:$0xff] %v6033_v2  ;;  %2322 = vadd.xlane.f32.xlu1 %v2321_v4  ;;  %2005 = vadd.xlane.f32.xlu0 %v2004_v5  ;;  %v2324_v7 = vadd.f32 %v2185_v6, %v2184_v1  ;;  %v2007_v12 = vadd.f32 %v6033_v2, %v6029_v61 }
 0x15b   : > { %v1366_v8 = vpop.f32.mrb[28].mxu1  ;;  %v2187_v15 = vmul.f32 %v6033_v2, %v6033_v2 }
 0x15c   : > { %v1719_v9 = vpop.f32.mrb[28].mxu0  ;;  %v1368_v11 = vpop.f32.mrb[29].mxu1 }
 0x15d   : > { %v6045_v18 = vadd.f32 %v1719_v9, %v1366_v8  ;;  %v1721_v20 = vpop.f32.mrb[29].mxu0  ;;  %v1370_v22 = vpop.f32.mrb[30].mxu1  ;;  %v2327_v34 = vadd.f32 %v2187_v15, %v2186_v14 }
 0x15e   : > { %v6047_v23 = vadd.f32 %v1721_v20, %v1368_v11  ;;  %v1723_v25 = vpop.f32.mrb[30].mxu0  ;;  %2325 = vadd.xlane.f32.xlu0 %v2324_v7  ;;  %2008 = vadd.xlane.f32.xlu1 %v2007_v12  ;;  %v1372_v26 = vpop.f32.mrb[31].mxu1 }
 0x15f   : > { %8322 = vst [vmem:[#allocation17_spill] sm:$0xff] %v6045_v18  ;;  %v6049_v28 = vadd.f32 %v1723_v25, %v1370_v22  ;;  %v1725_v29 = vpop.f32.mrb[31].mxu0  ;;  %v2188_v31 = vmul.f32 %v6045_v18, %v6045_v18 }
 0x160   : > { %8323 = vst [vmem:[#allocation18_spill] sm:$0xff] %v6047_v23  ;;  %v6053_v32 = vadd.f32 %v1725_v29, %v1372_v26  ;;  %v2010_v36 = vadd.f32 %v6047_v23, %v6045_v18  ;;  %v2189_v39 = vmul.f32 %v6047_v23, %v6047_v23 }
 0x161   : > { %8324 = vst [vmem:[#allocation19_spill] sm:$0xff] %v6049_v28  ;;  %v2190_v49 = vmul.f32 %v6049_v28, %v6049_v28 }
 0x162   : > { %8325 = vst [vmem:[#allocation20_spill] sm:$0xff] %v6053_v32  ;;  %2328 = vadd.xlane.f32.xlu1 %v2327_v34  ;;  %2011 = vadd.xlane.f32.xlu0 %v2010_v36  ;;  %v2330_v40 = vadd.f32 %v2189_v39, %v2188_v31  ;;  %v2013_v48 = vadd.f32 %v6053_v32, %v6049_v28  ;;  %v2929_v28 = vld [vmem:[%s6383_s13 + $0x8] sm:$0xff] }
 0x163   : > { %v1376_v44 = vpop.f32.mrb[32].mxu1  ;;  %v2191_v51 = vmul.f32 %v6053_v32, %v6053_v32 }
 0x164   : > { %v1729_v46 = vpop.f32.mrb[32].mxu0  ;;  %v1378_v47 = vpop.f32.mrb[33].mxu1 }
 0x165   : > { %v6065_v52 = vadd.f32 %v1729_v46, %v1376_v44  ;;  %v1731_v56 = vpop.f32.mrb[33].mxu0  ;;  %v1380_v58 = vpop.f32.mrb[34].mxu1  ;;  %v2333_v9 = vadd.f32 %v2191_v51, %v2190_v49 }
 0x166   : > { %v6067_v62 = vadd.f32 %v1731_v56, %v1378_v47  ;;  %v1733_v1 = vpop.f32.mrb[34].mxu0  ;;  %2331 = vadd.xlane.f32.xlu0 %v2330_v40  ;;  %2014 = vadd.xlane.f32.xlu1 %v2013_v48  ;;  %v1382_v4 = vpop.f32.mrb[35].mxu1 }
 0x167   : > { %8326 = vst [vmem:[#allocation21_spill] sm:$0xff] %v6065_v52  ;;  %v6069_v5 = vadd.f32 %v1733_v1, %v1380_v58  ;;  %v1735_v6 = vpop.f32.mrb[35].mxu0  ;;  %v2192_v7 = vmul.f32 %v6065_v52, %v6065_v52 }
 0x168   : > { %8327 = vst [vmem:[#allocation22_spill] sm:$0xff] %v6067_v62  ;;  %v6073_v8 = vadd.f32 %v1735_v6, %v1382_v4  ;;  %v2016_v11 = vadd.f32 %v6067_v62, %v6065_v52  ;;  %v2193_v12 = vmul.f32 %v6067_v62, %v6067_v62 }
 0x169   : > { %8328 = vst [vmem:[#allocation23_spill] sm:$0xff] %v6069_v5  ;;  %v2194_v26 = vmul.f32 %v6069_v5, %v6069_v5 }
 0x16a   : > { %8329 = vst [vmem:[#allocation24_spill] sm:$0xff] %v6073_v8  ;;  %2334 = vadd.xlane.f32.xlu1 %v2333_v9  ;;  %2017 = vadd.xlane.f32.xlu0 %v2016_v11  ;;  %v2336_v14 = vadd.f32 %v2193_v12, %v2192_v7  ;;  %v2019_v25 = vadd.f32 %v6073_v8, %v6069_v5  ;;  %v5201_v5 = vld [vmem:[%s5704_s29 + $0x348] ss:$16 sps:$4 sm:$0xff]  }
 0x16b   : > { %v1386_v15 = vpop.f32.mrb[36].mxu1  ;;  %v2195_v29 = vmul.f32 %v6073_v8, %v6073_v8 }
 0x16c   : > { %v1739_v20 = vpop.f32.mrb[36].mxu0  ;;  %v1388_v22 = vpop.f32.mrb[37].mxu1 }
 0x16d   : > { %v6085_v31 = vadd.f32 %v1739_v20, %v1386_v15  ;;  %v1741_v34 = vpop.f32.mrb[37].mxu0  ;;  %v1390_v36 = vpop.f32.mrb[38].mxu1  ;;  %v2339_v49 = vadd.f32 %v2195_v29, %v2194_v26 }
 0x16e   : > { %v6087_v39 = vadd.f32 %v1741_v34, %v1388_v22  ;;  %v1743_v40 = vpop.f32.mrb[38].mxu0  ;;  %2337 = vadd.xlane.f32.xlu0 %v2336_v14  ;;  %2020 = vadd.xlane.f32.xlu1 %v2019_v25  ;;  %v1392_v44 = vpop.f32.mrb[39].mxu1 }
 0x16f   : > { %8330 = vst [vmem:[#allocation25_spill] sm:$0xff] %v6085_v31  ;;  %v6089_v45 = vadd.f32 %v1743_v40, %v1390_v36  ;;  %v1745_v46 = vpop.f32.mrb[39].mxu0  ;;  %v2196_v47 = vmul.f32 %v6085_v31, %v6085_v31 }
 0x170   : > { %8331 = vst [vmem:[#allocation26_spill] sm:$0xff] %v6087_v39  ;;  %v6093_v48 = vadd.f32 %v1745_v46, %v1392_v44  ;;  %v2022_v51 = vadd.f32 %v6087_v39, %v6085_v31  ;;  %v2197_v56 = vmul.f32 %v6087_v39, %v6087_v39  ;;  %v5200_v31 = vld [vmem:[%s5704_s29 + $0x340] ss:$16 sps:$4 sm:$0xff]  }
 0x171   : > { %8332 = vst [vmem:[#allocation27_spill] sm:$0xff] %v6089_v45  ;;  %v2198_v9 = vmul.f32 %v6089_v45, %v6089_v45 }
 0x172   : > { %8333 = vst [vmem:[#allocation28_spill] sm:$0xff] %v6093_v48  ;;  %2340 = vadd.xlane.f32.xlu1 %v2339_v49  ;;  %2023 = vadd.xlane.f32.xlu0 %v2022_v51  ;;  %v2342_v58 = vadd.f32 %v2197_v56, %v2196_v47  ;;  %v2025_v7 = vadd.f32 %v6093_v48, %v6089_v45 }
 0x173   : > { %v1396_v1 = vpop.f32.mrb[40].mxu1  ;;  %v2199_v11 = vmul.f32 %v6093_v48, %v6093_v48 }
 0x174   : > { %v1749_v4 = vpop.f32.mrb[40].mxu0  ;;  %v1398_v6 = vpop.f32.mrb[41].mxu1 }
 0x175   : > { %v6105_v12 = vadd.f32 %v1749_v4, %v1396_v1  ;;  %v1751_v14 = vpop.f32.mrb[41].mxu0  ;;  %v1400_v15 = vpop.f32.mrb[42].mxu1  ;;  %v2345_v40 = vadd.f32 %v2199_v11, %v2198_v9 }
 0x176   : > { %v6107_v20 = vadd.f32 %v1751_v14, %v1398_v6  ;;  %v1753_v22 = vpop.f32.mrb[42].mxu0  ;;  %2343 = vadd.xlane.f32.xlu0 %v2342_v58  ;;  %2026 = vadd.xlane.f32.xlu1 %v2025_v7  ;;  %v1402_v25 = vpop.f32.mrb[43].mxu1 }
 0x177   : > { %8334 = vst [vmem:[#allocation29_spill] sm:$0xff] %v6105_v12  ;;  %v6109_v26 = vadd.f32 %v1753_v22, %v1400_v15  ;;  %v1755_v29 = vpop.f32.mrb[43].mxu0  ;;  %v2200_v34 = vmul.f32 %v6105_v12, %v6105_v12 }
 0x178   : > { %8335 = vst [vmem:[#allocation30_spill] sm:$0xff] %v6107_v20  ;;  %v6113_v36 = vadd.f32 %v1755_v29, %v1402_v25  ;;  %v2028_v44 = vadd.f32 %v6107_v20, %v6105_v12  ;;  %v2201_v46 = vmul.f32 %v6107_v20, %v6107_v20 }
 0x179   : > { %8336 = vst [vmem:[#allocation31_spill] sm:$0xff] %v6109_v26  ;;  %v2202_v1 = vmul.f32 %v6109_v26, %v6109_v26 }
 0x17a   : > { %8337 = vst [vmem:[#allocation32_spill] sm:$0xff] %v6113_v36  ;;  %2346 = vadd.xlane.f32.xlu1 %v2345_v40  ;;  %2029 = vadd.xlane.f32.xlu0 %v2028_v44  ;;  %v2348_v47 = vadd.f32 %v2201_v46, %v2200_v34  ;;  %v2031_v58 = vadd.f32 %v6113_v36, %v6109_v26 }
 0x17b   : > { %v1406_v49 = vpop.f32.mrb[44].mxu1  ;;  %v2203_v4 = vmul.f32 %v6113_v36, %v6113_v36 }
 0x17c   : > { %v1759_v51 = vpop.f32.mrb[44].mxu0  ;;  %v1408_v56 = vpop.f32.mrb[45].mxu1 }
 0x17d   : > { %v6125_v6 = vadd.f32 %v1759_v51, %v1406_v49  ;;  %v1761_v7 = vpop.f32.mrb[45].mxu0  ;;  %v1410_v9 = vpop.f32.mrb[46].mxu1  ;;  %v2351_v40 = vadd.f32 %v2203_v4, %v2202_v1 }
 0x17e   : > { %v6127_v11 = vadd.f32 %v1761_v7, %v1408_v56  ;;  %v1763_v14 = vpop.f32.mrb[46].mxu0  ;;  %2349 = vadd.xlane.f32.xlu0 %v2348_v47  ;;  %2032 = vadd.xlane.f32.xlu1 %v2031_v58  ;;  %v1412_v15 = vpop.f32.mrb[47].mxu1 }
 0x17f   : > { %8338 = vst [vmem:[#allocation33_spill] sm:$0xff] %v6125_v6  ;;  %v6129_v22 = vadd.f32 %v1763_v14, %v1410_v9  ;;  %v1765_v25 = vpop.f32.mrb[47].mxu0  ;;  %v2204_v29 = vmul.f32 %v6125_v6, %v6125_v6 }
 0x180   : > { %8339 = vst [vmem:[#allocation34_spill] sm:$0xff] %v6127_v11  ;;  %v6133_v34 = vadd.f32 %v1765_v25, %v1412_v15  ;;  %v2034_v44 = vadd.f32 %v6127_v11, %v6125_v6  ;;  %v2205_v46 = vmul.f32 %v6127_v11, %v6127_v11 }
 0x181   : > { %8340 = vst [vmem:[#allocation35_spill] sm:$0xff] %v6129_v22  ;;  %v2206_v7 = vmul.f32 %v6129_v22, %v6129_v22 }
 0x182   : > { %8341 = vst [vmem:[#allocation36_spill] sm:$0xff] %v6133_v34  ;;  %2352 = vadd.xlane.f32.xlu1 %v2351_v40  ;;  %2035 = vadd.xlane.f32.xlu0 %v2034_v44  ;;  %v2354_v47 = vadd.f32 %v2205_v46, %v2204_v29  ;;  %v2037_v58 = vadd.f32 %v6133_v34, %v6129_v22 }
 0x183   : > { %v1416_v49 = vpop.f32.mrb[48].mxu1  ;;  %v2207_v1 = vmul.f32 %v6133_v34, %v6133_v34 }
 0x184   : > { %v1769_v51 = vpop.f32.mrb[48].mxu0  ;;  %v1418_v56 = vpop.f32.mrb[49].mxu1 }
 0x185   : > { %v6145_v4 = vadd.f32 %v1769_v51, %v1416_v49  ;;  %v1771_v9 = vpop.f32.mrb[49].mxu0  ;;  %v1420_v14 = vpop.f32.mrb[50].mxu1  ;;  %v2357_v6 = vadd.f32 %v2207_v1, %v2206_v7 }
 0x186   : > { %v6147_v15 = vadd.f32 %v1771_v9, %v1418_v56  ;;  %v1773_v25 = vpop.f32.mrb[50].mxu0  ;;  %2355 = vadd.xlane.f32.xlu0 %v2354_v47  ;;  %2038 = vadd.xlane.f32.xlu1 %v2037_v58  ;;  %v1422_v29 = vpop.f32.mrb[51].mxu1 }
 0x187   : > { %8342 = vst [vmem:[#allocation37_spill] sm:$0xff] %v6145_v4  ;;  %v6149_v40 = vadd.f32 %v1773_v25, %v1420_v14  ;;  %v1775_v44 = vpop.f32.mrb[51].mxu0  ;;  %v2208_v46 = vmul.f32 %v6145_v4, %v6145_v4 }
 0x188   : > { %8343 = vst [vmem:[#allocation38_spill] sm:$0xff] %v6147_v15  ;;  %v6153_v11 = vadd.f32 %v1775_v44, %v1422_v29  ;;  %v2040_v49 = vadd.f32 %v6147_v15, %v6145_v4  ;;  %v2209_v51 = vmul.f32 %v6147_v15, %v6147_v15 }
 0x189   : > { %8344 = vst [vmem:[#allocation39_spill] sm:$0xff] %v6149_v40  ;;  %v2210_v25 = vmul.f32 %v6149_v40, %v6149_v40 }
 0x18a   : > { %8345 = vst [vmem:[#allocation40_spill] sm:$0xff] %v6153_v11  ;;  %2358 = vadd.xlane.f32.xlu1 %v2357_v6  ;;  %2041 = vadd.xlane.f32.xlu0 %v2040_v49  ;;  %v2360_v47 = vadd.f32 %v2209_v51, %v2208_v46  ;;  %v2043_v14 = vadd.f32 %v6153_v11, %v6149_v40  ;;  %v5192_v40 = vld [vmem:[%s5704_s29 + $0x32c] ss:$16 sps:$4 sm:$0xff]  }
 0x18b   : > { %v1426_v56 = vpop.f32.mrb[52].mxu1  ;;  %v2211_v7 = vmul.f32 %v6153_v11, %v6153_v11  ;;  %1897 = vmatprep.mubr.bf16.mxu0 %v5192_v40 }
 0x18c   : > { %v1779_v58 = vpop.f32.mrb[52].mxu0  ;;  %v1428_v9 = vpop.f32.mrb[53].mxu1 }
 0x18d   : > { %v6165_v1 = vadd.f32 %v1779_v58, %v1426_v56  ;;  %v1781_v29 = vpop.f32.mrb[53].mxu0  ;;  %v1430_v6 = vpop.f32.mrb[54].mxu1  ;;  %v2363_v56 = vadd.f32 %v2211_v7, %v2210_v25 }
 0x18e   : > { %v6167_v44 = vadd.f32 %v1781_v29, %v1428_v9  ;;  %v1783_v46 = vpop.f32.mrb[54].mxu0  ;;  %2361 = vadd.xlane.f32.xlu0 %v2360_v47  ;;  %2044 = vadd.xlane.f32.xlu1 %v2043_v14  ;;  %v1432_v49 = vpop.f32.mrb[55].mxu1  ;;  %v5190_v29 = vld [vmem:[%s5704_s29 + $0x324] ss:$16 sps:$4 sm:$0xff]   ;;  %v5194_v47 = vld [vmem:[%s5704_s29 + $0x320] ss:$16 sps:$4 sm:$0xff]  }
 0x18f   : > { %8346 = vst [vmem:[#allocation41_spill] sm:$0xff] %v6165_v1  ;;  %v6169_v51 = vadd.f32 %v1783_v46, %v1430_v6  ;;  %v1785_v15 = vpop.f32.mrb[55].mxu0  ;;  %v2212_v4 = vmul.f32 %v6165_v1, %v6165_v1  ;;  %v5195_v14 = vld [vmem:[%s5704_s29 + $0x328] ss:$16 sps:$4 sm:$0xff]   ;;  %1544 = vmatprep.mubr.bf16.mxu1 %v5190_v29 }
 0x190   : > { %8347 = vst [vmem:[#allocation42_spill] sm:$0xff] %v6167_v44  ;;  %v6173_v11 = vadd.f32 %v1785_v15, %v1432_v49  ;;  %v2046_v58 = vadd.f32 %v6167_v44, %v6165_v1  ;;  %v2213_v9 = vmul.f32 %v6167_v44, %v6167_v44  ;;  %1545 = vmatmul.mubr.bf16.gmra.mrb[100].mxu1 %v5194_v47 }
 0x191   : > { %8348 = vst [vmem:[#allocation43_spill] sm:$0xff] %v6169_v51  ;;  %v2214_v7 = vmul.f32 %v6169_v51, %v6169_v51  ;;  %1898 = vmatmul.mubr.bf16.gmra.mrb[100].mxu0 %v5195_v14 }
 0x192   : > { %8349 = vst [vmem:[#allocation44_spill] sm:$0xff] %v6173_v11  ;;  %2364 = vadd.xlane.f32.xlu1 %v2363_v56  ;;  %2047 = vadd.xlane.f32.xlu0 %v2046_v58  ;;  %v2366_v6 = vadd.f32 %v2213_v9, %v2212_v4  ;;  %v2049_v25 = vadd.f32 %v6173_v11, %v6169_v51 }
 0x193   : > { %v1436_v46 = vpop.f32.mrb[56].mxu1  ;;  %v2215_v49 = vmul.f32 %v6173_v11, %v6173_v11 }
 0x194   : > { %v1789_v34 = vpop.f32.mrb[56].mxu0  ;;  %v1438_v15 = vpop.f32.mrb[57].mxu1 }
 0x195   : > { %v6189_v44 = vadd.f32 %v1789_v34, %v1436_v46  ;;  %v1791_v56 = vpop.f32.mrb[57].mxu0  ;;  %v1440_v4 = vpop.f32.mrb[58].mxu1  ;;  %v2369_v47 = vadd.f32 %v2215_v49, %v2214_v7 }
 0x196   : > { %v6191_v58 = vadd.f32 %v1791_v56, %v1438_v15  ;;  %v1793_v40 = vpop.f32.mrb[58].mxu0  ;;  %2367 = vadd.xlane.f32.xlu0 %v2366_v6  ;;  %2050 = vadd.xlane.f32.xlu1 %v2049_v25  ;;  %v1442_v9 = vpop.f32.mrb[59].mxu1 }
 0x197   : > { %8350 = vst [vmem:[#allocation45_spill] sm:$0xff] %v6189_v44  ;;  %v6193_v29 = vadd.f32 %v1793_v40, %v1440_v4  ;;  %v1795_v1 = vpop.f32.mrb[59].mxu0  ;;  %v2216_v51 = vmul.f32 %v6189_v44, %v6189_v44 }
 0x198   : > { %8351 = vst [vmem:[#allocation46_spill] sm:$0xff] %v6191_v58  ;;  %v6197_v22 = vadd.f32 %v1795_v1, %v1442_v9  ;;  %v2052_v34 = vadd.f32 %v6191_v58, %v6189_v44  ;;  %v2217_v14 = vmul.f32 %v6191_v58, %v6191_v58 }
 0x199   : > { %8352 = vst [vmem:[#allocation47_spill] sm:$0xff] %v6193_v29  ;;  %v2218_v1 = vmul.f32 %v6193_v29, %v6193_v29 }
 0x19a   : > { %8353 = vst [vmem:[#allocation48_spill] sm:$0xff] %v6197_v22  ;;  %2370 = vadd.xlane.f32.xlu1 %v2369_v47  ;;  %2053 = vadd.xlane.f32.xlu0 %v2052_v34  ;;  %v2372_v6 = vadd.f32 %v2217_v14, %v2216_v51  ;;  %v2055_v56 = vadd.f32 %v6197_v22, %v6193_v29 }
 0x19b   : > { %v1446_v46 = vpop.f32.mrb[60].mxu1  ;;  %v2219_v7 = vmul.f32 %v6197_v22, %v6197_v22 }
 0x19c   : > { %v1799_v15 = vpop.f32.mrb[60].mxu0  ;;  %v1448_v25 = vpop.f32.mrb[61].mxu1 }
 0x19d   : > { %v6209_v49 = vadd.f32 %v1799_v15, %v1446_v46  ;;  %v1801_v4 = vpop.f32.mrb[61].mxu0  ;;  %v1450_v40 = vpop.f32.mrb[62].mxu1  ;;  %v2375_v29 = vadd.f32 %v2219_v7, %v2218_v1 }
 0x19e   : > { %v6211_v9 = vadd.f32 %v1801_v4, %v1448_v25  ;;  %v1803_v47 = vpop.f32.mrb[62].mxu0  ;;  %2373 = vadd.xlane.f32.xlu0 %v2372_v6  ;;  %2056 = vadd.xlane.f32.xlu1 %v2055_v56  ;;  %v1452_v51 = vpop.f32.mrb[63].mxu1 }
 0x19f   : > { %8354 = vst [vmem:[#allocation49_spill] sm:$0xff] %v6209_v49  ;;  %v6213_v34 = vadd.f32 %v1803_v47, %v1450_v40  ;;  %v1805_v14 = vpop.f32.mrb[63].mxu0  ;;  %v2220_v58 = vmul.f32 %v6209_v49, %v6209_v49 }
 0x1a0   : > { %8355 = vst [vmem:[#allocation50_spill] sm:$0xff] %v6211_v9  ;;  %v6217_v44 = vadd.f32 %v1805_v14, %v1452_v51  ;;  %v2058_v46 = vadd.f32 %v6211_v9, %v6209_v49  ;;  %v2221_v15 = vmul.f32 %v6211_v9, %v6211_v9 }
 0x1a1   : > { %8356 = vst [vmem:[#allocation51_spill] sm:$0xff] %v6213_v34  ;;  %v2222_v47 = vmul.f32 %v6213_v34, %v6213_v34 }
 0x1a2   : > { %8357 = vst [vmem:[#allocation52_spill] sm:$0xff] %v6217_v44  ;;  %2376 = vadd.xlane.f32.xlu1 %v2375_v29  ;;  %2059 = vadd.xlane.f32.xlu0 %v2058_v46  ;;  %v2378_v6 = vadd.f32 %v2221_v15, %v2220_v58  ;;  %v2061_v40 = vadd.f32 %v6217_v44, %v6213_v34 }
 0x1a3   : > { %v1456_v25 = vpop.f32.mrb[64].mxu1  ;;  %v2223_v1 = vmul.f32 %v6217_v44, %v6217_v44 }
 0x1a4   : > { %v1809_v56 = vpop.f32.mrb[64].mxu0  ;;  %v1458_v4 = vpop.f32.mrb[65].mxu1 }
 0x1a5   : > { %v6229_v7 = vadd.f32 %v1809_v56, %v1456_v25  ;;  %v1811_v51 = vpop.f32.mrb[65].mxu0  ;;  %v1460_v14 = vpop.f32.mrb[66].mxu1  ;;  %v2381_v22 = vadd.f32 %v2223_v1, %v2222_v47 }
 0x1a6   : > { %v6231_v9 = vadd.f32 %v1811_v51, %v1458_v4  ;;  %v1813_v29 = vpop.f32.mrb[66].mxu0  ;;  %2379 = vadd.xlane.f32.xlu0 %v2378_v6  ;;  %2062 = vadd.xlane.f32.xlu1 %v2061_v40  ;;  %v1462_v58 = vpop.f32.mrb[67].mxu1 }
 0x1a7   : > { %8358 = vst [vmem:[#allocation53_spill] sm:$0xff] %v6229_v7  ;;  %v6233_v46 = vadd.f32 %v1813_v29, %v1460_v14  ;;  %v1815_v15 = vpop.f32.mrb[67].mxu0  ;;  %v2224_v49 = vmul.f32 %v6229_v7, %v6229_v7 }
 0x1a8   : > { %8359 = vst [vmem:[#allocation54_spill] sm:$0xff] %v6231_v9  ;;  %v6237_v34 = vadd.f32 %v1815_v15, %v1462_v58  ;;  %v2064_v25 = vadd.f32 %v6231_v9, %v6229_v7  ;;  %v2225_v56 = vmul.f32 %v6231_v9, %v6231_v9 }
 0x1a9   : > { %8360 = vst [vmem:[#allocation55_spill] sm:$0xff] %v6233_v46  ;;  %v2226_v29 = vmul.f32 %v6233_v46, %v6233_v46 }
 0x1aa   : > { %8361 = vst [vmem:[#allocation56_spill] sm:$0xff] %v6237_v34  ;;  %2382 = vadd.xlane.f32.xlu1 %v2381_v22  ;;  %2065 = vadd.xlane.f32.xlu0 %v2064_v25  ;;  %v2384_v6 = vadd.f32 %v2225_v56, %v2224_v49  ;;  %v2067_v14 = vadd.f32 %v6237_v34, %v6233_v46 }
 0x1ab   : > { %v1466_v4 = vpop.f32.mrb[68].mxu1  ;;  %v2227_v47 = vmul.f32 %v6237_v34, %v6237_v34 }
 0x1ac   : > { %v1819_v40 = vpop.f32.mrb[68].mxu0  ;;  %v1468_v51 = vpop.f32.mrb[69].mxu1 }
 0x1ad   : > { %v6249_v1 = vadd.f32 %v1819_v40, %v1466_v4  ;;  %v1821_v58 = vpop.f32.mrb[69].mxu0  ;;  %v1470_v15 = vpop.f32.mrb[70].mxu1  ;;  %v2387_v44 = vadd.f32 %v2227_v47, %v2226_v29 }
 0x1ae   : > { %v6251_v9 = vadd.f32 %v1821_v58, %v1468_v51  ;;  %v1823_v22 = vpop.f32.mrb[70].mxu0  ;;  %2385 = vadd.xlane.f32.xlu0 %v2384_v6  ;;  %2068 = vadd.xlane.f32.xlu1 %v2067_v14  ;;  %v1472_v49 = vpop.f32.mrb[71].mxu1 }
 0x1af   : > { %8362 = vst [vmem:[#allocation57_spill] sm:$0xff] %v6249_v1  ;;  %v6253_v25 = vadd.f32 %v1823_v22, %v1470_v15  ;;  %v1825_v56 = vpop.f32.mrb[71].mxu0  ;;  %v2228_v7 = vmul.f32 %v6249_v1, %v6249_v1 }
 0x1b0   : > { %8363 = vst [vmem:[#allocation58_spill] sm:$0xff] %v6251_v9  ;;  %v6257_v46 = vadd.f32 %v1825_v56, %v1472_v49  ;;  %v2070_v4 = vadd.f32 %v6251_v9, %v6249_v1  ;;  %v2229_v40 = vmul.f32 %v6251_v9, %v6251_v9 }
 0x1b1   : > { %8364 = vst [vmem:[#allocation59_spill] sm:$0xff] %v6253_v25  ;;  %v2230_v22 = vmul.f32 %v6253_v25, %v6253_v25 }
 0x1b2   : > { %8365 = vst [vmem:[#allocation60_spill] sm:$0xff] %v6257_v46  ;;  %2388 = vadd.xlane.f32.xlu1 %v2387_v44  ;;  %2071 = vadd.xlane.f32.xlu0 %v2070_v4  ;;  %v2390_v6 = vadd.f32 %v2229_v40, %v2228_v7  ;;  %v2073_v15 = vadd.f32 %v6257_v46, %v6253_v25 }
 0x1b3   : > { %v1476_v51 = vpop.f32.mrb[72].mxu1  ;;  %v2231_v29 = vmul.f32 %v6257_v46, %v6257_v46 }
 0x1b4   : > { %v1829_v14 = vpop.f32.mrb[72].mxu0  ;;  %v1478_v58 = vpop.f32.mrb[73].mxu1 }
 0x1b5   : > { %v6269_v47 = vadd.f32 %v1829_v14, %v1476_v51  ;;  %v1831_v49 = vpop.f32.mrb[73].mxu0  ;;  %v1480_v56 = vpop.f32.mrb[74].mxu1  ;;  %v2393_v46 = vadd.f32 %v2231_v29, %v2230_v22 }
 0x1b6   : > { %v6271_v9 = vadd.f32 %v1831_v49, %v1478_v58  ;;  %v1833_v44 = vpop.f32.mrb[74].mxu0  ;;  %2391 = vadd.xlane.f32.xlu0 %v2390_v6  ;;  %2074 = vadd.xlane.f32.xlu1 %v2073_v15  ;;  %v1482_v7 = vpop.f32.mrb[75].mxu1 }
 0x1b7   : > { %8366 = vst [vmem:[#allocation61_spill] sm:$0xff] %v6269_v47  ;;  %v6273_v4 = vadd.f32 %v1833_v44, %v1480_v56  ;;  %v1835_v40 = vpop.f32.mrb[75].mxu0  ;;  %v1970_v1 = vpop.xlane.xlu0 %1969  ;;  %v2232_v25 = vmul.f32 %v6269_v47, %v6269_v47 }
 0x1b8   : > { %8367 = vst [vmem:[#allocation62_spill] sm:$0xff] %v6271_v9  ;;  %v6277_v34 = vadd.f32 %v1835_v40, %v1482_v7  ;;  %v2076_v51 = vadd.f32 %v6271_v9, %v6269_v47  ;;  %v2233_v14 = vmul.f32 %v6271_v9, %v6271_v9 }
 0x1b9   : > { %8368 = vst [vmem:[#allocation63_spill] sm:$0xff] %v6273_v4  ;;  %v2234_v7 = vmul.f32 %v6273_v4, %v6273_v4 }
 0x1ba   : > { %8369 = vst [vmem:[#allocation64_spill] sm:$0xff] %v6277_v34  ;;  %2394 = vadd.xlane.f32.xlu1 %v2393_v46  ;;  %2077 = vadd.xlane.f32.xlu0 %v2076_v51  ;;  %v2396_v6 = vadd.f32 %v2233_v14, %v2232_v25  ;;  %v2079_v44 = vadd.f32 %v6277_v34, %v6273_v4  ;;  %v6291_v46 = vmul.f32 0.00390625, %v1970_v1 }
 0x1bb   : > { %v2293_v58 = vpop.xlane.xlu1 %2292  ;;  %v1973_v15 = vpop.xlane.xlu0 %1972  ;;  %v2235_v22 = vmul.f32 %v6277_v34, %v6277_v34 }
 0x1bc   : > { %v1486_v49 = vpop.f32.mrb[76].mxu1  ;;  %v1839_v56 = vpop.f32.mrb[76].mxu0  ;;  %v6295_v47 = vmul.f32 0.00390625, %v1973_v15 }
 0x1bd   : > { %v6289_v29 = vadd.f32 %v1839_v56, %v1486_v49  ;;  %v1488_v40 = vpop.f32.mrb[77].mxu1  ;;  %v1841_v9 = vpop.f32.mrb[77].mxu0  ;;  %v2399_v26 = vadd.f32 %v2235_v22, %v2234_v7 }
 0x1be   : > { %v6293_v25 = vadd.f32 %v1841_v9, %v1488_v40  ;;  %v1843_v51 = vpop.f32.mrb[78].mxu0  ;;  %2397 = vadd.xlane.f32.xlu0 %v2396_v6  ;;  %2080 = vadd.xlane.f32.xlu1 %v2079_v44  ;;  %v1490_v14 = vpop.f32.mrb[78].mxu1  ;;  %v2608_v44 = vmul.f32 %v6291_v46, %v6291_v46 }
 0x1bf   : > { %8370 = vst [vmem:[#allocation65_spill] sm:$0xff] %v6289_v29  ;;  %v6297_v11 = vadd.f32 %v1843_v51, %v1490_v14  ;;  %v1845_v4 = vpop.f32.mrb[79].mxu0  ;;  %v2290_v36 = vpop.xlane.xlu0 %2289  ;;  %v2236_v49 = vmul.f32 %v6289_v29, %v6289_v29 }
 0x1c0   : > { %8371 = vst [vmem:[#allocation66_spill] sm:$0xff] %v6293_v25  ;;  %v2544_v56 = vmul.f32 0.00390625, %v2290_v36  ;;  %v6301_v34 = vpop.xlane.xlu1 %1975  ;;  %v1492_v1 = vpop.f32.mrb[79].mxu1  ;;  %v2082_v9 = vadd.f32 %v6293_v25, %v6289_v29  ;;  %v2237_v6 = vmul.f32 %v6293_v25, %v6293_v25  ;;  %v2609_v36 = vmul.f32 %v6295_v47, %v6295_v47 }
 0x1c1   : > { %8372 = vst [vmem:[#allocation67_spill] sm:$0xff] %v6297_v11  ;;  %v6307_v15 = vadd.f32 %v1845_v4, %v1492_v1  ;;  %v2238_v1 = vmul.f32 %v6297_v11, %v6297_v11 }
 0x1c2   : > { %2400 = vadd.xlane.f32.xlu1 %v2399_v26  ;;  %2083 = vadd.xlane.f32.xlu0 %v2082_v9  ;;  %v2402_v40 = vadd.f32 %v2237_v6, %v2236_v49  ;;  %v2672_v22 = vsub.f32 %v2544_v56, %v2608_v44  ;;  %v2545_v49 = vmul.f32 0.00390625, %v2293_v58 }
 0x1c3   : > { %8373 = vst [vmem:[#allocation68_spill] sm:$0xff] %v6307_v15  ;;  %v6313_v51 = vpop.xlane.xlu0 %2295  ;;  %v1496_v7 = vpop.f32.mrb[80].mxu1  ;;  %v2085_v4 = vadd.f32 %v6307_v15, %v6297_v11  ;;  %v2239_v26 = vmul.f32 %v6307_v15, %v6307_v15 }
 0x1c4   : > { %v6315_v14 = vpop.xlane.xlu1 %1978  ;;  %v1849_v29 = vpop.f32.mrb[80].mxu0  ;;  %v2673_v12 = vsub.f32 %v2545_v49, %v2609_v36  ;;  %v2736_v58 = vmax.f32 %v2672_v22, 0.0 }
 0x1c5   : > { %v6323_v9 = vadd.f32 %v1849_v29, %v1496_v7  ;;  %v1498_v6 = vpop.f32.mrb[81].mxu1  ;;  %v1851_v25 = vpop.f32.mrb[81].mxu0  ;;  %v2405_v11 = vadd.f32 %v2239_v26, %v2238_v1 }
 0x1c6   : > { %v6325_v20 = vadd.f32 %v1851_v25, %v1498_v6  ;;  %v1853_v56 = vpop.f32.mrb[82].mxu0  ;;  %2403 = vadd.xlane.f32.xlu0 %v2402_v40  ;;  %2086 = vadd.xlane.f32.xlu1 %v2085_v4  ;;  %v1500_v44 = vpop.f32.mrb[82].mxu1  ;;  %v2737_v4 = vmax.f32 %v2673_v12, 0.0 }
 0x1c7   : > { %8374 = vst [vmem:[#allocation69_spill] sm:$0xff] %v6323_v9  ;;  %v6327_v48 = vadd.f32 %v1853_v56, %v1500_v44  ;;  %v1855_v45 = vpop.f32.mrb[83].mxu0  ;;  %v6329_v39 = vpop.xlane.xlu0 %1981  ;;  %v2240_v15 = vmul.f32 %v6323_v9, %v6323_v9  ;;  %v2800_v56 = vadd.f32 1e-05, %v2736_v58 }
 0x1c8   : > { %8375 = vst [vmem:[#allocation70_spill] sm:$0xff] %v6325_v20  ;;  %v6333_v29 = vpop.xlane.xlu1 %2298  ;;  %v1502_v7 = vpop.f32.mrb[83].mxu1  ;;  %v2088_v25 = vadd.f32 %v6325_v20, %v6323_v9  ;;  %v2241_v36 = vmul.f32 %v6325_v20, %v6325_v20  ;;  %v5198_v9 = vld [vmem:[%s5704_s29 + $0x34c] ss:$16 sps:$4 sm:$0xff]  }
 0x1c9   : > { %8376 = vst [vmem:[#allocation71_spill] sm:$0xff] %v6327_v48  ;;  %v6337_v40 = vadd.f32 %v1855_v45, %v1502_v7  ;;  %v2242_v26 = vmul.f32 %v6327_v48, %v6327_v48  ;;  %5232 = vrsqrt.f32 %v2800_v56  ;;  %1907 = vmatprep.mubr.bf16.mxu0 %v5198_v9 }
 0x1ca   : > { %2406 = vadd.xlane.f32.xlu1 %v2405_v11  ;;  %2089 = vadd.xlane.f32.xlu0 %v2088_v25  ;;  %v2408_v6 = vadd.f32 %v2241_v36, %v2240_v15  ;;  %v5196_v25 = vld [vmem:[%s5704_s29 + $0x344] ss:$16 sps:$4 sm:$0xff]  }
 0x1cb   : > { %8377 = vst [vmem:[#allocation72_spill] sm:$0xff] %v6337_v40  ;;  %v6341_v49 = vpop.xlane.xlu0 %2301  ;;  %v1506_v22 = vpop.f32.mrb[84].mxu1  ;;  %v2091_v45 = vadd.f32 %v6337_v40, %v6327_v48  ;;  %v2243_v11 = vmul.f32 %v6337_v40, %v6337_v40  ;;  %1554 = vmatprep.mubr.bf16.mxu1 %v5196_v25  ;;  %1908 = vmatmul.mubr.bf16.gmra.mrb[104].mxu0 %v5201_v5 }
 0x1cc   : > { %v6343_v1 = vpop.xlane.xlu1 %1984  ;;  %v1859_v44 = vpop.f32.mrb[84].mxu0  ;;  %1555 = vmatmul.mubr.bf16.gmra.mrb[104].mxu1 %v5200_v31  ;;  %1917 = vmatprep.mubr.bf16.mxu0 %v5204_v42 }
 0x1cd   : > { %v6351_v12 = vadd.f32 %v1859_v44, %v1506_v22  ;;  %v1508_v15 = vpop.f32.mrb[85].mxu1  ;;  %v1861_v7 = vpop.f32.mrb[85].mxu0  ;;  %v2801_v22 = vadd.f32 1e-05, %v2737_v4  ;;  %1564 = vmatprep.mubr.bf16.mxu1 %v5202_v59 }
 0x1ce   : > { %2409 = vadd.xlane.f32.xlu0 %v2408_v6  ;;  %2092 = vadd.xlane.f32.xlu1 %v2091_v45  ;;  %v6354_v58 = vadd.f32 %v1861_v7, %v1508_v15  ;;  %v1510_v36 = vpop.f32.mrb[86].mxu1  ;;  %v1863_v20 = vpop.f32.mrb[86].mxu0  ;;  %v2411_v6 = vadd.f32 %v2243_v11, %v2242_v26 }
 0x1cf   : > { %8378 = vst [vmem:[#allocation73_spill] sm:$0xff] %v6351_v12  ;;  %v6358_v8 = vpop.xlane.xlu0 %1987  ;;  %v6360_v48 = vadd.f32 %v1863_v20, %v1510_v36  ;;  %v1865_v40 = vpop.f32.mrb[87].mxu0  ;;  %5234 = vrsqrt.f32 %v2801_v22 }
 0x1d0   : > { %8379 = vst [vmem:[#allocation74_spill] sm:$0xff] %v6354_v58  ;;  %v6363_v44 = vpop.xlane.xlu1 %2304  ;;  %v1512_v45 = vpop.f32.mrb[87].mxu1  ;;  %v2245_v59 = vmul.f32 %v6354_v58, %v6354_v58 }
 0x1d1   : > { %8380 = vst [vmem:[#allocation75_spill] sm:$0xff] %v6360_v48  ;;  %v6365_v15 = vadd.f32 %v1865_v40, %v1512_v45  ;;  %v2928_v45 = vld [vmem:[%s6383_s13] sm:$0xff] }
 0x1d2   : > { %2412 = vadd.xlane.f32.xlu1 %v2411_v6 }
 0x1d3   : > { %8381 = vst [vmem:[#allocation76_spill] sm:$0xff] %v6365_v15  ;;  %v6367_v7 = vpop.xlane.xlu0 %2307  ;;  %v1516_v20 = vpop.f32.mrb[88].mxu1 }
 0x1d4   : > { %v6369_v36 = vpop.xlane.xlu1 %1990  ;;  %v1869_v25 = vpop.f32.mrb[88].mxu0 }
 0x1d5   : > { %v1871_v4 = vpop.f32.mrb[89].mxu0  ;;  %v1518_v56 = vpop.f32.mrb[89].mxu1  ;;  %v6372_v62 = vadd.f32 %v1869_v25, %v1516_v20 }
 0x1d6   : > { %v6374_v26 = vadd.f32 %v1871_v4, %v1518_v56  ;;  %v1873_v9 = vpop.f32.mrb[90].mxu0  ;;  %v1520_v31 = vpop.f32.mrb[90].mxu1 }
 0x1d7   : > { %8382 = vst [vmem:[#allocation77_spill] sm:$0xff] %v6372_v62  ;;  %v6376_v40 = vpop.xlane.xlu0 %1993  ;;  %v1522_v5 = vpop.f32.mrb[91].mxu1  ;;  %v6386_v20 = vadd.f32 %v1873_v9, %v1520_v31  ;;  %v3056_v31 = vld [vmem:[%s6404_s15] sm:$0xff] }
 0x1d8   : > { %8383 = vst [vmem:[#allocation78_spill] sm:$0xff] %v6374_v26  ;;  %v6378_v11 = vpop.xlane.xlu1 %2310  ;;  %v1875_v6 = vpop.f32.mrb[91].mxu0 }
 0x1d9   : > { %v5233_v22 = vpop.eup %5232  ;;  %8384 = vst [vmem:[#allocation79_spill] sm:$0xff] %v6386_v20  ;;  %v6388_v25 = vadd.f32 %v1875_v6, %v1522_v5 }
 0x1da   : > { %v2992_v52 = vmul.f32 %v5233_v22, %v2928_v45  ;;  %v5235_v32 = vpop.eup %5234 }
 0x1db   : > { %8385 = vst [vmem:[#allocation80_spill] sm:$0xff] %v6388_v25  ;;  %v6390_v4 = vpop.xlane.xlu0 %2313  ;;  %v6399_v2 = vmul.f32 %v5235_v32, %v2929_v28  ;;  %v1526_v53 = vpop.f32.mrb[92].mxu1 }
 0x1dc   : > { %v6392_v56 = vpop.xlane.xlu1 %1996  ;;  %v3120_v9 = vmul.f32 %v2992_v52, %v6291_v46  ;;  %v1879_v27 = vpop.f32.mrb[92].mxu0 }
 0x1dd   : > { %v6425_v24 = vadd.f32 %v1879_v27, %v1526_v53 }
 0x1de   : > { %v3184_v22 = vsub.f32 %v3056_v31, %v3120_v9  ;;  %v1881_v9 = vpop.f32.mrb[93].mxu0 }
 0x1df   : > { %v6395_v23 = vpop.xlane.xlu0 %1999  ;;  %8390 = vst [vmem:[#allocation85_spill] sm:$0xff] %v6425_v24 }
 0x1e0   : > { %v6397_v18 = vpop.xlane.xlu1 %2316 }
 0x1e3   : > { %v6408_v5 = vpop.xlane.xlu0 %2319  ;;  %3383 = vperm.xlu1 %5039, %v6399_v2  }
 0x1e4   : > { %v6411_v6 = vpop.xlane.xlu1 %2002  ;;  %3378 = vperm.xlu0 %5038, %v2992_v52   ;;  %v1528_v52 = vpop.f32.mrb[93].mxu1 }
 0x1e5   : > { %v6427_v31 = vadd.f32 %v1881_v9, %v1528_v52  ;;  %v1530_v0 = vpop.f32.mrb[94].mxu1  ;;  %v5206_v9 = vld [vmem:[%s5704_s29 + $0x360] ss:$16 sps:$4 sm:$0xff]  }
 0x1e6   : > { %v1532_v27 = vpop.f32.mrb[95].mxu1  ;;  %1565 = vmatmul.mubr.bf16.gmra.mrb[108].mxu1 %v5206_v9 }
 0x1e7   : > { %v6413_v45 = vpop.xlane.xlu0 %2005  ;;  %3954 = vperm.xlu1 %5039, %v3184_v22   ;;  %8391 = vst [vmem:[#allocation86_spill] sm:$0xff] %v6427_v31 }
 0x1e8   : > { %8386 = vst [vmem:[#allocation81_spill] sm:$0xff] %v6413_v45  ;;  %v6415_v28 = vpop.xlane.xlu1 %2322  ;;  %v5214_v45 = vld [vmem:[%s5704_s29 + $0x3a4] ss:$16 sps:$4 sm:$0xff]  }
 0x1eb   : > { %v6417_v32 = vpop.xlane.xlu0 %2325 }
 0x1ec   : > { %8387 = vst [vmem:[#allocation82_spill] sm:$0xff] %v6417_v32  ;;  %v6419_v61 = vpop.xlane.xlu1 %2008  ;;  %v6964_v32 = vld [vmem:[%s6614_s20 + $0x3b0] sm:$0xff] }
 0x1ed   : > { %8552 = vst [vmem:[#allocation247_spill] sm:$0xff] %v6964_v32  ;;  %v6988_v32 = vld [vmem:[%s6614_s20 + $0x380] sm:$0xff] }
 0x1ee   : > { %8560 = vst [vmem:[#allocation255_spill] sm:$0xff] %v6988_v32  ;;  %v7007_v32 = vld [vmem:[%s6614_s20 + $0x3f0] sm:$0xff] }
 0x1ef   : > { %v6421_v46 = vpop.xlane.xlu0 %2011  ;;  %8565 = vst [vmem:[#allocation259_spill] sm:$0xff] %v7007_v32 }
 0x1f0   : > { %8388 = vst [vmem:[#allocation83_spill] sm:$0xff] %v6421_v46  ;;  %v6423_v50 = vpop.xlane.xlu1 %2328  ;;  %v1883_v46 = vpop.f32.mrb[94].mxu0 }
 0x1f1   : > { %8389 = vst [vmem:[#allocation84_spill] sm:$0xff] %v6423_v50  ;;  %v6438_v55 = vadd.f32 %v1883_v46, %v1530_v0  ;;  %v1885_v53 = vpop.f32.mrb[95].mxu0  ;;  %v2094_v0 = vadd.f32 %v6354_v58, %v6351_v12  ;;  %v2244_v46 = vmul.f32 %v6351_v12, %v6351_v12  ;;  %v2547_v12 = vmul.f32 0.00390625, %v6333_v29 }
 0x1f2   : > { %v6443_v52 = vadd.f32 %v1885_v53, %v1532_v27  ;;  %v2546_v27 = vmul.f32 0.00390625, %v6313_v51 }
 0x1f3   : > { %v6429_v22 = vpop.xlane.xlu0 %2331  ;;  %8396 = vst [vmem:[#allocation91_spill] sm:$0xff] %v6438_v55  ;;  %v2414_v9 = vadd.f32 %v2245_v59, %v2244_v46  ;;  %v2247_v46 = vmul.f32 %v6365_v15, %v6365_v15 }
 0x1f4   : > { %8392 = vst [vmem:[#allocation87_spill] sm:$0xff] %v6429_v22  ;;  %v6431_v21 = vpop.xlane.xlu1 %2014  ;;  %8398 = vst [vmem:[#allocation93_spill] sm:$0xff] %v6443_v52  ;;  %v5207_v22 = vld [vmem:[%s5704_s29 + $0x368] ss:$16 sps:$4 sm:$0xff]  }
 0x1f5   : > { %8393 = vst [vmem:[#allocation88_spill] sm:$0xff] %v6431_v21  ;;  %1918 = vmatmul.mubr.bf16.gmra.mrb[108].mxu0 %v5207_v22  ;;  %v6462_v22 = vmul.f32 0.00390625, %v6315_v14 }
 0x1f7   : > { %v6433_v17 = vpop.xlane.xlu0 %2017  ;;  %v2611_v58 = vmul.f32 %v6462_v22, %v6462_v22 }
 0x1f8   : > { %8394 = vst [vmem:[#allocation89_spill] sm:$0xff] %v6433_v17  ;;  %v6435_v3 = vpop.xlane.xlu1 %2334  ;;  %v2482_v17 = vmul.f32 0.00390625, %v6301_v34 }
 0x1f9   : > { %8395 = vst [vmem:[#allocation90_spill] sm:$0xff] %v6435_v3  ;;  %v2675_v14 = vsub.f32 %v2547_v12, %v2611_v58 }
 0x1fa   : > { %v2610_v42 = vmul.f32 %v2482_v17, %v2482_v17 }
 0x1fb   : > { %v6441_v37 = vpop.xlane.xlu0 %2337 }
 0x1fc   : > { %8397 = vst [vmem:[#allocation92_spill] sm:$0xff] %v6441_v37  ;;  %v6447_v21 = vpop.xlane.xlu1 %2020 }
 0x1fd   : > { %8399 = vst [vmem:[#allocation94_spill] sm:$0xff] %v6447_v21 }
 0x1ff   : > { %v6450_v3 = vpop.xlane.xlu0 %2023 }
 0x200   : > { %8400 = vst [vmem:[#allocation95_spill] sm:$0xff] %v6450_v3  ;;  %v6459_v53 = vpop.xlane.xlu1 %2340  ;;  %v2674_v3 = vsub.f32 %v2546_v27, %v2610_v42 }
 0x201   : > { %8401 = vst [vmem:[#allocation96_spill] sm:$0xff] %v6459_v53 }
 0x202   : > { %v2738_v51 = vmax.f32 %v2674_v3, 0.0  ;;  %v2739_v3 = vmax.f32 %v2675_v14, 0.0 }
 0x203   : > { %v6464_v34 = vpop.xlane.xlu0 %2343  ;;  %2095 = vadd.xlane.f32.xlu0 %v2094_v0  ;;  %v2246_v0 = vmul.f32 %v6360_v48, %v6360_v48 }
 0x204   : > { %8402 = vst [vmem:[#allocation97_spill] sm:$0xff] %v6464_v34  ;;  %v6466_v37 = vpop.xlane.xlu1 %2026  ;;  %v2097_v34 = vadd.f32 %v6365_v15, %v6360_v48  ;;  %v2802_v27 = vadd.f32 1e-05, %v2738_v51 }
 0x205   : > { %8403 = vst [vmem:[#allocation98_spill] sm:$0xff] %v6466_v37  ;;  %v2417_v42 = vadd.f32 %v2247_v46, %v2246_v0  ;;  %v3057_v0 = vld [vmem:[%s6404_s15 + $0x8] sm:$0xff] }
 0x206   : > { %5236 = vrsqrt.f32 %v2802_v27  ;;  %v6697_v37 = vld [vmem:[%s6614_s20 + $0xa8] sm:$0xff] }
 0x207   : > { %v6471_v21 = vpop.xlane.xlu0 %2029  ;;  %2415 = vadd.xlane.f32.xlu0 %v2414_v9  ;;  %v2803_v9 = vadd.f32 1e-05, %v2739_v3  ;;  %v2930_v3 = vld [vmem:[%s6383_s13 + $0x10] sm:$0xff]  ;;  %8463 = vst [vmem:[#allocation158_spill] sm:$0xff] %v6697_v37  ;;  %v6718_v37 = vld [vmem:[%s6614_s20 + $0xe0] sm:$0xff] }
 0x208   : > { %8404 = vst [vmem:[#allocation99_spill] sm:$0xff] %v6471_v21  ;;  %v6473_v53 = vpop.xlane.xlu1 %2346  ;;  %v3058_v21 = vld [vmem:[%s6404_s15 + $0x10] sm:$0xff]  ;;  %8470 = vst [vmem:[#allocation165_spill] sm:$0xff] %v6718_v37  ;;  %v6739_v37 = vld [vmem:[%s6614_s20 + $0x118] sm:$0xff] }
 0x209   : > { %8405 = vst [vmem:[#allocation100_spill] sm:$0xff] %v6473_v53  ;;  %5238 = vrsqrt.f32 %v2803_v9  ;;  %v6694_v53 = vld [vmem:[%s6614_s20 + $0xa0] sm:$0xff]  ;;  %8477 = vst [vmem:[#allocation172_spill] sm:$0xff] %v6739_v37  ;;  %v6760_v37 = vld [vmem:[%s6614_s20 + $0x150] sm:$0xff] }
 0x20a   : > { %8462 = vst [vmem:[#allocation157_spill] sm:$0xff] %v6694_v53  ;;  %v6715_v53 = vld [vmem:[%s6614_s20 + $0xd8] sm:$0xff]  ;;  %8484 = vst [vmem:[#allocation179_spill] sm:$0xff] %v6760_v37 }
 0x20b   : > { %v6481_v29 = vpop.xlane.xlu0 %2349  ;;  %2098 = vadd.xlane.f32.xlu1 %v2097_v34  ;;  %v3121_v34 = vmul.f32 %v6399_v2, %v6295_v47  ;;  %8469 = vst [vmem:[#allocation164_spill] sm:$0xff] %v6715_v53  ;;  %v6736_v53 = vld [vmem:[%s6614_s20 + $0x110] sm:$0xff]  ;;  %v6781_v37 = vld [vmem:[%s6614_s20 + $0x1b8] sm:$0xff] }
 0x20c   : > { %8406 = vst [vmem:[#allocation101_spill] sm:$0xff] %v6481_v29  ;;  %v6483_v59 = vpop.xlane.xlu1 %2032  ;;  %v2931_v29 = vld [vmem:[%s6383_s13 + $0x18] sm:$0xff]  ;;  %8476 = vst [vmem:[#allocation171_spill] sm:$0xff] %v6736_v53  ;;  %v6757_v53 = vld [vmem:[%s6614_s20 + $0x148] sm:$0xff] }
 0x20d   : > { %8407 = vst [vmem:[#allocation102_spill] sm:$0xff] %v6483_v59  ;;  %v3185_v27 = vsub.f32 %v3057_v0, %v3121_v34  ;;  %v6691_v59 = vld [vmem:[%s6614_s20 + $0x98] sm:$0xff]  ;;  %8483 = vst [vmem:[#allocation178_spill] sm:$0xff] %v6757_v53  ;;  %v6778_v53 = vld [vmem:[%s6614_s20 + $0x1b0] sm:$0xff] }
 0x20e   : > { %8461 = vst [vmem:[#allocation156_spill] sm:$0xff] %v6691_v59  ;;  %v6712_v59 = vld [vmem:[%s6614_s20 + $0xd0] sm:$0xff]  ;;  %8490 = vst [vmem:[#allocation185_spill] sm:$0xff] %v6778_v53  ;;  %v6799_v53 = vld [vmem:[%s6614_s20 + $0x1f8] sm:$0xff] }
 0x20f   : > { %v6485_v12 = vpop.xlane.xlu0 %2035  ;;  %2418 = vadd.xlane.f32.xlu1 %v2417_v42  ;;  %8468 = vst [vmem:[#allocation163_spill] sm:$0xff] %v6712_v59  ;;  %v6733_v59 = vld [vmem:[%s6614_s20 + $0x108] sm:$0xff]  ;;  %8491 = vst [vmem:[#allocation186_spill] sm:$0xff] %v6781_v37  ;;  %v6802_v37 = vld [vmem:[%s6614_s20 + $0x180] sm:$0xff] }
 0x210   : > { %8408 = vst [vmem:[#allocation103_spill] sm:$0xff] %v6485_v12  ;;  %v6487_v58 = vpop.xlane.xlu1 %2352  ;;  %v5237_v46 = vpop.eup %5236  ;;  %8475 = vst [vmem:[#allocation170_spill] sm:$0xff] %v6733_v59  ;;  %v6754_v59 = vld [vmem:[%s6614_s20 + $0x140] sm:$0xff] }
 0x211   : > { %8409 = vst [vmem:[#allocation104_spill] sm:$0xff] %v6487_v58  ;;  %v6688_v58 = vld [vmem:[%s6614_s20 + $0x90] sm:$0xff]  ;;  %8482 = vst [vmem:[#allocation177_spill] sm:$0xff] %v6754_v59  ;;  %v6775_v59 = vld [vmem:[%s6614_s20 + $0x198] sm:$0xff] }
 0x212   : > { %8460 = vst [vmem:[#allocation155_spill] sm:$0xff] %v6688_v58  ;;  %v6709_v58 = vld [vmem:[%s6614_s20 + $0xc8] sm:$0xff]  ;;  %8489 = vst [vmem:[#allocation184_spill] sm:$0xff] %v6775_v59  ;;  %v6796_v59 = vld [vmem:[%s6614_s20 + $0x1f0] sm:$0xff] }
 0x213   : > { %v6489_v48 = vpop.xlane.xlu0 %2355  ;;  %8467 = vst [vmem:[#allocation162_spill] sm:$0xff] %v6709_v58  ;;  %v6730_v58 = vld [vmem:[%s6614_s20 + $0x100] sm:$0xff]  ;;  %8496 = vst [vmem:[#allocation191_spill] sm:$0xff] %v6796_v59  ;;  %v6817_v59 = vld [vmem:[%s6614_s20 + $0x1a8] sm:$0xff] }
 0x214   : > { %8410 = vst [vmem:[#allocation105_spill] sm:$0xff] %v6489_v48  ;;  %v6491_v15 = vpop.xlane.xlu1 %2038  ;;  %v2994_v48 = vmul.f32 %v5237_v46, %v2930_v3  ;;  %8474 = vst [vmem:[#allocation169_spill] sm:$0xff] %v6730_v58  ;;  %v6751_v58 = vld [vmem:[%s6614_s20 + $0x138] sm:$0xff] }
 0x215   : > { %8411 = vst [vmem:[#allocation106_spill] sm:$0xff] %v6491_v15  ;;  %v5239_v15 = vpop.eup %5238  ;;  %8481 = vst [vmem:[#allocation176_spill] sm:$0xff] %v6751_v58  ;;  %v6772_v58 = vld [vmem:[%s6614_s20 + $0x190] sm:$0xff] }
 0x216   : > { %v6510_v47 = vmul.f32 %v5239_v15, %v2931_v29  ;;  %8488 = vst [vmem:[#allocation183_spill] sm:$0xff] %v6772_v58  ;;  %v6793_v58 = vld [vmem:[%s6614_s20 + $0x168] sm:$0xff]  ;;  %8497 = vst [vmem:[#allocation192_spill] sm:$0xff] %v6799_v53  ;;  %v6820_v53 = vld [vmem:[%s6614_s20 + $0x230] sm:$0xff] }
 0x217   : > { %v6495_v51 = vpop.xlane.xlu0 %2041  ;;  %8495 = vst [vmem:[#allocation190_spill] sm:$0xff] %v6793_v58  ;;  %8498 = vst [vmem:[#allocation193_spill] sm:$0xff] %v6802_v37  ;;  %v6814_v58 = vld [vmem:[%s6614_s20 + $0x1a0] sm:$0xff]  ;;  %v6823_v37 = vld [vmem:[%s6614_s20 + $0x238] sm:$0xff] }
 0x218   : > { %8412 = vst [vmem:[#allocation107_spill] sm:$0xff] %v6495_v51  ;;  %v6497_v14 = vpop.xlane.xlu1 %2358  ;;  %v3122_v51 = vmul.f32 %v2994_v48, %v2482_v17  ;;  %8502 = vst [vmem:[#allocation197_spill] sm:$0xff] %v6814_v58  ;;  %v6835_v58 = vld [vmem:[%s6614_s20 + $0x258] sm:$0xff] }
 0x219   : > { %8413 = vst [vmem:[#allocation108_spill] sm:$0xff] %v6497_v14  ;;  %8503 = vst [vmem:[#allocation198_spill] sm:$0xff] %v6817_v59  ;;  %v6838_v59 = vld [vmem:[%s6614_s20 + $0x1e0] sm:$0xff] }
 0x21a   : > { %v3186_v34 = vsub.f32 %v3058_v21, %v3122_v51  ;;  %v1536_v3 = vpop.f32.mrb[96].mxu1  ;;  %8504 = vst [vmem:[#allocation199_spill] sm:$0xff] %v6820_v53  ;;  %8505 = vst [vmem:[#allocation200_spill] sm:$0xff] %v6823_v37  ;;  %v6841_v53 = vld [vmem:[%s6614_s20 + $0x1e8] sm:$0xff]  ;;  %v6844_v37 = vld [vmem:[%s6614_s20 + $0x270] sm:$0xff] }
 0x21b   : > { %v6500_v42 = vpop.xlane.xlu0 %2361  ;;  %8509 = vst [vmem:[#allocation204_spill] sm:$0xff] %v6835_v58  ;;  %8510 = vst [vmem:[#allocation205_spill] sm:$0xff] %v6838_v59  ;;  %v6856_v58 = vld [vmem:[%s6614_s20 + $0x290] sm:$0xff]  ;;  %v6859_v59 = vld [vmem:[%s6614_s20 + $0x298] sm:$0xff] }
 0x21c   : > { %8414 = vst [vmem:[#allocation109_spill] sm:$0xff] %v6500_v42  ;;  %v6503_v12 = vpop.xlane.xlu1 %2044  ;;  %8511 = vst [vmem:[#allocation206_spill] sm:$0xff] %v6841_v53  ;;  %v6862_v53 = vld [vmem:[%s6614_s20 + $0x220] sm:$0xff] }
 0x21d   : > { %8415 = vst [vmem:[#allocation110_spill] sm:$0xff] %v6503_v12  ;;  %3959 = vperm.xlu0 %5038, %v3185_v27   ;;  %v1889_v27 = vpop.f32.mrb[96].mxu0  ;;  %8512 = vst [vmem:[#allocation207_spill] sm:$0xff] %v6844_v37  ;;  %v6865_v37 = vld [vmem:[%s6614_s20 + $0x228] sm:$0xff] }
 0x21e   : > { %v6524_v17 = vadd.f32 %v1889_v27, %v1536_v3  ;;  %v5210_v27 = vld [vmem:[%s5704_s29 + $0x38c] ss:$16 sps:$4 sm:$0xff]   ;;  %8516 = vst [vmem:[#allocation211_spill] sm:$0xff] %v6856_v58  ;;  %8517 = vst [vmem:[#allocation212_spill] sm:$0xff] %v6859_v59  ;;  %v6880_v59 = vld [vmem:[%s6614_s20 + $0x2d0] sm:$0xff] }
 0x21f   : > { %v6505_v9 = vpop.xlane.xlu0 %2047  ;;  %1927 = vmatprep.mubr.bf16.mxu0 %v5210_v27  ;;  %8518 = vst [vmem:[#allocation213_spill] sm:$0xff] %v6862_v53  ;;  %8519 = vst [vmem:[#allocation214_spill] sm:$0xff] %v6865_v37  ;;  %v6877_v58 = vld [vmem:[%s6614_s20 + $0x248] sm:$0xff]  ;;  %v6883_v53 = vld [vmem:[%s6614_s20 + $0x2d8] sm:$0xff] }
 0x220   : > { %8416 = vst [vmem:[#allocation111_spill] sm:$0xff] %v6505_v9  ;;  %v6508_v2 = vpop.xlane.xlu1 %2364  ;;  %3388 = vperm.xlu1 %5039, %v2994_v48   ;;  %8423 = vst [vmem:[#allocation118_spill] sm:$0xff] %v6524_v17  ;;  %v1538_v48 = vpop.f32.mrb[97].mxu1  ;;  %v6886_v37 = vld [vmem:[%s6614_s20 + $0x260] sm:$0xff] }
 0x221   : > { %8417 = vst [vmem:[#allocation112_spill] sm:$0xff] %v6508_v2  ;;  %8523 = vst [vmem:[#allocation218_spill] sm:$0xff] %v6877_v58  ;;  %v6898_v58 = vld [vmem:[%s6614_s20 + $0x280] sm:$0xff] }
 0x222   : > { %8524 = vst [vmem:[#allocation219_spill] sm:$0xff] %v6880_v59  ;;  %8525 = vst [vmem:[#allocation220_spill] sm:$0xff] %v6883_v53  ;;  %v6901_v59 = vld [vmem:[%s6614_s20 + $0x288] sm:$0xff]  ;;  %v6904_v53 = vld [vmem:[%s6614_s20 + $0x310] sm:$0xff] }
 0x223   : > { %v6512_v14 = vpop.xlane.xlu0 %2367  ;;  %8526 = vst [vmem:[#allocation221_spill] sm:$0xff] %v6886_v37  ;;  %8530 = vst [vmem:[#allocation225_spill] sm:$0xff] %v6898_v58  ;;  %v6907_v37 = vld [vmem:[%s6614_s20 + $0x318] sm:$0xff] }
 0x224   : > { %8418 = vst [vmem:[#allocation113_spill] sm:$0xff] %v6512_v14  ;;  %v6515_v42 = vpop.xlane.xlu1 %2050  ;;  %3393 = vperm.xlu1 %5039, %v6510_v47   ;;  %v1891_v14 = vpop.f32.mrb[97].mxu0  ;;  %8531 = vst [vmem:[#allocation226_spill] sm:$0xff] %v6901_v59  ;;  %v6919_v58 = vld [vmem:[%s6614_s20 + $0x338] sm:$0xff]  ;;  %v6922_v59 = vld [vmem:[%s6614_s20 + $0x2c0] sm:$0xff] }
 0x225   : > { %8419 = vst [vmem:[#allocation114_spill] sm:$0xff] %v6515_v42  ;;  %v6528_v9 = vadd.f32 %v1891_v14, %v1538_v48  ;;  %8532 = vst [vmem:[#allocation227_spill] sm:$0xff] %v6904_v53  ;;  %v6925_v53 = vld [vmem:[%s6614_s20 + $0x2c8] sm:$0xff] }
 0x226   : > { %8533 = vst [vmem:[#allocation228_spill] sm:$0xff] %v6907_v37  ;;  %8537 = vst [vmem:[#allocation232_spill] sm:$0xff] %v6919_v58  ;;  %v6928_v37 = vld [vmem:[%s6614_s20 + $0x350] sm:$0xff] }
 0x227   : > { %v6518_v0 = vpop.xlane.xlu0 %2053  ;;  %8425 = vst [vmem:[#allocation120_spill] sm:$0xff] %v6528_v9  ;;  %8538 = vst [vmem:[#allocation233_spill] sm:$0xff] %v6922_v59  ;;  %v6940_v58 = vld [vmem:[%s6614_s20 + $0x370] sm:$0xff]  ;;  %v6943_v59 = vld [vmem:[%s6614_s20 + $0x378] sm:$0xff] }
 0x228   : > { %8420 = vst [vmem:[#allocation115_spill] sm:$0xff] %v6518_v0  ;;  %v6520_v46 = vpop.xlane.xlu1 %2370  ;;  %3964 = vperm.xlu1 %5039, %v3186_v34   ;;  %v1540_v0 = vpop.f32.mrb[98].mxu1  ;;  %v5208_v34 = vld [vmem:[%s5704_s29 + $0x384] ss:$16 sps:$4 sm:$0xff]   ;;  %8539 = vst [vmem:[#allocation234_spill] sm:$0xff] %v6925_v53 }
 0x229   : > { %8421 = vst [vmem:[#allocation116_spill] sm:$0xff] %v6520_v46  ;;  %v1893_v46 = vpop.f32.mrb[98].mxu0  ;;  %1574 = vmatprep.mubr.bf16.mxu1 %v5208_v34  ;;  %8540 = vst [vmem:[#allocation235_spill] sm:$0xff] %v6928_v37  ;;  %v6946_v53 = vld [vmem:[%s6614_s20 + $0x300] sm:$0xff]  ;;  %v6949_v37 = vld [vmem:[%s6614_s20 + $0x308] sm:$0xff] }
 0x22a   : > { %v6537_v2 = vadd.f32 %v1893_v46, %v1540_v0  ;;  %v1895_v12 = vpop.f32.mrb[99].mxu0  ;;  %v2248_v0 = vmul.f32 %v6372_v62, %v6372_v62  ;;  %v2249_v46 = vmul.f32 %v6374_v26, %v6374_v26  ;;  %8544 = vst [vmem:[#allocation239_spill] sm:$0xff] %v6940_v58  ;;  %8545 = vst [vmem:[#allocation240_spill] sm:$0xff] %v6943_v59  ;;  %v6967_v58 = vld [vmem:[%s6614_s20 + $0x3b8] sm:$0xff]  ;;  %v6970_v59 = vld [vmem:[%s6614_s20 + $0x340] sm:$0xff] }
 0x22b   : > { %v6522_v15 = vpop.xlane.xlu0 %2373  ;;  %8546 = vst [vmem:[#allocation241_spill] sm:$0xff] %v6946_v53  ;;  %8547 = vst [vmem:[#allocation242_spill] sm:$0xff] %v6949_v37  ;;  %v6973_v53 = vld [vmem:[%s6614_s20 + $0x348] sm:$0xff]  ;;  %v6976_v37 = vld [vmem:[%s6614_s20 + $0x3d0] sm:$0xff] }
 0x22c   : > { %8422 = vst [vmem:[#allocation117_spill] sm:$0xff] %v6522_v15  ;;  %v6526_v29 = vpop.xlane.xlu1 %2056  ;;  %8429 = vst [vmem:[#allocation124_spill] sm:$0xff] %v6537_v2  ;;  %v1542_v15 = vpop.f32.mrb[99].mxu1 }
 0x22d   : > { %8424 = vst [vmem:[#allocation119_spill] sm:$0xff] %v6526_v29  ;;  %v6542_v29 = vadd.f32 %v1895_v12, %v1542_v15  ;;  %v2420_v12 = vadd.f32 %v2249_v46, %v2248_v0  ;;  %v2484_v15 = vmul.f32 0.00390625, %v6329_v39  ;;  %8553 = vst [vmem:[#allocation248_spill] sm:$0xff] %v6967_v58  ;;  %v6991_v58 = vld [vmem:[%s6614_s20 + $0x388] sm:$0xff] }
 0x22e   : > { %8554 = vst [vmem:[#allocation249_spill] sm:$0xff] %v6970_v59  ;;  %8555 = vst [vmem:[#allocation250_spill] sm:$0xff] %v6973_v53  ;;  %v6994_v59 = vld [vmem:[%s6614_s20 + $0x3a0] sm:$0xff]  ;;  %v6997_v53 = vld [vmem:[%s6614_s20 + $0x3a8] sm:$0xff] }
 0x22f   : > { %v6530_v21 = vpop.xlane.xlu0 %2059  ;;  %8431 = vst [vmem:[#allocation126_spill] sm:$0xff] %v6542_v29  ;;  %8556 = vst [vmem:[#allocation251_spill] sm:$0xff] %v6976_v37 }
 0x230   : > { %8426 = vst [vmem:[#allocation121_spill] sm:$0xff] %v6530_v21  ;;  %v6532_v51 = vpop.xlane.xlu1 %2376  ;;  %v2100_v21 = vadd.f32 %v6374_v26, %v6372_v62  ;;  %v2548_v62 = vmul.f32 0.00390625, %v6341_v49  ;;  %v6565_v26 = vmul.f32 0.00390625, %v6343_v1  ;;  %v2250_v1 = vmul.f32 %v6386_v20, %v6386_v20  ;;  %8561 = vst [vmem:[#allocation256_spill] sm:$0xff] %v6991_v58  ;;  %v7010_v58 = vld [vmem:[%s6614_s20 + $0x3f8] sm:$0xff] }
 0x231   : > { %8427 = vst [vmem:[#allocation122_spill] sm:$0xff] %v6532_v51  ;;  %v6685_v51 = vld [vmem:[%s6614_s20 + $0x88] sm:$0xff]  ;;  %8562 = vst [vmem:[#allocation257_spill] sm:$0xff] %v6994_v59  ;;  %v7013_v59 = vld [vmem:[%s6614_s20 + $0x3c0] sm:$0xff] }
 0x232   : > { %v2613_v39 = vmul.f32 %v6565_v26, %v6565_v26  ;;  %8459 = vst [vmem:[#allocation154_spill] sm:$0xff] %v6685_v51  ;;  %v6706_v51 = vld [vmem:[%s6614_s20 + $0xc0] sm:$0xff]  ;;  %8563 = vst [vmem:[#allocation258_spill] sm:$0xff] %v6997_v53 }
 0x233   : > { %v6535_v42 = vpop.xlane.xlu0 %2379  ;;  %8466 = vst [vmem:[#allocation161_spill] sm:$0xff] %v6706_v51  ;;  %v6727_v51 = vld [vmem:[%s6614_s20 + $0xf8] sm:$0xff]  ;;  %8566 = vst [vmem:[#allocation260_spill] sm:$0xff] %v7010_v58  ;;  %v3250_v58 = vld [vmem:[%s6614_s20 + $0x10] sm:$0xff] }
 0x234   : > { %8428 = vst [vmem:[#allocation123_spill] sm:$0xff] %v6535_v42  ;;  %v6540_v3 = vpop.xlane.xlu1 %2062  ;;  %8473 = vst [vmem:[#allocation168_spill] sm:$0xff] %v6727_v51  ;;  %v6748_v51 = vld [vmem:[%s6614_s20 + $0x130] sm:$0xff] }
 0x235   : > { %8430 = vst [vmem:[#allocation125_spill] sm:$0xff] %v6540_v3  ;;  %8480 = vst [vmem:[#allocation175_spill] sm:$0xff] %v6748_v51  ;;  %v6769_v51 = vld [vmem:[%s6614_s20 + $0x178] sm:$0xff] }
 0x236   : > { %8487 = vst [vmem:[#allocation182_spill] sm:$0xff] %v6769_v51  ;;  %v6790_v51 = vld [vmem:[%s6614_s20 + $0x160] sm:$0xff]  ;;  %8567 = vst [vmem:[#allocation261_spill] sm:$0xff] %v7013_v59  ;;  %v3251_v59 = vld [vmem:[%s6614_s20 + $0x18] sm:$0xff] }
 0x237   : > { %v6544_v14 = vpop.xlane.xlu0 %2065  ;;  %8494 = vst [vmem:[#allocation189_spill] sm:$0xff] %v6790_v51  ;;  %v6811_v51 = vld [vmem:[%s6614_s20 + $0x218] sm:$0xff] }
 0x238   : > { %8432 = vst [vmem:[#allocation127_spill] sm:$0xff] %v6544_v14  ;;  %v6546_v48 = vpop.xlane.xlu1 %2382  ;;  %v2612_v14 = vmul.f32 %v2484_v15, %v2484_v15  ;;  %8501 = vst [vmem:[#allocation196_spill] sm:$0xff] %v6811_v51  ;;  %v6832_v51 = vld [vmem:[%s6614_s20 + $0x250] sm:$0xff] }
 0x239   : > { %8433 = vst [vmem:[#allocation128_spill] sm:$0xff] %v6546_v48  ;;  %8508 = vst [vmem:[#allocation203_spill] sm:$0xff] %v6832_v51  ;;  %v6853_v51 = vld [vmem:[%s6614_s20 + $0x208] sm:$0xff] }
 0x23a   : > { %v2676_v0 = vsub.f32 %v2548_v62, %v2612_v14  ;;  %v2103_v62 = vadd.f32 %v6388_v25, %v6386_v20  ;;  %v3248_v20 = vld [vmem:[%s6614_s20] sm:$0xff]  ;;  %8515 = vst [vmem:[#allocation210_spill] sm:$0xff] %v6853_v51 }
 0x23b   : > { %v6554_v42 = vpop.xlane.xlu0 %2385  ;;  %v6874_v51 = vld [vmem:[%s6614_s20 + $0x240] sm:$0xff] }
 0x23c   : > { %8434 = vst [vmem:[#allocation129_spill] sm:$0xff] %v6554_v42  ;;  %v6556_v3 = vpop.xlane.xlu1 %2068  ;;  %2101 = vadd.xlane.f32.xlu0 %v2100_v21  ;;  %v2549_v21 = vmul.f32 0.00390625, %v6363_v44  ;;  %v2740_v48 = vmax.f32 %v2676_v0, 0.0  ;;  %8522 = vst [vmem:[#allocation217_spill] sm:$0xff] %v6874_v51  ;;  %v6895_v51 = vld [vmem:[%s6614_s20 + $0x2f8] sm:$0xff] }
 0x23d   : > { %8435 = vst [vmem:[#allocation130_spill] sm:$0xff] %v6556_v3  ;;  %8529 = vst [vmem:[#allocation224_spill] sm:$0xff] %v6895_v51  ;;  %v6916_v51 = vld [vmem:[%s6614_s20 + $0x330] sm:$0xff] }
 0x23e   : > { %v2677_v49 = vsub.f32 %v2549_v21, %v2613_v39  ;;  %8536 = vst [vmem:[#allocation231_spill] sm:$0xff] %v6916_v51  ;;  %v6937_v51 = vld [vmem:[%s6614_s20 + $0x2e8] sm:$0xff] }
 0x23f   : > { %v6559_v34 = vpop.xlane.xlu0 %2071  ;;  %8543 = vst [vmem:[#allocation238_spill] sm:$0xff] %v6937_v51  ;;  %v6961_v51 = vld [vmem:[%s6614_s20 + $0x328] sm:$0xff] }
 0x240   : > { %8436 = vst [vmem:[#allocation131_spill] sm:$0xff] %v6559_v34  ;;  %v6561_v27 = vpop.xlane.xlu1 %2388  ;;  %2421 = vadd.xlane.f32.xlu0 %v2420_v12  ;;  %v5212_v12 = vld [vmem:[%s5704_s29 + $0x380] ss:$16 sps:$4 sm:$0xff]   ;;  %v2741_v21 = vmax.f32 %v2677_v49, 0.0  ;;  %8551 = vst [vmem:[#allocation246_spill] sm:$0xff] %v6961_v51  ;;  %v6985_v51 = vld [vmem:[%s6614_s20 + $0x368] sm:$0xff] }
 0x241   : > { %8437 = vst [vmem:[#allocation132_spill] sm:$0xff] %v6561_v27  ;;  %v5213_v27 = vld [vmem:[%s5704_s29 + $0x388] ss:$16 sps:$4 sm:$0xff]   ;;  %1575 = vmatmul.mubr.bf16.gmra.mrb[112].mxu1 %v5212_v12  ;;  %8559 = vst [vmem:[#allocation254_spill] sm:$0xff] %v6985_v51 }
 0x242   : > { %1928 = vmatmul.mubr.bf16.gmra.mrb[112].mxu0 %v5213_v27  ;;  %v2805_v27 = vadd.f32 1e-05, %v2741_v21  ;;  %1584 = vmatprep.mubr.bf16.mxu1 %v5214_v45 }
 0x243   : > { %v6567_v42 = vpop.xlane.xlu0 %2391 }
 0x244   : > { %8438 = vst [vmem:[#allocation133_spill] sm:$0xff] %v6567_v42  ;;  %v6569_v3 = vpop.xlane.xlu1 %2074  ;;  %v2251_v42 = vmul.f32 %v6388_v25, %v6388_v25  ;;  %v3059_v25 = vld [vmem:[%s6404_s15 + $0x18] sm:$0xff] }
 0x245   : > { %8439 = vst [vmem:[#allocation134_spill] sm:$0xff] %v6569_v3  ;;  %v3123_v3 = vmul.f32 %v6510_v47, %v6462_v22  ;;  %v2932_v22 = vld [vmem:[%s6383_s13 + $0x20] sm:$0xff] }
 0x246   : > { %v2423_v0 = vadd.f32 %v2251_v42, %v2250_v1 }
 0x247   : > { %v6574_v46 = vpop.xlane.xlu0 %2077 }
 0x248   : > { %8440 = vst [vmem:[#allocation135_spill] sm:$0xff] %v6574_v46  ;;  %v6576_v34 = vpop.xlane.xlu1 %2394  ;;  %v2804_v46 = vadd.f32 1e-05, %v2740_v48  ;;  %v3187_v48 = vsub.f32 %v3059_v25, %v3123_v3  ;;  %v2933_v3 = vld [vmem:[%s6383_s13 + $0x28] sm:$0xff] }
 0x249   : > { %8441 = vst [vmem:[#allocation136_spill] sm:$0xff] %v6576_v34 }
 0x24a   : > { %5240 = vrsqrt.f32 %v2804_v46 }
 0x24b   : > { %v6586_v44 = vpop.xlane.xlu0 %2397  ;;  %5242 = vrsqrt.f32 %v2805_v27 }
 0x24c   : > { %8442 = vst [vmem:[#allocation137_spill] sm:$0xff] %v6586_v44  ;;  %v6588_v14 = vpop.xlane.xlu1 %2080  ;;  %2104 = vadd.xlane.f32.xlu1 %v2103_v62  ;;  %v6658_v44 = vld [vmem:[%s6614_s20 + $0x40] sm:$0xff] }
 0x24d   : > { %8443 = vst [vmem:[#allocation138_spill] sm:$0xff] %v6588_v14  ;;  %v6682_v14 = vld [vmem:[%s6614_s20 + $0x80] sm:$0xff] }
 0x24e   : > { %8458 = vst [vmem:[#allocation153_spill] sm:$0xff] %v6682_v14  ;;  %v6703_v14 = vld [vmem:[%s6614_s20 + $0xb8] sm:$0xff] }
 0x24f   : > { %v6590_v39 = vpop.xlane.xlu0 %2083  ;;  %8465 = vst [vmem:[#allocation160_spill] sm:$0xff] %v6703_v14  ;;  %v6724_v14 = vld [vmem:[%s6614_s20 + $0xf0] sm:$0xff] }
 0x250   : > { %8444 = vst [vmem:[#allocation139_spill] sm:$0xff] %v6590_v39  ;;  %v6592_v34 = vpop.xlane.xlu1 %2400  ;;  %2424 = vadd.xlane.f32.xlu1 %v2423_v0  ;;  %v6630_v39 = vld [vmem:[%s6404_s15 + $0x20] sm:$0xff]  ;;  %8472 = vst [vmem:[#allocation167_spill] sm:$0xff] %v6724_v14  ;;  %v6745_v14 = vld [vmem:[%s6614_s20 + $0x128] sm:$0xff] }
 0x251   : > { %8445 = vst [vmem:[#allocation140_spill] sm:$0xff] %v6592_v34  ;;  %v6679_v34 = vld [vmem:[%s6614_s20 + $0x78] sm:$0xff]  ;;  %8479 = vst [vmem:[#allocation174_spill] sm:$0xff] %v6745_v14  ;;  %v6766_v14 = vld [vmem:[%s6614_s20 + $0x170] sm:$0xff] }
 0x252   : > { %8457 = vst [vmem:[#allocation152_spill] sm:$0xff] %v6679_v34  ;;  %v6700_v34 = vld [vmem:[%s6614_s20 + $0xb0] sm:$0xff]  ;;  %8486 = vst [vmem:[#allocation181_spill] sm:$0xff] %v6766_v14  ;;  %v6787_v14 = vld [vmem:[%s6614_s20 + $0x1d8] sm:$0xff] }
 0x253   : > { %v6597_v12 = vpop.xlane.xlu0 %2403  ;;  %8464 = vst [vmem:[#allocation159_spill] sm:$0xff] %v6700_v34  ;;  %v6721_v34 = vld [vmem:[%s6614_s20 + $0xe8] sm:$0xff]  ;;  %8493 = vst [vmem:[#allocation188_spill] sm:$0xff] %v6787_v14  ;;  %v6808_v14 = vld [vmem:[%s6614_s20 + $0x210] sm:$0xff] }
 0x254   : > { %8446 = vst [vmem:[#allocation141_spill] sm:$0xff] %v6597_v12  ;;  %v6599_v62 = vpop.xlane.xlu1 %2086  ;;  %v5241_v1 = vpop.eup %5240  ;;  %8471 = vst [vmem:[#allocation166_spill] sm:$0xff] %v6721_v34  ;;  %v6742_v34 = vld [vmem:[%s6614_s20 + $0x120] sm:$0xff] }
 0x255   : > { %8447 = vst [vmem:[#allocation142_spill] sm:$0xff] %v6599_v62  ;;  %v2996_v46 = vmul.f32 %v5241_v1, %v2932_v22  ;;  %v5243_v21 = vpop.eup %5242  ;;  %v3249_v1 = vld [vmem:[%s6614_s20 + $0x8] sm:$0xff]  ;;  %v6670_v62 = vld [vmem:[%s6614_s20 + $0x60] sm:$0xff]  ;;  %8478 = vst [vmem:[#allocation173_spill] sm:$0xff] %v6742_v34 }
 0x256   : > { %3969 = vperm.xlu0 %5038, %v3187_v48   ;;  %v6619_v48 = vmul.f32 %v5243_v21, %v2933_v3  ;;  %8454 = vst [vmem:[#allocation149_spill] sm:$0xff] %v6670_v62  ;;  %v6763_v34 = vld [vmem:[%s6614_s20 + $0x158] sm:$0xff]  ;;  %8500 = vst [vmem:[#allocation195_spill] sm:$0xff] %v6808_v14  ;;  %v6829_v14 = vld [vmem:[%s6614_s20 + $0x1c8] sm:$0xff] }
 0x257   : > { %v6603_v49 = vpop.xlane.xlu0 %2089  ;;  %v6623_v22 = vmul.f32 %v2996_v46, %v2484_v15  ;;  %8485 = vst [vmem:[#allocation180_spill] sm:$0xff] %v6763_v34  ;;  %v6784_v34 = vld [vmem:[%s6614_s20 + $0x1d0] sm:$0xff]  ;;  %8507 = vst [vmem:[#allocation202_spill] sm:$0xff] %v6829_v14  ;;  %v6850_v14 = vld [vmem:[%s6614_s20 + $0x200] sm:$0xff] }
 0x258   : > { %v6601_v42 = vpop.xlane.xlu1 %2406  ;;  %8449 = vst [vmem:[#allocation144_spill] sm:$0xff] %v6603_v49  ;;  %8492 = vst [vmem:[#allocation187_spill] sm:$0xff] %v6784_v34  ;;  %v6805_v34 = vld [vmem:[%s6614_s20 + $0x188] sm:$0xff]  ;;  %v5218_v62 = vld [vmem:[%s5704_s29 + $0x3a0] ss:$16 sps:$4 sm:$0xff]  }
 0x259   : > { %8448 = vst [vmem:[#allocation143_spill] sm:$0xff] %v6601_v42  ;;  %v6667_v42 = vld [vmem:[%s6614_s20 + $0x58] sm:$0xff]  ;;  %8499 = vst [vmem:[#allocation194_spill] sm:$0xff] %v6805_v34  ;;  %v6826_v34 = vld [vmem:[%s6614_s20 + $0x1c0] sm:$0xff]  ;;  %v8564_v51 = vsub.f32 %v6630_v39, %v6623_v22  ;;  %1585 = vmatmul.mubr.bf16.gmra.mrb[116].mxu1 %v5218_v62 }
 0x25a   : > { %8506 = vst [vmem:[#allocation201_spill] sm:$0xff] %v6826_v34  ;;  %v6847_v34 = vld [vmem:[%s6614_s20 + $0x278] sm:$0xff]  ;;  %8514 = vst [vmem:[#allocation209_spill] sm:$0xff] %v6850_v14  ;;  %v7031_v39 = vld [vmem:[%s6614_s20 + $0x3e8] sm:$0xff] }
 0x25b   : > { %v6608_v47 = vpop.xlane.xlu0 %2409  ;;  %8513 = vst [vmem:[#allocation208_spill] sm:$0xff] %v6847_v34  ;;  %v6868_v34 = vld [vmem:[%s6614_s20 + $0x2b0] sm:$0xff]  ;;  %v6871_v14 = vld [vmem:[%s6614_s20 + $0x2b8] sm:$0xff]  ;;  %8571 = vst [vmem:[#allocation265_spill] sm:$0xff] %v7031_v39  ;;  %v2550_v39 = vmul.f32 0.00390625, %v6367_v7  ;;  %v3125_v7 = vmul.f32 %v6619_v48, %v6565_v26 }
 0x25c   : > { %v6605_v0 = vpop.xlane.xlu1 %2092  ;;  %8451 = vst [vmem:[#allocation146_spill] sm:$0xff] %v6608_v47  ;;  %8520 = vst [vmem:[#allocation215_spill] sm:$0xff] %v6868_v34  ;;  %v6889_v34 = vld [vmem:[%s6614_s20 + $0x268] sm:$0xff] }
 0x25d   : > { %8450 = vst [vmem:[#allocation145_spill] sm:$0xff] %v6605_v0  ;;  %v6664_v0 = vld [vmem:[%s6614_s20 + $0x50] sm:$0xff]  ;;  %8521 = vst [vmem:[#allocation216_spill] sm:$0xff] %v6871_v14 }
 0x25e   : > { %8527 = vst [vmem:[#allocation222_spill] sm:$0xff] %v6889_v34  ;;  %v6892_v14 = vld [vmem:[%s6614_s20 + $0x2f0] sm:$0xff]  ;;  %v6910_v34 = vld [vmem:[%s6614_s20 + $0x2a0] sm:$0xff] }
 0x25f   : > { %8528 = vst [vmem:[#allocation223_spill] sm:$0xff] %v6892_v14  ;;  %8534 = vst [vmem:[#allocation229_spill] sm:$0xff] %v6910_v34  ;;  %v6913_v14 = vld [vmem:[%s6614_s20 + $0x2a8] sm:$0xff]  ;;  %v6931_v34 = vld [vmem:[%s6614_s20 + $0x358] sm:$0xff] }
 0x260   : > { %v6616_v25 = vpop.xlane.xlu1 %2412  ;;  %8535 = vst [vmem:[#allocation230_spill] sm:$0xff] %v6913_v14  ;;  %8541 = vst [vmem:[#allocation236_spill] sm:$0xff] %v6931_v34  ;;  %v6934_v14 = vld [vmem:[%s6614_s20 + $0x2e0] sm:$0xff]  ;;  %v6952_v34 = vld [vmem:[%s6614_s20 + $0x390] sm:$0xff] }
 0x261   : > { %8452 = vst [vmem:[#allocation147_spill] sm:$0xff] %v6616_v25  ;;  %3398 = vperm.xlu1 %5039, %v2996_v46   ;;  %v6661_v25 = vld [vmem:[%s6614_s20 + $0x48] sm:$0xff]  ;;  %8542 = vst [vmem:[#allocation237_spill] sm:$0xff] %v6934_v14  ;;  %v6958_v14 = vld [vmem:[%s6614_s20 + $0x320] sm:$0xff] }
 0x262   : > { %8548 = vst [vmem:[#allocation243_spill] sm:$0xff] %v6952_v34  ;;  %8550 = vst [vmem:[#allocation245_spill] sm:$0xff] %v6958_v14  ;;  %v6979_v34 = vld [vmem:[%s6614_s20 + $0x3d8] sm:$0xff]  ;;  %v6982_v14 = vld [vmem:[%s6614_s20 + $0x360] sm:$0xff] }
 0x263   : > { %v3379_v27 = vpop.permute.xlu0 %3378  ;;  %v1546_v15 = vpop.f32.mrb[100].mxu1  ;;  %8557 = vst [vmem:[#allocation252_spill] sm:$0xff] %v6979_v34  ;;  %8558 = vst [vmem:[#allocation253_spill] sm:$0xff] %v6982_v14 }
 0x264   : > { %v3696_v47 = vmul.f32 %v3379_v27, %v5901_v35  ;;  %v3697_v49 = vmul.f32 %v3379_v27, %v5903_v38  ;;  %v6627_v12 = vpop.permute.xlu1 %3383  ;;  %v1899_v38 = vpop.f32.mrb[100].mxu0  ;;  %v6642_v27 = vld [vmem:[%s6614_s20 + $0x20] sm:$0xff] }
 0x265   : > { %3403 = vperm.xlu1 %5039, %v6619_v48   ;;  %v6655_v35 = vpop.f32.mrb[101].mxu1  ;;  %v1901_v37 = vpop.f32.mrb[101].mxu0  ;;  %v3698_v48 = vmul.f32 %v6627_v12, %v5905_v41 }
 0x266   : > { %v6633_v21 = vadd.f32 %v3696_v47, %v3248_v20  ;;  %v6635_v3 = vadd.f32 %v3697_v49, %v3249_v1  ;;  %v6645_v20 = vld [vmem:[%s6614_s20 + $0x28] sm:$0xff]  ;;  %v6648_v49 = vld [vmem:[%s6614_s20 + $0x30] sm:$0xff]  ;;  %v6651_v47 = vld [vmem:[%s6614_s20 + $0x38] sm:$0xff]  ;;  %v6653_v1 = vadd.f32 %v1899_v38, %v1546_v15  ;;  %v1550_v32 = vpop.f32.mrb[102].mxu1  ;;  %v1903_v53 = vpop.f32.mrb[102].mxu0 }
 0x267   : > { %v6673_v38 = vld [vmem:[%s6614_s20 + $0x68] sm:$0xff]  ;;  %v6676_v15 = vld [vmem:[%s6614_s20 + $0x70] sm:$0xff] }
 0x268   : > { %v6639_v46 = vpop.permute.xlu1 %3954  ;;  %8453 = vst [vmem:[#allocation148_spill] sm:$0xff] %v6653_v1  ;;  %8455 = vst [vmem:[#allocation150_spill] sm:$0xff] %v6673_v38  ;;  %v5216_v38 = vld [vmem:[%s5704_s29 + $0x3ac] ss:$16 sps:$4 sm:$0xff]  }
 0x269   : > { %8456 = vst [vmem:[#allocation151_spill] sm:$0xff] %v6676_v15  ;;  %v6955_v15 = vld [vmem:[%s6614_s20 + $0x398] sm:$0xff]  ;;  %v4272_v34 = vadd.f32 %v6639_v46, %v6633_v21  ;;  %v4273_v14 = vadd.f32 %v6639_v46, %v6635_v3  ;;  %3974 = vperm.xlu1 %5039, %v8564_v51   ;;  %v7022_v21 = vadd.f32 %v1901_v37, %v6655_v35  ;;  %v7025_v3 = vld [vmem:[%s6614_s20 + $0x3c8] sm:$0xff]  ;;  %v7028_v51 = vld [vmem:[%s6614_s20 + $0x3e0] sm:$0xff]  ;;  %v1552_v37 = vpop.f32.mrb[103].mxu1  ;;  %v1905_v35 = vpop.f32.mrb[103].mxu0 }
 0x26a   : > { %8549 = vst [vmem:[#allocation244_spill] sm:$0xff] %v6955_v15  ;;  %8569 = vst [vmem:[#allocation263_spill] sm:$0xff] %v7025_v3  ;;  %v7037_v15 = vadd.f32 %v1903_v53, %v1550_v32  ;;  %v2486_v32 = vmul.f32 0.00390625, %v6358_v8  ;;  %v7050_v3 = vmul.f32 0.00390625, %v6369_v36  ;;  %1937 = vmatprep.mubr.bf16.mxu0 %v5216_v38  ;;  %v3061_v36 = vld [vmem:[%s6404_s15 + $0x28] sm:$0xff] }
 0x26b   : > { %8568 = vst [vmem:[#allocation262_spill] sm:$0xff] %v7022_v21  ;;  %8570 = vst [vmem:[#allocation264_spill] sm:$0xff] %v7028_v51  ;;  %v4400_v22 = vmax.f32 %v4272_v34, 0.0  ;;  %v4401_v46 = vmax.f32 %v4273_v14, 0.0  ;;  %v2252_v51 = vmul.f32 %v6425_v24, %v6425_v24  ;;  %v2253_v34 = vmul.f32 %v6427_v31, %v6427_v31  ;;  %1938 = vmatmul.mubr.bf16.gmra.mrb[116].mxu0 %v5219_v33 }
 0x26c   : > { %8572 = vst [vmem:[#allocation266_spill] sm:$0xff] %v7037_v15  ;;  %v2106_v14 = vadd.f32 %v6427_v31, %v6425_v24  ;;  %v2614_v53 = vmul.f32 %v2486_v32, %v2486_v32  ;;  %v2615_v8 = vmul.f32 %v7050_v3, %v7050_v3  ;;  %v3189_v33 = vsub.f32 %v3061_v36, %v3125_v7 }
 0x26d   : > { %4528 = vst [vmem:[%s7019_s22] sm:$0xff] %v4400_v22  ;;  %4529 = vst [vmem:[%s7019_s22 + $0x8] sm:$0xff] %v4401_v46  ;;  %v7045_v22 = vadd.f32 %v1905_v35, %v1552_v37  ;;  %v2426_v46 = vadd.f32 %v2253_v34, %v2252_v51  ;;  %v2551_v37 = vmul.f32 0.00390625, %v6378_v11  ;;  %v2254_v34 = vmul.f32 %v6438_v55, %v6438_v55 }
 0x26e   : > { %v2678_v50 = vsub.f32 %v2550_v39, %v2614_v53  ;;  %v2255_v39 = vmul.f32 %v6443_v52, %v6443_v52  ;;  %v2109_v11 = vadd.f32 %v6443_v52, %v6438_v55  ;;  %v8683_v52 = vld [vmem:[#allocation24_spill] sm:$0xff] }
 0x26f   : > { %8573 = vst [vmem:[#allocation267_spill] sm:$0xff] %v7045_v22  ;;  %v2679_v35 = vsub.f32 %v2551_v37, %v2615_v8  ;;  %v3826_v37 = vadd.f32 %v3698_v48, %v3250_v58 }
 0x270   : > { %v2742_v51 = vmax.f32 %v2678_v50, 0.0  ;;  %v2429_v38 = vadd.f32 %v2255_v39, %v2254_v34  ;;  %v2934_v39 = vld [vmem:[%s6383_s13 + $0x30] sm:$0xff] }
 0x271   : > { %v2743_v62 = vmax.f32 %v2679_v35, 0.0 }
 0x272   : > { %v2806_v45 = vadd.f32 1e-05, %v2742_v51 }
 0x273   : > { %v2807_v26 = vadd.f32 1e-05, %v2743_v62 }
 0x274   : > { %5244 = vrsqrt.f32 %v2806_v45  ;;  %v2935_v45 = vld [vmem:[%s6383_s13 + $0x38] sm:$0xff] }
 0x275   : > { %2107 = vadd.xlane.f32.xlu0 %v2106_v14  ;;  %5246 = vrsqrt.f32 %v2807_v26  ;;  %v3699_v14 = vmul.f32 %v6627_v12, %v5907_v43 }
 0x277   : > { %v3827_v8 = vadd.f32 %v3699_v14, %v3251_v59  ;;  %v3062_v14 = vld [vmem:[%s6404_s15 + $0x30] sm:$0xff] }
 0x279   : > { %2427 = vadd.xlane.f32.xlu0 %v2426_v46 }
 0x27e   : > { %v5245_v36 = vpop.eup %5244 }
 0x27f   : > { %v2998_v12 = vmul.f32 %v5245_v36, %v2934_v39 }
 0x281   : > { %v3126_v26 = vmul.f32 %v2998_v12, %v2486_v32 }
 0x283   : > { %v3190_v39 = vsub.f32 %v3062_v14, %v3126_v26 }
 0x28d   : > { %2110 = vadd.xlane.f32.xlu1 %v2109_v11 }
 0x28f   : > { %3979 = vperm.xlu0 %5038, %v3189_v33   ;;  %v5247_v33 = vpop.eup %5246 }
 0x290   : > { %v7068_v50 = vpop.xlane.xlu0 %2095 }
 0x291   : > { %2430 = vadd.xlane.f32.xlu1 %v2429_v38  ;;  %v2999_v38 = vmul.f32 %v5247_v33, %v2935_v45  ;;  %v2553_v45 = vmul.f32 0.00390625, %v6397_v18 }
 0x294   : > { %v7074_v46 = vpop.xlane.xlu0 %2415 }
 0x298   : > { %v7076_v53 = vpop.xlane.xlu1 %2098 }
 0x29c   : > { %v3960_v7 = vpop.permute.xlu0 %3959  ;;  %v7078_v51 = vpop.xlane.xlu1 %2418 }
 0x29d   : > { %v4274_v35 = vadd.f32 %v3960_v7, %v3826_v37  ;;  %v4275_v34 = vadd.f32 %v3960_v7, %v3827_v8 }
 0x29e   : > { %v1909_v48 = vpop.f32.mrb[104].mxu0 }
 0x29f   : > { %v4402_v41 = vmax.f32 %v4274_v35, 0.0  ;;  %v4403_v11 = vmax.f32 %v4275_v34, 0.0  ;;  %v1556_v37 = vpop.f32.mrb[104].mxu1  ;;  %v1911_v8 = vpop.f32.mrb[105].mxu0 }
 0x2a0   : > { %v3389_v43 = vpop.permute.xlu1 %3388  ;;  %v7089_v7 = vadd.f32 %v1909_v48, %v1556_v37  ;;  %v1558_v36 = vpop.f32.mrb[105].mxu1 }
 0x2a1   : > { %4530 = vst [vmem:[%s7019_s22 + $0x10] sm:$0xff] %v4402_v41  ;;  %4531 = vst [vmem:[%s7019_s22 + $0x18] sm:$0xff] %v4403_v11  ;;  %v3700_v58 = vmul.f32 %v3389_v43, %v5921_v54  ;;  %v3701_v59 = vmul.f32 %v3389_v43, %v5923_v57  ;;  %v7093_v54 = vadd.f32 %v1911_v8, %v1558_v36 }
 0x2a2   : > { %3408 = vperm.xlu1 %5039, %v2998_v12   ;;  %8574 = vst [vmem:[#allocation268_spill] sm:$0xff] %v7089_v7  ;;  %v2256_v11 = vmul.f32 %v6524_v17, %v6524_v17  ;;  %v2257_v43 = vmul.f32 %v6528_v9, %v6528_v9 }
 0x2a3   : > { %v3828_v35 = vadd.f32 %v3700_v58, %v6642_v27  ;;  %v3829_v34 = vadd.f32 %v3701_v59, %v6645_v20  ;;  %8575 = vst [vmem:[#allocation269_spill] sm:$0xff] %v7093_v54  ;;  %v2112_v27 = vadd.f32 %v6528_v9, %v6524_v17  ;;  %v7102_v20 = vmul.f32 0.00390625, %v6392_v56  ;;  %v1560_v58 = vpop.f32.mrb[106].mxu1  ;;  %v1913_v59 = vpop.f32.mrb[106].mxu0 }
 0x2a4   : > { %v7086_v62 = vpop.permute.xlu1 %3393  ;;  %v2432_v26 = vadd.f32 %v2257_v43, %v2256_v11  ;;  %v7107_v48 = vadd.f32 %v1913_v59, %v1560_v58  ;;  %v1562_v14 = vpop.f32.mrb[107].mxu1  ;;  %v5222_v11 = vld [vmem:[%s5704_s29 + $0x3cc] ss:$16 sps:$4 sm:$0xff]  }
 0x2a5   : > { %v1915_v37 = vpop.f32.mrb[107].mxu0  ;;  %v2617_v56 = vmul.f32 %v7102_v20, %v7102_v20  ;;  %v3063_v43 = vld [vmem:[%s6404_s15 + $0x38] sm:$0xff]  ;;  %1947 = vmatprep.mubr.bf16.mxu0 %v5222_v11 }
 0x2a6   : > { %3413 = vperm.xlu1 %5039, %v2999_v38   ;;  %8576 = vst [vmem:[#allocation270_spill] sm:$0xff] %v7107_v48  ;;  %v7111_v8 = vadd.f32 %v1915_v37, %v1562_v14  ;;  %v2259_v14 = vmul.f32 %v6542_v29, %v6542_v29  ;;  %v2115_v37 = vadd.f32 %v6542_v29, %v6537_v2 }
 0x2a7   : > { %v2681_v18 = vsub.f32 %v2553_v45, %v2617_v56  ;;  %v3702_v56 = vmul.f32 %v7086_v62, %v5925_v60 }
 0x2a8   : > { %v3965_v57 = vpop.permute.xlu1 %3964  ;;  %8577 = vst [vmem:[#allocation271_spill] sm:$0xff] %v7111_v8 }
 0x2a9   : > { %v4276_v41 = vadd.f32 %v3965_v57, %v3828_v35  ;;  %v4277_v32 = vadd.f32 %v3965_v57, %v3829_v34  ;;  %v2745_v36 = vmax.f32 %v2681_v18, 0.0  ;;  %v2488_v34 = vmul.f32 0.00390625, %v6376_v40  ;;  %v2937_v40 = vld [vmem:[%s6383_s13 + $0x48] sm:$0xff] }
 0x2aa   : > { %3984 = vperm.xlu1 %5039, %v3190_v39   ;;  %v2552_v39 = vmul.f32 0.00390625, %v6390_v4  ;;  %v3703_v18 = vmul.f32 %v7086_v62, %v5927_v63 }
 0x2ab   : > { %v4404_v12 = vmax.f32 %v4276_v41, 0.0  ;;  %v4405_v33 = vmax.f32 %v4277_v32, 0.0  ;;  %v2809_v35 = vadd.f32 1e-05, %v2745_v36  ;;  %v2616_v57 = vmul.f32 %v2488_v34, %v2488_v34  ;;  %v5220_v32 = vld [vmem:[%s5704_s29 + $0x3c4] ss:$16 sps:$4 sm:$0xff]  }
 0x2ac   : > { %v3127_v41 = vmul.f32 %v2999_v38, %v7050_v3  ;;  %1594 = vmatprep.mubr.bf16.mxu1 %v5220_v32  ;;  %v2258_v38 = vmul.f32 %v6537_v2, %v6537_v2 }
 0x2ad   : > { %4532 = vst [vmem:[%s7019_s22 + $0x20] sm:$0xff] %v4404_v12  ;;  %4533 = vst [vmem:[%s7019_s22 + $0x28] sm:$0xff] %v4405_v33  ;;  %5248 = vrsqrt.f32 %v2809_v35  ;;  %v5225_v12 = vld [vmem:[%s5704_s29 + $0x3c8] ss:$16 sps:$4 sm:$0xff]   ;;  %v2680_v33 = vsub.f32 %v2552_v39, %v2616_v57  ;;  %v3830_v57 = vadd.f32 %v3702_v56, %v6648_v49  ;;  %v3831_v39 = vadd.f32 %v3703_v18, %v6651_v47  ;;  %v3064_v47 = vld [vmem:[%s6404_s15 + $0x40] sm:$0xff] }
 0x2ae   : > { %2113 = vadd.xlane.f32.xlu0 %v2112_v27  ;;  %v5224_v27 = vld [vmem:[%s5704_s29 + $0x3c0] ss:$16 sps:$4 sm:$0xff]   ;;  %1948 = vmatmul.mubr.bf16.gmra.mrb[120].mxu0 %v5225_v12  ;;  %v3191_v45 = vsub.f32 %v3063_v43, %v3127_v41  ;;  %v2435_v36 = vadd.f32 %v2259_v14, %v2258_v38 }
 0x2af   : > { %1595 = vmatmul.mubr.bf16.gmra.mrb[120].mxu1 %v5224_v27  ;;  %v2744_v59 = vmax.f32 %v2680_v33, 0.0  ;;  %v2936_v33 = vld [vmem:[%s6383_s13 + $0x40] sm:$0xff] }
 0x2b1   : > { %v2808_v3 = vadd.f32 1e-05, %v2744_v59 }
 0x2b2   : > { %2433 = vadd.xlane.f32.xlu0 %v2432_v26 }
 0x2b3   : > { %5250 = vrsqrt.f32 %v2808_v3 }
 0x2b7   : > { %v5249_v58 = vpop.eup %5248 }
 0x2b8   : > { %v7122_v26 = vmul.f32 %v5249_v58, %v2937_v40 }
 0x2b9   : > { %v1566_v40 = vpop.f32.mrb[108].mxu1 }
 0x2ba   : > { %v1568_v59 = vpop.f32.mrb[109].mxu1 }
 0x2bd   : > { %v5251_v60 = vpop.eup %5250 }
 0x2be   : > { %v3000_v62 = vmul.f32 %v5251_v60, %v2936_v33  ;;  %v1570_v60 = vpop.f32.mrb[110].mxu1 }
 0x2c0   : > { %v3128_v49 = vmul.f32 %v3000_v62, %v2488_v34  ;;  %v2261_v34 = vmul.f32 %v7022_v21, %v7022_v21 }
 0x2c8   : > { %3989 = vperm.xlu0 %5038, %v3191_v45   ;;  %v1919_v45 = vpop.f32.mrb[108].mxu0 }
 0x2c9   : > { %v7124_v4 = vpop.xlane.xlu0 %2101  ;;  %v1921_v3 = vpop.f32.mrb[109].mxu0  ;;  %v7149_v38 = vadd.f32 %v1919_v45, %v1566_v40 }
 0x2ca   : > { %v7151_v14 = vadd.f32 %v1921_v3, %v1568_v59  ;;  %v1923_v33 = vpop.f32.mrb[110].mxu0  ;;  %v2490_v3 = vmul.f32 0.00390625, %v6395_v23 }
 0x2cb   : > { %8578 = vst [vmem:[#allocation272_spill] sm:$0xff] %v7149_v38  ;;  %v7167_v45 = vadd.f32 %v1923_v33, %v1570_v60 }
 0x2cc   : > { %3423 = vperm.xlu0 %5038, %v7122_v26   ;;  %8579 = vst [vmem:[#allocation273_spill] sm:$0xff] %v7151_v14 }
 0x2cd   : > { %v7137_v35 = vpop.xlane.xlu0 %2421  ;;  %8580 = vst [vmem:[#allocation274_spill] sm:$0xff] %v7167_v45 }
 0x2ce   : > { %2116 = vadd.xlane.f32.xlu1 %v2115_v37 }
 0x2d2   : > { %2436 = vadd.xlane.f32.xlu1 %v2435_v36  ;;  %v3192_v36 = vsub.f32 %v3064_v47, %v3128_v49 }
 0x2d5   : > { %v3970_v41 = vpop.permute.xlu0 %3969 }
 0x2d6   : > { %v4278_v32 = vadd.f32 %v3970_v41, %v3830_v57  ;;  %v4279_v11 = vadd.f32 %v3970_v41, %v3831_v39  ;;  %v2260_v57 = vmul.f32 %v6653_v1, %v6653_v1  ;;  %v2118_v39 = vadd.f32 %v7022_v21, %v6653_v1 }
 0x2d7   : > { %v7162_v41 = vmul.f32 0.00390625, %v6411_v6  ;;  %v1925_v6 = vpop.f32.mrb[111].mxu0 }
 0x2d8   : > { %v4406_v43 = vmax.f32 %v4278_v32, 0.0  ;;  %v4407_v27 = vmax.f32 %v4279_v11, 0.0  ;;  %v2555_v11 = vmul.f32 0.00390625, %v6415_v28 }
 0x2d9   : > { %v7141_v12 = vpop.xlane.xlu1 %2104 }
 0x2da   : > { %4534 = vst [vmem:[%s7019_s22 + $0x30] sm:$0xff] %v4406_v43  ;;  %4535 = vst [vmem:[%s7019_s22 + $0x38] sm:$0xff] %v4407_v27 }
 0x2dd   : > { %v7146_v63 = vpop.xlane.xlu1 %2424 }
 0x2e1   : > { %v3399_v58 = vpop.permute.xlu1 %3398 }
 0x2e2   : > { %v3704_v37 = vmul.f32 %v3399_v58, %v5941_v10  ;;  %v3705_v56 = vmul.f32 %v3399_v58, %v5943_v13  ;;  %v1572_v58 = vpop.f32.mrb[111].mxu1 }
 0x2e3   : > { %3418 = vperm.xlu1 %5039, %v3000_v62   ;;  %v2438_v62 = vadd.f32 %v2261_v34, %v2260_v57  ;;  %v7171_v28 = vadd.f32 %v1925_v6, %v1572_v58  ;;  %v5226_v57 = vld [vmem:[%s5704_s29 + $0x3e4] ss:$16 sps:$4 sm:$0xff]   ;;  %v5228_v34 = vld [vmem:[%s5704_s29 + $0x3ec] ss:$16 sps:$4 sm:$0xff]   ;;  %v2263_v58 = vmul.f32 %v7045_v22, %v7045_v22  ;;  %v2121_v6 = vadd.f32 %v7045_v22, %v7037_v15 }
 0x2e4   : > { %v3832_v32 = vadd.f32 %v3704_v37, %v6658_v44  ;;  %v3833_v10 = vadd.f32 %v3705_v56, %v6661_v25  ;;  %v2619_v44 = vmul.f32 %v7162_v41, %v7162_v41  ;;  %v2618_v37 = vmul.f32 %v2490_v3, %v2490_v3  ;;  %1604 = vmatprep.mubr.bf16.mxu1 %v5226_v57 }
 0x2e5   : > { %v3404_v18 = vpop.permute.xlu1 %3403  ;;  %8581 = vst [vmem:[#allocation275_spill] sm:$0xff] %v7171_v28  ;;  %v2554_v56 = vmul.f32 0.00390625, %v6408_v5  ;;  %1957 = vmatprep.mubr.bf16.mxu0 %v5228_v34  ;;  %v2939_v5 = vld [vmem:[%s6383_s13 + $0x58] sm:$0xff] }
 0x2e6   : > { %v2683_v40 = vsub.f32 %v2555_v11, %v2619_v44  ;;  %v3706_v33 = vmul.f32 %v3404_v18, %v5945_v16 }
 0x2e7   : > { %3994 = vperm.xlu1 %5039, %v3192_v36   ;;  %v3129_v36 = vmul.f32 %v7122_v26, %v7102_v20  ;;  %v2262_v26 = vmul.f32 %v7037_v15, %v7037_v15 }
 0x2e8   : > { %v2747_v47 = vmax.f32 %v2683_v40, 0.0 }
 0x2e9   : > { %v3975_v13 = vpop.permute.xlu1 %3974 }
 0x2ea   : > { %v4280_v43 = vadd.f32 %v3975_v13, %v3832_v32  ;;  %v4281_v27 = vadd.f32 %v3975_v13, %v3833_v10  ;;  %v2811_v59 = vadd.f32 1e-05, %v2747_v47  ;;  %v3065_v32 = vld [vmem:[%s6404_s15 + $0x48] sm:$0xff]  ;;  %v5230_v10 = vld [vmem:[%s5704_s29 + $0x3e0] ss:$16 sps:$4 sm:$0xff]  }
 0x2eb   : > { %2119 = vadd.xlane.f32.xlu0 %v2118_v39  ;;  %v2682_v39 = vsub.f32 %v2554_v56, %v2618_v37  ;;  %v5231_v13 = vld [vmem:[%s5704_s29 + $0x3e8] ss:$16 sps:$4 sm:$0xff]   ;;  %1605 = vmatmul.mubr.bf16.gmra.mrb[124].mxu1 %v5230_v10  ;;  %v3193_v11 = vsub.f32 %v3065_v32, %v3129_v36  ;;  %v2938_v56 = vld [vmem:[%s6383_s13 + $0x50] sm:$0xff] }
 0x2ec   : > { %v4408_v25 = vmax.f32 %v4280_v43, 0.0  ;;  %v4409_v49 = vmax.f32 %v4281_v27, 0.0  ;;  %5252 = vrsqrt.f32 %v2811_v59  ;;  %1958 = vmatmul.mubr.bf16.gmra.mrb[124].mxu0 %v5231_v13  ;;  %v3066_v32 = vld [vmem:[%s6404_s15 + $0x50] sm:$0xff] }
 0x2ed   : > { %v2746_v43 = vmax.f32 %v2682_v39, 0.0 }
 0x2ee   : > { %4536 = vst [vmem:[%s7019_s22 + $0x40] sm:$0xff] %v4408_v25  ;;  %4537 = vst [vmem:[%s7019_s22 + $0x48] sm:$0xff] %v4409_v49  ;;  %v3834_v25 = vadd.f32 %v3706_v33, %v6664_v0  ;;  %v7221_v33 = vmul.f32 0.00390625, %v6419_v61 }
 0x2ef   : > { %2439 = vadd.xlane.f32.xlu0 %v2438_v62  ;;  %v2810_v20 = vadd.f32 1e-05, %v2746_v43  ;;  %v3707_v62 = vmul.f32 %v3404_v18, %v5949_v19  ;;  %v2441_v19 = vadd.f32 %v2263_v58, %v2262_v26  ;;  %v2265_v26 = vmul.f32 %v7093_v54, %v7093_v54  ;;  %v8584_v58 = vld [vmem:[#allocation2_spill] sm:$0xff] }
 0x2f0   : > { %v2621_v61 = vmul.f32 %v7221_v33, %v7221_v33 }
 0x2f1   : > { %5254 = vrsqrt.f32 %v2810_v20  ;;  %v3835_v16 = vadd.f32 %v3707_v62, %v6667_v42  ;;  %v2264_v20 = vmul.f32 %v7089_v7, %v7089_v7 }
 0x2f6   : > { %v5253_v23 = vpop.eup %5252 }
 0x2f7   : > { %v7187_v60 = vmul.f32 %v5253_v23, %v2939_v5 }
 0x2fb   : > { %v5255_v37 = vpop.eup %5254 }
 0x2fc   : > { %v3002_v57 = vmul.f32 %v5255_v37, %v2938_v56  ;;  %v8587_v56 = vld [vmem:[#allocation149_spill] sm:$0xff] }
 0x2fe   : > { %v3130_v0 = vmul.f32 %v3002_v57, %v2490_v3  ;;  %v2124_v3 = vadd.f32 %v7093_v54, %v7089_v7  ;;  %v8606_v54 = vld [vmem:[#allocation83_spill] sm:$0xff] }
 0x2ff   : > { %v2494_v7 = vmul.f32 0.00390625, %v8606_v54 }
 0x300   : > { %v3194_v5 = vsub.f32 %v3066_v32, %v3130_v0 }
 0x302   : > { %v7184_v27 = vpop.xlane.xlu0 %2107 }
 0x305   : > { %3999 = vperm.xlu0 %5038, %v3193_v11  }
 0x306   : > { %v7198_v44 = vpop.xlane.xlu0 %2427 }
 0x309   : > { %3433 = vperm.xlu0 %5038, %v7187_v60  }
 0x30b   : > { %2122 = vadd.xlane.f32.xlu1 %v2121_v6 }
 0x30e   : > { %v3980_v18 = vpop.permute.xlu0 %3979 }
 0x30f   : > { %v4282_v49 = vadd.f32 %v3980_v18, %v3834_v25  ;;  %v4283_v40 = vadd.f32 %v3980_v18, %v3835_v16  ;;  %2442 = vadd.xlane.f32.xlu1 %v2441_v19  ;;  %v8585_v16 = vld [vmem:[#allocation84_spill] sm:$0xff] }
 0x310   : > { %v2557_v19 = vmul.f32 0.00390625, %v8585_v16 }
 0x311   : > { %v4410_v47 = vmax.f32 %v4282_v49, 0.0  ;;  %v4411_v59 = vmax.f32 %v4283_v40, 0.0  ;;  %v2444_v40 = vadd.f32 %v2265_v26, %v2264_v20 }
 0x312   : > { %v2685_v32 = vsub.f32 %v2557_v19, %v2621_v61  ;;  %v3131_v19 = vmul.f32 %v7187_v60, %v7162_v41  ;;  %v2266_v41 = vmul.f32 %v7107_v48, %v7107_v48  ;;  %v2267_v60 = vmul.f32 %v7111_v8, %v7111_v8 }
 0x313   : > { %4538 = vst [vmem:[%s7019_s22 + $0x50] sm:$0xff] %v4410_v47  ;;  %4539 = vst [vmem:[%s7019_s22 + $0x58] sm:$0xff] %v4411_v59 }
 0x314   : > { %v1576_v42 = vpop.f32.mrb[112].mxu1  ;;  %v2749_v20 = vmax.f32 %v2685_v32, 0.0 }
 0x315   : > { %v1929_v34 = vpop.f32.mrb[112].mxu0  ;;  %v1578_v10 = vpop.f32.mrb[113].mxu1 }
 0x316   : > { %v1931_v13 = vpop.f32.mrb[113].mxu0  ;;  %v7210_v11 = vadd.f32 %v1929_v34, %v1576_v42  ;;  %v1580_v18 = vpop.f32.mrb[114].mxu1  ;;  %v2813_v26 = vadd.f32 1e-05, %v2749_v20 }
 0x317   : > { %v7212_v23 = vadd.f32 %v1931_v13, %v1578_v10  ;;  %v1933_v49 = vpop.f32.mrb[114].mxu0  ;;  %v1582_v59 = vpop.f32.mrb[115].mxu1 }
 0x318   : > { %8582 = vst [vmem:[#allocation276_spill] sm:$0xff] %v7210_v11  ;;  %v7226_v47 = vadd.f32 %v1933_v49, %v1580_v18  ;;  %v1935_v37 = vpop.f32.mrb[115].mxu0  ;;  %5256 = vrsqrt.f32 %v2813_v26  ;;  %v2127_v26 = vadd.f32 %v7111_v8, %v7107_v48  ;;  %v8641_v8 = vld [vmem:[#allocation95_spill] sm:$0xff] }
 0x319   : > { %8583 = vst [vmem:[#allocation277_spill] sm:$0xff] %v7212_v23  ;;  %v7232_v0 = vadd.f32 %v1935_v37, %v1582_v59  ;;  %v2498_v48 = vmul.f32 0.00390625, %v8641_v8 }
 0x31a   : > { %v7205_v36 = vpop.xlane.xlu1 %2110  ;;  %8586 = vst [vmem:[#allocation2_spill] sm:$0xff] %v7226_v47 }
 0x31b   : > { %8589 = vst [vmem:[#allocation84_spill] sm:$0xff] %v7232_v0 }
 0x31e   : > { %v7207_v39 = vpop.xlane.xlu1 %2430 }
 0x320   : > { %3428 = vperm.xlu1 %5039, %v3002_v57   ;;  %v8588_v57 = vld [vmem:[#allocation150_spill] sm:$0xff] }
 0x322   : > { %v3409_v43 = vpop.permute.xlu1 %3408  ;;  %v5257_v37 = vpop.eup %5256 }
 0x323   : > { %v3708_v62 = vmul.f32 %v3409_v43, %v5961_v30  ;;  %v3709_v6 = vmul.f32 %v3409_v43, %v8584_v58 }
 0x324   : > { %4004 = vperm.xlu1 %5039, %v3194_v5  }
 0x325   : > { %v3836_v30 = vadd.f32 %v3708_v62, %v8587_v56  ;;  %v3837_v34 = vadd.f32 %v3709_v6, %v8588_v57  ;;  %v8591_v6 = vld [vmem:[#allocation82_spill] sm:$0xff]  ;;  %v2941_v56 = vld [vmem:[%s6383_s13 + $0x68] sm:$0xff] }
 0x326   : > { %v3414_v25 = vpop.permute.xlu1 %3413  ;;  %v2556_v16 = vmul.f32 0.00390625, %v8591_v6 }
 0x328   : > { %2125 = vadd.xlane.f32.xlu0 %v2124_v3  ;;  %v8590_v3 = vld [vmem:[#allocation81_spill] sm:$0xff] }
 0x329   : > { %v2492_v58 = vmul.f32 0.00390625, %v8590_v3 }
 0x32a   : > { %v3985_v42 = vpop.permute.xlu1 %3984 }
 0x32b   : > { %v4284_v10 = vadd.f32 %v3985_v42, %v3836_v30  ;;  %v4285_v13 = vadd.f32 %v3985_v42, %v3837_v34  ;;  %v2620_v62 = vmul.f32 %v2492_v58, %v2492_v58  ;;  %v8592_v30 = vld [vmem:[#allocation3_spill] sm:$0xff]  ;;  %v8593_v34 = vld [vmem:[#allocation4_spill] sm:$0xff] }
 0x32c   : > { %2445 = vadd.xlane.f32.xlu0 %v2444_v40  ;;  %v3067_v40 = vld [vmem:[%s6404_s15 + $0x58] sm:$0xff]  ;;  %v3710_v57 = vmul.f32 %v3414_v25, %v8592_v30  ;;  %v3711_v42 = vmul.f32 %v3414_v25, %v8593_v34  ;;  %v8595_v25 = vld [vmem:[#allocation152_spill] sm:$0xff]  ;;  %v1586_v34 = vpop.f32.mrb[116].mxu1 }
 0x32d   : > { %v4412_v43 = vmax.f32 %v4284_v10, 0.0  ;;  %v4413_v5 = vmax.f32 %v4285_v13, 0.0  ;;  %v2684_v18 = vsub.f32 %v2556_v16, %v2620_v62  ;;  %v3195_v59 = vsub.f32 %v3067_v40, %v3131_v19 }
 0x32e   : > { %v7248_v10 = vmul.f32 %v5257_v37, %v2941_v56  ;;  %v3839_v20 = vadd.f32 %v3711_v42, %v8595_v25  ;;  %v2268_v25 = vmul.f32 %v7149_v38, %v7149_v38 }
 0x32f   : > { %4540 = vst [vmem:[%s7019_s22 + $0x60] sm:$0xff] %v4412_v43  ;;  %4541 = vst [vmem:[%s7019_s22 + $0x68] sm:$0xff] %v4413_v5  ;;  %v2748_v61 = vmax.f32 %v2684_v18, 0.0  ;;  %v8594_v43 = vld [vmem:[#allocation151_spill] sm:$0xff]  ;;  %v2447_v18 = vadd.f32 %v2267_v60, %v2266_v41 }
 0x330   : > { %v3838_v5 = vadd.f32 %v3710_v57, %v8594_v43  ;;  %v3068_v57 = vld [vmem:[%s6404_s15 + $0x60] sm:$0xff] }
 0x331   : > { %v2812_v13 = vadd.f32 1e-05, %v2748_v61 }
 0x333   : > { %5258 = vrsqrt.f32 %v2812_v13  ;;  %v1588_v13 = vpop.f32.mrb[117].mxu1 }
 0x33b   : > { %v7240_v49 = vpop.xlane.xlu0 %2113 }
 0x33d   : > { %v5259_v40 = vpop.eup %5258 }
 0x33e   : > { %v1939_v30 = vpop.f32.mrb[116].mxu0 }
 0x33f   : > { %v7246_v32 = vpop.xlane.xlu0 %2433  ;;  %v1941_v42 = vpop.f32.mrb[117].mxu0  ;;  %v7265_v43 = vadd.f32 %v1939_v30, %v1586_v34 }
 0x341   : > { %8596 = vst [vmem:[#allocation149_spill] sm:$0xff] %v7265_v43 }
 0x342   : > { %4009 = vperm.xlu0 %5038, %v3195_v59   ;;  %v2940_v59 = vld [vmem:[%s6383_s13 + $0x60] sm:$0xff] }
 0x343   : > { %v3004_v37 = vmul.f32 %v5259_v40, %v2940_v59  ;;  %v8601_v40 = vld [vmem:[#allocation6_spill] sm:$0xff] }
 0x345   : > { %v3132_v56 = vmul.f32 %v3004_v37, %v2492_v58  ;;  %v2130_v58 = vadd.f32 %v7151_v14, %v7149_v38 }
 0x346   : > { %3443 = vperm.xlu0 %5038, %v7248_v10  }
 0x347   : > { %v3990_v3 = vpop.permute.xlu0 %3989  ;;  %v3196_v60 = vsub.f32 %v3068_v57, %v3132_v56  ;;  %v1943_v56 = vpop.f32.mrb[118].mxu0 }
 0x348   : > { %v4286_v62 = vadd.f32 %v3990_v3, %v3838_v5  ;;  %v4287_v6 = vadd.f32 %v3990_v3, %v3839_v20  ;;  %2128 = vadd.xlane.f32.xlu1 %v2127_v26  ;;  %v7267_v5 = vadd.f32 %v1941_v42, %v1588_v13  ;;  %v2269_v20 = vmul.f32 %v7151_v14, %v7151_v14  ;;  %v8598_v26 = vld [vmem:[#allocation88_spill] sm:$0xff]  ;;  %v1945_v42 = vpop.f32.mrb[119].mxu0 }
 0x349   : > { %v7278_v3 = vmul.f32 0.00390625, %v8598_v26 }
 0x34a   : > { %v4414_v16 = vmax.f32 %v4286_v62, 0.0  ;;  %v4415_v19 = vmax.f32 %v4287_v6, 0.0  ;;  %8597 = vst [vmem:[#allocation150_spill] sm:$0xff] %v7267_v5  ;;  %v8599_v6 = vld [vmem:[#allocation90_spill] sm:$0xff]  ;;  %v2450_v30 = vadd.f32 %v2269_v20, %v2268_v25 }
 0x34b   : > { %v2623_v13 = vmul.f32 %v7278_v3, %v7278_v3 }
 0x34c   : > { %2448 = vadd.xlane.f32.xlu1 %v2447_v18  ;;  %4542 = vst [vmem:[%s7019_s22 + $0x70] sm:$0xff] %v4414_v16  ;;  %4543 = vst [vmem:[%s7019_s22 + $0x78] sm:$0xff] %v4415_v19  ;;  %v2559_v16 = vmul.f32 0.00390625, %v8599_v6  ;;  %v8600_v19 = vld [vmem:[#allocation5_spill] sm:$0xff]  ;;  %v8604_v6 = vld [vmem:[#allocation154_spill] sm:$0xff] }
 0x35b   : > { %v7262_v61 = vpop.xlane.xlu1 %2116 }
 0x35d   : > { %3438 = vperm.xlu1 %5039, %v3004_v37   ;;  %v1590_v37 = vpop.f32.mrb[118].mxu1 }
 0x35e   : > { %v7283_v57 = vadd.f32 %v1943_v56, %v1590_v37  ;;  %v1592_v34 = vpop.f32.mrb[119].mxu1 }
 0x35f   : > { %v7269_v41 = vpop.xlane.xlu1 %2436 }
 0x360   : > { %8602 = vst [vmem:[#allocation81_spill] sm:$0xff] %v7283_v57 }
 0x361   : > { %4014 = vperm.xlu1 %5039, %v3196_v60   ;;  %v8603_v60 = vld [vmem:[#allocation153_spill] sm:$0xff] }
 0x363   : > { %v3419_v62 = vpop.permute.xlu1 %3418 }
 0x364   : > { %v3712_v18 = vmul.f32 %v3419_v62, %v8600_v19  ;;  %v3713_v59 = vmul.f32 %v3419_v62, %v8601_v40  ;;  %v7289_v19 = vadd.f32 %v1945_v42, %v1592_v34  ;;  %v2687_v40 = vsub.f32 %v2559_v16, %v2623_v13  ;;  %v3424_v42 = vpop.permute.xlu0 %3423 }
 0x365   : > { %2131 = vadd.xlane.f32.xlu0 %v2130_v58  ;;  %v3133_v16 = vmul.f32 %v7248_v10, %v7221_v33  ;;  %v2270_v33 = vmul.f32 %v7167_v45, %v7167_v45  ;;  %v2271_v10 = vmul.f32 %v7171_v28, %v7171_v28 }
 0x366   : > { %v3840_v26 = vadd.f32 %v3712_v18, %v8603_v60  ;;  %v3841_v14 = vadd.f32 %v3713_v59, %v8604_v6  ;;  %8605 = vst [vmem:[#allocation82_spill] sm:$0xff] %v7289_v19  ;;  %v2751_v37 = vmax.f32 %v2687_v40, 0.0  ;;  %v2622_v18 = vmul.f32 %v2494_v7, %v2494_v7  ;;  %v8607_v59 = vld [vmem:[#allocation87_spill] sm:$0xff]  ;;  %v2943_v6 = vld [vmem:[%s6383_s13 + $0x78] sm:$0xff] }
 0x367   : > { %v3995_v62 = vpop.permute.xlu1 %3994  ;;  %v2558_v34 = vmul.f32 0.00390625, %v8607_v59  ;;  %v8612_v59 = vld [vmem:[#allocation156_spill] sm:$0xff] }
 0x368   : > { %v4288_v38 = vadd.f32 %v3995_v62, %v3840_v26  ;;  %v4289_v58 = vadd.f32 %v3995_v62, %v3841_v14  ;;  %v2815_v56 = vadd.f32 1e-05, %v2751_v37  ;;  %v8608_v62 = vld [vmem:[#allocation7_spill] sm:$0xff] }
 0x369   : > { %2451 = vadd.xlane.f32.xlu0 %v2450_v30  ;;  %v2686_v14 = vsub.f32 %v2558_v34, %v2622_v18  ;;  %v3714_v40 = vmul.f32 %v3424_v42, %v8608_v62  ;;  %v2942_v62 = vld [vmem:[%s6383_s13 + $0x70] sm:$0xff] }
 0x36a   : > { %v4416_v25 = vmax.f32 %v4288_v38, 0.0  ;;  %v4417_v20 = vmax.f32 %v4289_v58, 0.0  ;;  %5260 = vrsqrt.f32 %v2815_v56  ;;  %v3069_v38 = vld [vmem:[%s6404_s15 + $0x68] sm:$0xff]  ;;  %v8609_v58 = vld [vmem:[#allocation8_spill] sm:$0xff] }
 0x36b   : > { %v3197_v30 = vsub.f32 %v3069_v38, %v3133_v16  ;;  %v2750_v26 = vmax.f32 %v2686_v14, 0.0  ;;  %v3715_v54 = vmul.f32 %v3424_v42, %v8609_v58  ;;  %v8611_v56 = vld [vmem:[#allocation155_spill] sm:$0xff]  ;;  %v2133_v42 = vadd.f32 %v7171_v28, %v7167_v45  ;;  %v8623_v28 = vld [vmem:[#allocation89_spill] sm:$0xff] }
 0x36c   : > { %4544 = vst [vmem:[%s7019_s22 + $0x80] sm:$0xff] %v4416_v25  ;;  %4545 = vst [vmem:[%s7019_s22 + $0x88] sm:$0xff] %v4417_v20  ;;  %v3842_v18 = vadd.f32 %v3714_v40, %v8611_v56  ;;  %v2496_v45 = vmul.f32 0.00390625, %v8623_v28 }
 0x36d   : > { %v2814_v37 = vadd.f32 1e-05, %v2750_v26  ;;  %v3843_v34 = vadd.f32 %v3715_v54, %v8612_v59  ;;  %v2453_v26 = vadd.f32 %v2271_v10, %v2270_v33  ;;  %v3070_v59 = vld [vmem:[%s6404_s15 + $0x70] sm:$0xff] }
 0x36f   : > { %5262 = vrsqrt.f32 %v2814_v37 }
 0x374   : > { %v5261_v60 = vpop.eup %5260 }
 0x375   : > { %v7305_v20 = vmul.f32 %v5261_v60, %v2943_v6 }
 0x378   : > { %v7297_v13 = vpop.xlane.xlu0 %2119 }
 0x379   : > { %v5263_v6 = vpop.eup %5262 }
 0x37a   : > { %v3006_v40 = vmul.f32 %v5263_v6, %v2942_v62  ;;  %v8617_v6 = vld [vmem:[#allocation9_spill] sm:$0xff] }
 0x37c   : > { %v7303_v25 = vpop.xlane.xlu0 %2439  ;;  %v3134_v54 = vmul.f32 %v3006_v40, %v2494_v7  ;;  %v2136_v7 = vadd.f32 %v7212_v23, %v7210_v11 }
 0x37d   : > { %8610 = vst [vmem:[#allocation3_spill] sm:$0xff] %v7303_v25 }
 0x37e   : > { %v3198_v10 = vsub.f32 %v3070_v59, %v3134_v54 }
 0x37f   : > { %4019 = vperm.xlu0 %5038, %v3197_v30  }
 0x381   : > { %v1949_v56 = vpop.f32.mrb[120].mxu0 }
 0x382   : > { %v1596_v21 = vpop.f32.mrb[120].mxu1 }
 0x383   : > { %3453 = vperm.xlu0 %5038, %v7305_v20   ;;  %v1598_v37 = vpop.f32.mrb[121].mxu1 }
 0x384   : > { %v4000_v16 = vpop.permute.xlu0 %3999 }
 0x385   : > { %v4290_v14 = vadd.f32 %v4000_v16, %v3842_v18  ;;  %v4291_v38 = vadd.f32 %v4000_v16, %v3843_v34  ;;  %2134 = vadd.xlane.f32.xlu1 %v2133_v42  ;;  %v1951_v18 = vpop.f32.mrb[121].mxu0  ;;  %v7322_v34 = vadd.f32 %v1949_v56, %v1596_v21  ;;  %v2272_v16 = vmul.f32 %v7210_v11, %v7210_v11  ;;  %v1600_v56 = vpop.f32.mrb[122].mxu1  ;;  %v8620_v11 = vld [vmem:[#allocation157_spill] sm:$0xff] }
 0x386   : > { %v7324_v42 = vadd.f32 %v1951_v18, %v1598_v37  ;;  %v1953_v59 = vpop.f32.mrb[122].mxu0 }
 0x387   : > { %v4418_v30 = vmax.f32 %v4290_v14, 0.0  ;;  %v4419_v60 = vmax.f32 %v4291_v38, 0.0  ;;  %8613 = vst [vmem:[#allocation4_spill] sm:$0xff] %v7322_v34  ;;  %v2273_v14 = vmul.f32 %v7212_v23, %v7212_v23  ;;  %v8615_v38 = vld [vmem:[#allocation94_spill] sm:$0xff]  ;;  %v7340_v37 = vadd.f32 %v1953_v59, %v1600_v56  ;;  %v1955_v23 = vpop.f32.mrb[123].mxu0 }
 0x388   : > { %8614 = vst [vmem:[#allocation151_spill] sm:$0xff] %v7324_v42 }
 0x389   : > { %2454 = vadd.xlane.f32.xlu1 %v2453_v26  ;;  %4546 = vst [vmem:[%s7019_s22 + $0x90] sm:$0xff] %v4418_v30  ;;  %4547 = vst [vmem:[%s7019_s22 + $0x98] sm:$0xff] %v4419_v60  ;;  %v7335_v30 = vmul.f32 0.00390625, %v8615_v38  ;;  %v8616_v60 = vld [vmem:[#allocation96_spill] sm:$0xff]  ;;  %v2456_v18 = vadd.f32 %v2273_v14, %v2272_v16 }
 0x38a   : > { %v2561_v26 = vmul.f32 0.00390625, %v8616_v60  ;;  %8619 = vst [vmem:[#allocation152_spill] sm:$0xff] %v7340_v37  ;;  %v8621_v60 = vld [vmem:[#allocation158_spill] sm:$0xff] }
 0x38b   : > { %v2625_v38 = vmul.f32 %v7335_v30, %v7335_v30 }
 0x398   : > { %v7319_v58 = vpop.xlane.xlu1 %2122 }
 0x39a   : > { %3448 = vperm.xlu1 %5039, %v3006_v40   ;;  %v8618_v40 = vld [vmem:[#allocation10_spill] sm:$0xff] }
 0x39c   : > { %v7326_v33 = vpop.xlane.xlu1 %2442 }
 0x39e   : > { %4024 = vperm.xlu1 %5039, %v3198_v10   ;;  %v1602_v10 = vpop.f32.mrb[123].mxu1 }
 0x3a0   : > { %v3429_v21 = vpop.permute.xlu1 %3428 }
 0x3a1   : > { %v3716_v62 = vmul.f32 %v3429_v21, %v8617_v6  ;;  %v3717_v54 = vmul.f32 %v3429_v21, %v8618_v40  ;;  %v7346_v6 = vadd.f32 %v1955_v23, %v1602_v10  ;;  %v2689_v40 = vsub.f32 %v2561_v26, %v2625_v38 }
 0x3a2   : > { %2137 = vadd.xlane.f32.xlu0 %v2136_v7 }
 0x3a3   : > { %v3844_v1 = vadd.f32 %v3716_v62, %v8620_v11  ;;  %v3845_v9 = vadd.f32 %v3717_v54, %v8621_v60  ;;  %8622 = vst [vmem:[#allocation88_spill] sm:$0xff] %v7346_v6  ;;  %v2753_v56 = vmax.f32 %v2689_v40, 0.0  ;;  %v2624_v11 = vmul.f32 %v2496_v45, %v2496_v45  ;;  %v8624_v62 = vld [vmem:[#allocation92_spill] sm:$0xff]  ;;  %v3434_v54 = vpop.permute.xlu0 %3433  ;;  %v2945_v60 = vld [vmem:[%s6383_s13 + $0x88] sm:$0xff] }
 0x3a4   : > { %v4005_v21 = vpop.permute.xlu1 %4004  ;;  %v2560_v23 = vmul.f32 0.00390625, %v8624_v62  ;;  %v8630_v62 = vld [vmem:[#allocation160_spill] sm:$0xff] }
 0x3a5   : > { %v4292_v17 = vadd.f32 %v4005_v21, %v3844_v1  ;;  %v4293_v7 = vadd.f32 %v4005_v21, %v3845_v9  ;;  %v2817_v59 = vadd.f32 1e-05, %v2753_v56  ;;  %v3135_v1 = vmul.f32 %v7305_v20, %v7278_v3  ;;  %v8626_v21 = vld [vmem:[#allocation11_spill] sm:$0xff] }
 0x3a6   : > { %2457 = vadd.xlane.f32.xlu0 %v2456_v18  ;;  %v2688_v9 = vsub.f32 %v2560_v23, %v2624_v11  ;;  %v3718_v40 = vmul.f32 %v3434_v54, %v8626_v21  ;;  %v2274_v3 = vmul.f32 %v7226_v47, %v7226_v47  ;;  %v2275_v20 = vmul.f32 %v7232_v0, %v7232_v0  ;;  %v2944_v21 = vld [vmem:[%s6383_s13 + $0x80] sm:$0xff] }
 0x3a7   : > { %v4420_v16 = vmax.f32 %v4292_v17, 0.0  ;;  %v4421_v14 = vmax.f32 %v4293_v7, 0.0  ;;  %5264 = vrsqrt.f32 %v2817_v59  ;;  %v3071_v17 = vld [vmem:[%s6404_s15 + $0x78] sm:$0xff]  ;;  %v8627_v7 = vld [vmem:[#allocation12_spill] sm:$0xff]  ;;  %v8629_v59 = vld [vmem:[#allocation159_spill] sm:$0xff] }
 0x3a8   : > { %v3199_v18 = vsub.f32 %v3071_v17, %v3135_v1  ;;  %v2752_v38 = vmax.f32 %v2688_v9, 0.0  ;;  %v3719_v28 = vmul.f32 %v3434_v54, %v8627_v7  ;;  %v3846_v11 = vadd.f32 %v3718_v40, %v8629_v59 }
 0x3a9   : > { %4548 = vst [vmem:[%s7019_s22 + $0xa0] sm:$0xff] %v4420_v16  ;;  %4549 = vst [vmem:[%s7019_s22 + $0xa8] sm:$0xff] %v4421_v14  ;;  %v2139_v54 = vadd.f32 %v7232_v0, %v7226_v47 }
 0x3aa   : > { %v2816_v56 = vadd.f32 1e-05, %v2752_v38  ;;  %v3847_v23 = vadd.f32 %v3719_v28, %v8630_v62  ;;  %v2459_v38 = vadd.f32 %v2275_v20, %v2274_v3  ;;  %v3072_v62 = vld [vmem:[%s6404_s15 + $0x80] sm:$0xff] }
 0x3ac   : > { %5266 = vrsqrt.f32 %v2816_v56 }
 0x3b1   : > { %v5265_v10 = vpop.eup %5264 }
 0x3b2   : > { %v7362_v14 = vmul.f32 %v5265_v10, %v2945_v60 }
 0x3b5   : > { %v7354_v26 = vpop.xlane.xlu0 %2125 }
 0x3b6   : > { %8625 = vst [vmem:[#allocation90_spill] sm:$0xff] %v7354_v26  ;;  %v5267_v60 = vpop.eup %5266 }
 0x3b7   : > { %v3008_v40 = vmul.f32 %v5267_v60, %v2944_v21  ;;  %v8635_v60 = vld [vmem:[#allocation13_spill] sm:$0xff] }
 0x3b9   : > { %v7360_v16 = vpop.xlane.xlu0 %2445  ;;  %v3136_v28 = vmul.f32 %v3008_v40, %v2496_v45  ;;  %v2142_v45 = vadd.f32 %v7267_v5, %v7265_v43 }
 0x3ba   : > { %8628 = vst [vmem:[#allocation5_spill] sm:$0xff] %v7360_v16  ;;  %v8704_v16 = vld [vmem:[#allocation142_spill] sm:$0xff] }
 0x3bb   : > { %v3200_v20 = vsub.f32 %v3072_v62, %v3136_v28 }
 0x3bc   : > { %4029 = vperm.xlu0 %5038, %v3199_v18  }
 0x3be   : > { %v1606_v0 = vpop.f32.mrb[124].mxu1 }
 0x3bf   : > { %v1959_v59 = vpop.f32.mrb[124].mxu0  ;;  %v1608_v56 = vpop.f32.mrb[125].mxu1 }
 0x3c0   : > { %3463 = vperm.xlu0 %5038, %v7362_v14  }
 0x3c1   : > { %v4010_v1 = vpop.permute.xlu0 %4009 }
 0x3c2   : > { %v4294_v9 = vadd.f32 %v4010_v1, %v3846_v11  ;;  %v4295_v17 = vadd.f32 %v4010_v1, %v3847_v23  ;;  %2140 = vadd.xlane.f32.xlu1 %v2139_v54  ;;  %v1961_v11 = vpop.f32.mrb[125].mxu0  ;;  %v7379_v23 = vadd.f32 %v1959_v59, %v1606_v0  ;;  %v2276_v1 = vmul.f32 %v7265_v43, %v7265_v43  ;;  %v1610_v59 = vpop.f32.mrb[126].mxu1  ;;  %v8638_v43 = vld [vmem:[#allocation161_spill] sm:$0xff] }
 0x3c3   : > { %v7381_v54 = vadd.f32 %v1961_v11, %v1608_v56  ;;  %v1963_v62 = vpop.f32.mrb[126].mxu0 }
 0x3c4   : > { %v4422_v18 = vmax.f32 %v4294_v9, 0.0  ;;  %v4423_v10 = vmax.f32 %v4295_v17, 0.0  ;;  %8631 = vst [vmem:[#allocation6_spill] sm:$0xff] %v7379_v23  ;;  %v2277_v9 = vmul.f32 %v7267_v5, %v7267_v5  ;;  %v8633_v17 = vld [vmem:[#allocation98_spill] sm:$0xff]  ;;  %v7397_v56 = vadd.f32 %v1963_v62, %v1610_v59  ;;  %v1965_v5 = vpop.f32.mrb[127].mxu0 }
 0x3c5   : > { %8632 = vst [vmem:[#allocation153_spill] sm:$0xff] %v7381_v54 }
 0x3c6   : > { %2460 = vadd.xlane.f32.xlu1 %v2459_v38  ;;  %4550 = vst [vmem:[%s7019_s22 + $0xb0] sm:$0xff] %v4422_v18  ;;  %4551 = vst [vmem:[%s7019_s22 + $0xb8] sm:$0xff] %v4423_v10  ;;  %v7392_v18 = vmul.f32 0.00390625, %v8633_v17  ;;  %v8634_v10 = vld [vmem:[#allocation100_spill] sm:$0xff]  ;;  %v2462_v11 = vadd.f32 %v2277_v9, %v2276_v1 }
 0x3c7   : > { %v2563_v38 = vmul.f32 0.00390625, %v8634_v10  ;;  %8637 = vst [vmem:[#allocation154_spill] sm:$0xff] %v7397_v56  ;;  %v8639_v10 = vld [vmem:[#allocation162_spill] sm:$0xff] }
 0x3c8   : > { %v2627_v17 = vmul.f32 %v7392_v18, %v7392_v18 }
 0x3d5   : > { %v7376_v7 = vpop.xlane.xlu1 %2128 }
 0x3d7   : > { %3458 = vperm.xlu1 %5039, %v3008_v40   ;;  %v8636_v40 = vld [vmem:[#allocation14_spill] sm:$0xff] }
 0x3d9   : > { %v7383_v3 = vpop.xlane.xlu1 %2448 }
 0x3db   : > { %4034 = vperm.xlu1 %5039, %v3200_v20   ;;  %v1612_v20 = vpop.f32.mrb[127].mxu1 }
 0x3dd   : > { %v3439_v0 = vpop.permute.xlu1 %3438 }
 0x3de   : > { %v3720_v21 = vmul.f32 %v3439_v0, %v8635_v60  ;;  %v3721_v28 = vmul.f32 %v3439_v0, %v8636_v40  ;;  %v7403_v60 = vadd.f32 %v1965_v5, %v1612_v20  ;;  %v2691_v40 = vsub.f32 %v2563_v38, %v2627_v17 }
 0x3df   : > { %2143 = vadd.xlane.f32.xlu0 %v2142_v45 }
 0x3e0   : > { %v3848_v47 = vadd.f32 %v3720_v21, %v8638_v43  ;;  %v3849_v31 = vadd.f32 %v3721_v28, %v8639_v10  ;;  %8640 = vst [vmem:[#allocation83_spill] sm:$0xff] %v7403_v60  ;;  %v2755_v59 = vmax.f32 %v2691_v40, 0.0  ;;  %v2626_v43 = vmul.f32 %v2498_v48, %v2498_v48  ;;  %v8642_v21 = vld [vmem:[#allocation97_spill] sm:$0xff]  ;;  %v3444_v28 = vpop.permute.xlu0 %3443 }
 0x3e1   : > { %v4015_v0 = vpop.permute.xlu1 %4014  ;;  %v2562_v5 = vmul.f32 0.00390625, %v8642_v21  ;;  %v2947_v10 = vld [vmem:[%s6383_s13 + $0x98] sm:$0xff]  ;;  %v8648_v21 = vld [vmem:[#allocation164_spill] sm:$0xff] }
 0x3e2   : > { %v4296_v24 = vadd.f32 %v4015_v0, %v3848_v47  ;;  %v4297_v45 = vadd.f32 %v4015_v0, %v3849_v31  ;;  %v2819_v62 = vadd.f32 1e-05, %v2755_v59  ;;  %v3137_v47 = vmul.f32 %v7362_v14, %v7335_v30  ;;  %v8644_v0 = vld [vmem:[#allocation15_spill] sm:$0xff] }
 0x3e3   : > { %2463 = vadd.xlane.f32.xlu0 %v2462_v11  ;;  %v2690_v31 = vsub.f32 %v2562_v5, %v2626_v43  ;;  %v3722_v40 = vmul.f32 %v3444_v28, %v8644_v0  ;;  %v2278_v30 = vmul.f32 %v7283_v57, %v7283_v57  ;;  %v2279_v14 = vmul.f32 %v7289_v19, %v7289_v19  ;;  %v2946_v0 = vld [vmem:[%s6383_s13 + $0x90] sm:$0xff] }
 0x3e4   : > { %v4424_v1 = vmax.f32 %v4296_v24, 0.0  ;;  %v4425_v9 = vmax.f32 %v4297_v45, 0.0  ;;  %5268 = vrsqrt.f32 %v2819_v62  ;;  %v3073_v24 = vld [vmem:[%s6404_s15 + $0x88] sm:$0xff]  ;;  %v8645_v45 = vld [vmem:[#allocation16_spill] sm:$0xff] }
 0x3e5   : > { %v3201_v11 = vsub.f32 %v3073_v24, %v3137_v47  ;;  %v2754_v17 = vmax.f32 %v2690_v31, 0.0  ;;  %v3723_v8 = vmul.f32 %v3444_v28, %v8645_v45  ;;  %v8647_v62 = vld [vmem:[#allocation163_spill] sm:$0xff]  ;;  %v2145_v28 = vadd.f32 %v7289_v19, %v7283_v57 }
 0x3e6   : > { %4552 = vst [vmem:[%s7019_s22 + $0xc0] sm:$0xff] %v4424_v1  ;;  %4553 = vst [vmem:[%s7019_s22 + $0xc8] sm:$0xff] %v4425_v9  ;;  %v3850_v43 = vadd.f32 %v3722_v40, %v8647_v62  ;;  %v3074_v62 = vld [vmem:[%s6404_s15 + $0x90] sm:$0xff] }
 0x3e7   : > { %v2818_v59 = vadd.f32 1e-05, %v2754_v17  ;;  %v3851_v5 = vadd.f32 %v3723_v8, %v8648_v21  ;;  %v2465_v17 = vadd.f32 %v2279_v14, %v2278_v30  ;;  %v2281_v30 = vmul.f32 %v7324_v42, %v7324_v42 }
 0x3e8   : > { %v2148_v14 = vadd.f32 %v7324_v42, %v7322_v34 }
 0x3e9   : > { %5270 = vrsqrt.f32 %v2818_v59  ;;  %v2280_v59 = vmul.f32 %v7322_v34, %v7322_v34 }
 0x3ee   : > { %v5269_v20 = vpop.eup %5268 }
 0x3ef   : > { %v3011_v9 = vmul.f32 %v5269_v20, %v2947_v10 }
 0x3f2   : > { %v7411_v38 = vpop.xlane.xlu0 %2131 }
 0x3f3   : > { %8643 = vst [vmem:[#allocation87_spill] sm:$0xff] %v7411_v38  ;;  %v5271_v10 = vpop.eup %5270 }
 0x3f4   : > { %v3010_v40 = vmul.f32 %v5271_v10, %v2946_v0  ;;  %v2468_v10 = vadd.f32 %v2281_v30, %v2280_v59  ;;  %v8655_v30 = vld [vmem:[#allocation99_spill] sm:$0xff] }
 0x3f6   : > { %v7417_v1 = vpop.xlane.xlu0 %2451  ;;  %v3138_v8 = vmul.f32 %v3010_v40, %v2498_v48  ;;  %v8650_v48 = vld [vmem:[#allocation104_spill] sm:$0xff] }
 0x3f7   : > { %8646 = vst [vmem:[#allocation7_spill] sm:$0xff] %v7417_v1 }
 0x3f9   : > { %4039 = vperm.xlu0 %5038, %v3201_v11  }
 0x3fd   : > { %3473 = vperm.xlu0 %5038, %v3011_v9  }
 0x3fe   : > { %v4020_v47 = vpop.permute.xlu0 %4019 }
 0x3ff   : > { %v4298_v31 = vadd.f32 %v4020_v47, %v3850_v43  ;;  %v4299_v24 = vadd.f32 %v4020_v47, %v3851_v5  ;;  %2146 = vadd.xlane.f32.xlu1 %v2145_v28  ;;  %v3202_v43 = vsub.f32 %v3074_v62, %v3138_v8  ;;  %v8649_v5 = vld [vmem:[#allocation102_spill] sm:$0xff] }
 0x400   : > { %v7442_v28 = vmul.f32 0.00390625, %v8649_v5  ;;  %v8654_v62 = vld [vmem:[#allocation166_spill] sm:$0xff] }
 0x401   : > { %v4426_v11 = vmax.f32 %v4298_v31, 0.0  ;;  %v4427_v20 = vmax.f32 %v4299_v24, 0.0  ;;  %v2565_v31 = vmul.f32 0.00390625, %v8650_v48  ;;  %v8651_v24 = vld [vmem:[#allocation17_spill] sm:$0xff] }
 0x402   : > { %v2629_v0 = vmul.f32 %v7442_v28, %v7442_v28 }
 0x403   : > { %2466 = vadd.xlane.f32.xlu1 %v2465_v17  ;;  %4554 = vst [vmem:[%s7019_s22 + $0xd0] sm:$0xff] %v4426_v11  ;;  %4555 = vst [vmem:[%s7019_s22 + $0xd8] sm:$0xff] %v4427_v20  ;;  %v8652_v20 = vld [vmem:[#allocation18_spill] sm:$0xff] }
 0x404   : > { %v2693_v42 = vsub.f32 %v2565_v31, %v2629_v0  ;;  %v3139_v31 = vmul.f32 %v3011_v9, %v7392_v18  ;;  %v2282_v18 = vmul.f32 %v7340_v37, %v7340_v37  ;;  %v2283_v9 = vmul.f32 %v7346_v6, %v7346_v6 }
 0x406   : > { %v2757_v57 = vmax.f32 %v2693_v42, 0.0 }
 0x408   : > { %v2821_v59 = vadd.f32 1e-05, %v2757_v57  ;;  %v8659_v57 = vld [vmem:[#allocation20_spill] sm:$0xff] }
 0x40a   : > { %5272 = vrsqrt.f32 %v2821_v59 }
 0x412   : > { %v7430_v45 = vpop.xlane.xlu1 %2134 }
 0x414   : > { %3468 = vperm.xlu1 %5039, %v3010_v40   ;;  %v8653_v40 = vld [vmem:[#allocation165_spill] sm:$0xff] }
 0x416   : > { %v7433_v21 = vpop.xlane.xlu1 %2454 }
 0x418   : > { %4044 = vperm.xlu1 %5039, %v3202_v43  }
 0x41a   : > { %v3449_v47 = vpop.permute.xlu1 %3448 }
 0x41b   : > { %v3724_v11 = vmul.f32 %v3449_v47, %v8651_v24  ;;  %v3725_v17 = vmul.f32 %v3449_v47, %v8652_v20 }
 0x41c   : > { %2149 = vadd.xlane.f32.xlu0 %v2148_v14  ;;  %v2500_v14 = vmul.f32 0.00390625, %v8655_v30  ;;  %v8661_v30 = vld [vmem:[#allocation167_spill] sm:$0xff] }
 0x41d   : > { %v3852_v8 = vadd.f32 %v3724_v11, %v8653_v40  ;;  %v3853_v43 = vadd.f32 %v3725_v17, %v8654_v62  ;;  %v8656_v11 = vld [vmem:[#allocation101_spill] sm:$0xff]  ;;  %v3454_v17 = vpop.permute.xlu0 %3453  ;;  %v8658_v62 = vld [vmem:[#allocation19_spill] sm:$0xff] }
 0x41e   : > { %v4025_v5 = vpop.permute.xlu1 %4024  ;;  %v2628_v47 = vmul.f32 %v2500_v14, %v2500_v14  ;;  %v2564_v20 = vmul.f32 0.00390625, %v8656_v11  ;;  %v8662_v11 = vld [vmem:[#allocation168_spill] sm:$0xff] }
 0x41f   : > { %v4300_v34 = vadd.f32 %v4025_v5, %v3852_v8  ;;  %v4301_v19 = vadd.f32 %v4025_v5, %v3853_v43  ;;  %v2949_v8 = vld [vmem:[%s6383_s13 + $0xa8] sm:$0xff]  ;;  %v3726_v43 = vmul.f32 %v3454_v17, %v8658_v62  ;;  %v3727_v5 = vmul.f32 %v3454_v17, %v8659_v57  ;;  %v2948_v62 = vld [vmem:[%s6383_s13 + $0xa0] sm:$0xff] }
 0x420   : > { %2469 = vadd.xlane.f32.xlu0 %v2468_v10  ;;  %v2692_v0 = vsub.f32 %v2564_v20, %v2628_v47  ;;  %v3075_v10 = vld [vmem:[%s6404_s15 + $0x98] sm:$0xff]  ;;  %v2151_v17 = vadd.f32 %v7346_v6, %v7340_v37  ;;  %v8671_v37 = vld [vmem:[#allocation112_spill] sm:$0xff] }
 0x421   : > { %v4428_v48 = vmax.f32 %v4300_v34, 0.0  ;;  %v4429_v24 = vmax.f32 %v4301_v19, 0.0  ;;  %v3203_v34 = vsub.f32 %v3075_v10, %v3139_v31  ;;  %v5273_v19 = vpop.eup %5272  ;;  %v3854_v47 = vadd.f32 %v3726_v43, %v8661_v30  ;;  %v3076_v30 = vld [vmem:[%s6404_s15 + $0xa0] sm:$0xff] }
 0x422   : > { %v2756_v42 = vmax.f32 %v2692_v0, 0.0  ;;  %v3855_v20 = vadd.f32 %v3727_v5, %v8662_v11  ;;  %v8663_v11 = vld [vmem:[#allocation106_spill] sm:$0xff]  ;;  %v2569_v22 = vmul.f32 0.00390625, %v8671_v37  ;;  %v8674_v37 = vld [vmem:[#allocation103_spill] sm:$0xff] }
 0x423   : > { %4556 = vst [vmem:[%s7019_s22 + $0xe0] sm:$0xff] %v4428_v48  ;;  %4557 = vst [vmem:[%s7019_s22 + $0xe8] sm:$0xff] %v4429_v24  ;;  %v7464_v24 = vmul.f32 %v5273_v19, %v2949_v8  ;;  %v7482_v6 = vmul.f32 0.00390625, %v8663_v11 }
 0x424   : > { %v2820_v59 = vadd.f32 1e-05, %v2756_v42  ;;  %v2471_v42 = vadd.f32 %v2283_v9, %v2282_v18  ;;  %v2284_v18 = vmul.f32 %v7379_v23, %v7379_v23  ;;  %v2285_v9 = vmul.f32 %v7381_v54, %v7381_v54 }
 0x426   : > { %5274 = vrsqrt.f32 %v2820_v59 }
 0x42f   : > { %v7456_v40 = vpop.xlane.xlu0 %2137 }
 0x430   : > { %8657 = vst [vmem:[#allocation8_spill] sm:$0xff] %v7456_v40  ;;  %v5275_v8 = vpop.eup %5274 }
 0x431   : > { %v3012_v43 = vmul.f32 %v5275_v8, %v2948_v62  ;;  %v2474_v62 = vadd.f32 %v2285_v9, %v2284_v18 }
 0x433   : > { %v7462_v48 = vpop.xlane.xlu0 %2457  ;;  %v3140_v5 = vmul.f32 %v3012_v43, %v2500_v14  ;;  %v2154_v14 = vadd.f32 %v7381_v54, %v7379_v23 }
 0x434   : > { %8660 = vst [vmem:[#allocation155_spill] sm:$0xff] %v7462_v48  ;;  %v8684_v48 = vld [vmem:[#allocation111_spill] sm:$0xff] }
 0x435   : > { %v3204_v59 = vsub.f32 %v3076_v30, %v3140_v5  ;;  %v8669_v30 = vld [vmem:[#allocation169_spill] sm:$0xff] }
 0x436   : > { %4049 = vperm.xlu0 %5038, %v3203_v34  }
 0x43a   : > { %3483 = vperm.xlu0 %5038, %v7464_v24  }
 0x43b   : > { %v4030_v31 = vpop.permute.xlu0 %4029 }
 0x43c   : > { %v4302_v0 = vadd.f32 %v4030_v31, %v3854_v47  ;;  %v4303_v10 = vadd.f32 %v4030_v31, %v3855_v20  ;;  %2152 = vadd.xlane.f32.xlu1 %v2151_v17  ;;  %v8665_v20 = vld [vmem:[#allocation108_spill] sm:$0xff]  ;;  %v2631_v31 = vmul.f32 %v7482_v6, %v7482_v6 }
 0x43d   : > { %v2567_v17 = vmul.f32 0.00390625, %v8665_v20 }
 0x43e   : > { %v4430_v34 = vmax.f32 %v4302_v0, 0.0  ;;  %v4431_v19 = vmax.f32 %v4303_v10, 0.0 }
 0x43f   : > { %v2695_v10 = vsub.f32 %v2567_v17, %v2631_v31 }
 0x440   : > { %2472 = vadd.xlane.f32.xlu1 %v2471_v42  ;;  %4558 = vst [vmem:[%s7019_s22 + $0xf0] sm:$0xff] %v4430_v34  ;;  %4559 = vst [vmem:[%s7019_s22 + $0xf8] sm:$0xff] %v4431_v19  ;;  %v8666_v34 = vld [vmem:[#allocation21_spill] sm:$0xff]  ;;  %v8667_v42 = vld [vmem:[#allocation22_spill] sm:$0xff] }
 0x441   : > { %v2759_v23 = vmax.f32 %v2695_v10, 0.0  ;;  %v8673_v10 = vld [vmem:[#allocation116_spill] sm:$0xff] }
 0x443   : > { %v2823_v9 = vadd.f32 1e-05, %v2759_v23  ;;  %v8675_v23 = vld [vmem:[#allocation105_spill] sm:$0xff] }
 0x445   : > { %5276 = vrsqrt.f32 %v2823_v9  ;;  %v8678_v9 = vld [vmem:[#allocation122_spill] sm:$0xff] }
 0x44f   : > { %v7478_v57 = vpop.xlane.xlu1 %2140 }
 0x451   : > { %3478 = vperm.xlu1 %5039, %v3012_v43   ;;  %v8668_v43 = vld [vmem:[#allocation110_spill] sm:$0xff] }
 0x452   : > { %v7498_v5 = vmul.f32 0.00390625, %v8668_v43  ;;  %v2571_v43 = vmul.f32 0.00390625, %v8673_v10 }
 0x453   : > { %v7484_v47 = vpop.xlane.xlu1 %2460 }
 0x454   : > { %8664 = vst [vmem:[#allocation156_spill] sm:$0xff] %v7484_v47 }
 0x455   : > { %4054 = vperm.xlu1 %5039, %v3204_v59   ;;  %v8670_v59 = vld [vmem:[#allocation170_spill] sm:$0xff] }
 0x457   : > { %v3459_v0 = vpop.permute.xlu1 %3458 }
 0x458   : > { %v3728_v19 = vmul.f32 %v3459_v0, %v8666_v34  ;;  %v3729_v8 = vmul.f32 %v3459_v0, %v8667_v42  ;;  %v8672_v42 = vld [vmem:[#allocation114_spill] sm:$0xff] }
 0x459   : > { %2155 = vadd.xlane.f32.xlu0 %v2154_v14  ;;  %v2633_v14 = vmul.f32 %v7498_v5, %v7498_v5 }
 0x45a   : > { %v3856_v11 = vadd.f32 %v3728_v19, %v8669_v30  ;;  %v3857_v20 = vadd.f32 %v3729_v8, %v8670_v59  ;;  %v7508_v19 = vmul.f32 0.00390625, %v8672_v42  ;;  %v7512_v30 = vmul.f32 0.00390625, %v8674_v37  ;;  %v8679_v37 = vld [vmem:[#allocation109_spill] sm:$0xff] }
 0x45b   : > { %v4035_v54 = vpop.permute.xlu1 %4034  ;;  %v2697_v34 = vsub.f32 %v2569_v22, %v2633_v14  ;;  %v2566_v59 = vmul.f32 0.00390625, %v8675_v23  ;;  %v3141_v42 = vmul.f32 %v7464_v24, %v7442_v28  ;;  %v8681_v24 = vld [vmem:[#allocation125_spill] sm:$0xff] }
 0x45c   : > { %v4304_v17 = vadd.f32 %v4035_v54, %v3856_v11  ;;  %v4305_v31 = vadd.f32 %v4035_v54, %v3857_v20  ;;  %v2635_v54 = vmul.f32 %v7508_v19, %v7508_v19  ;;  %v2630_v22 = vmul.f32 %v7512_v30, %v7512_v30  ;;  %v8676_v20 = vld [vmem:[#allocation107_spill] sm:$0xff] }
 0x45d   : > { %2475 = vadd.xlane.f32.xlu0 %v2474_v62  ;;  %v2761_v8 = vmax.f32 %v2697_v34, 0.0  ;;  %v2573_v34 = vmul.f32 0.00390625, %v8678_v9 }
 0x45e   : > { %v4432_v0 = vmax.f32 %v4304_v17, 0.0  ;;  %v4433_v18 = vmax.f32 %v4305_v31, 0.0  ;;  %v2699_v11 = vsub.f32 %v2571_v43, %v2635_v54  ;;  %v7520_v17 = vmul.f32 0.00390625, %v8676_v20  ;;  %v8677_v31 = vld [vmem:[#allocation119_spill] sm:$0xff] }
 0x45f   : > { %v2825_v62 = vadd.f32 1e-05, %v2761_v8  ;;  %v7523_v14 = vmul.f32 0.00390625, %v8677_v31  ;;  %v5277_v8 = vpop.eup %5276  ;;  %v2694_v10 = vsub.f32 %v2566_v59, %v2630_v22  ;;  %v2568_v54 = vmul.f32 0.00390625, %v8679_v37  ;;  %v3077_v31 = vld [vmem:[%s6404_s15 + $0xa8] sm:$0xff] }
 0x460   : > { %4560 = vst [vmem:[%s7019_s22 + $0x100] sm:$0xff] %v4432_v0  ;;  %4561 = vst [vmem:[%s7019_s22 + $0x108] sm:$0xff] %v4433_v18  ;;  %v3464_v0 = vpop.permute.xlu0 %3463  ;;  %v2763_v18 = vmax.f32 %v2699_v11, 0.0  ;;  %v2632_v43 = vmul.f32 %v7520_v17, %v7520_v17  ;;  %v3205_v9 = vsub.f32 %v3077_v31, %v3141_v42  ;;  %v7538_v22 = vmul.f32 0.00390625, %v8681_v24  ;;  %v8682_v59 = vld [vmem:[#allocation23_spill] sm:$0xff] }
 0x461   : > { %5278 = vrsqrt.f32 %v2825_v62  ;;  %v2637_v23 = vmul.f32 %v7523_v14, %v7523_v14  ;;  %v2951_v62 = vld [vmem:[%s6383_s13 + $0xb8] sm:$0xff]  ;;  %v2758_v2 = vmax.f32 %v2694_v10, 0.0  ;;  %v3730_v37 = vmul.f32 %v3464_v0, %v8682_v59 }
 0x462   : > { %v2827_v11 = vadd.f32 1e-05, %v2763_v18  ;;  %v3015_v29 = vmul.f32 %v5277_v8, %v2951_v62  ;;  %v2696_v28 = vsub.f32 %v2568_v54, %v2632_v43  ;;  %v3731_v55 = vmul.f32 %v3464_v0, %v8683_v52  ;;  %v3079_v0 = vld [vmem:[%s6404_s15 + $0xb8] sm:$0xff]  ;;  %v8687_v62 = vld [vmem:[#allocation171_spill] sm:$0xff] }
 0x463   : > { %v2701_v15 = vsub.f32 %v2573_v34, %v2637_v23  ;;  %v8685_v34 = vld [vmem:[#allocation128_spill] sm:$0xff]  ;;  %v2822_v54 = vadd.f32 1e-05, %v2758_v2  ;;  %v2639_v31 = vmul.f32 %v7538_v22, %v7538_v22  ;;  %v2286_v52 = vmul.f32 %v7397_v56, %v7397_v56 }
 0x464   : > { %5280 = vrsqrt.f32 %v2827_v11  ;;  %v2575_v42 = vmul.f32 0.00390625, %v8685_v34  ;;  %v3143_v10 = vmul.f32 %v3015_v29, %v7482_v6  ;;  %v2760_v23 = vmax.f32 %v2696_v28, 0.0  ;;  %v8689_v28 = vld [vmem:[#allocation113_spill] sm:$0xff] }
 0x465   : > { %v2765_v18 = vmax.f32 %v2701_v15, 0.0  ;;  %v2287_v15 = vmul.f32 %v7403_v60, %v7403_v60  ;;  %v3858_v11 = vadd.f32 %v3730_v37, %v8687_v62  ;;  %v2157_v2 = vadd.f32 %v7403_v60, %v7397_v56  ;;  %v8690_v62 = vld [vmem:[#allocation130_spill] sm:$0xff] }
 0x466   : > { %v2570_v59 = vmul.f32 0.00390625, %v8689_v28  ;;  %5282 = vrsqrt.f32 %v2822_v54 }
 0x467   : > { %v2829_v34 = vadd.f32 1e-05, %v2765_v18  ;;  %v2477_v28 = vadd.f32 %v2287_v15, %v2286_v52 }
 0x469   : > { %5284 = vrsqrt.f32 %v2829_v34 }
 0x46b   : > { %v5279_v43 = vpop.eup %5278 }
 0x46c   : > { %v7533_v20 = vpop.xlane.xlu0 %2143 }
 0x46d   : > { %8680 = vst [vmem:[#allocation94_spill] sm:$0xff] %v7533_v20  ;;  %v7543_v20 = vmul.f32 0.00390625, %v8684_v48  ;;  %v2953_v48 = vld [vmem:[%s6383_s13 + $0xc8] sm:$0xff] }
 0x46e   : > { %v3017_v37 = vmul.f32 %v5279_v43, %v2953_v48  ;;  %v5281_v43 = vpop.eup %5280 }
 0x46f   : > { %v2634_v6 = vmul.f32 %v7543_v20, %v7543_v20 }
 0x470   : > { %v7546_v8 = vpop.xlane.xlu0 %2463 }
 0x471   : > { %8686 = vst [vmem:[#allocation96_spill] sm:$0xff] %v7546_v8  ;;  %v2703_v8 = vsub.f32 %v2575_v42, %v2639_v31  ;;  %v8691_v42 = vld [vmem:[#allocation132_spill] sm:$0xff] }
 0x472   : > { %v2577_v31 = vmul.f32 0.00390625, %v8691_v42 }
 0x473   : > { %4059 = vperm.xlu0 %5038, %v3205_v9   ;;  %v8688_v9 = vld [vmem:[#allocation172_spill] sm:$0xff]  ;;  %v2767_v18 = vmax.f32 %v2703_v8, 0.0 }
 0x474   : > { %v3859_v24 = vadd.f32 %v3731_v55, %v8688_v9  ;;  %v7565_v55 = vmul.f32 0.00390625, %v8690_v62  ;;  %v5283_v62 = vpop.eup %5282 }
 0x475   : > { %v2831_v8 = vadd.f32 1e-05, %v2767_v18  ;;  %v2950_v18 = vld [vmem:[%s6383_s13 + $0xb0] sm:$0xff]  ;;  %v5285_v42 = vpop.eup %5284 }
 0x476   : > { %v2641_v54 = vmul.f32 %v7565_v55, %v7565_v55 }
 0x477   : > { %3493 = vperm.xlu0 %5038, %v3015_v29   ;;  %v3207_v29 = vsub.f32 %v3079_v0, %v3143_v10  ;;  %v3145_v10 = vmul.f32 %v3017_v37, %v7498_v5  ;;  %v2955_v0 = vld [vmem:[%s6383_s13 + $0xd8] sm:$0xff] }
 0x478   : > { %v4040_v40 = vpop.permute.xlu0 %4039  ;;  %v2705_v52 = vsub.f32 %v2577_v31, %v2641_v54  ;;  %v3019_v5 = vmul.f32 %v5281_v43, %v2955_v0  ;;  %v8696_v43 = vld [vmem:[#allocation121_spill] sm:$0xff] }
 0x479   : > { %v4306_v1 = vadd.f32 %v4040_v40, %v3858_v11  ;;  %v4307_v38 = vadd.f32 %v4040_v40, %v3859_v24  ;;  %2158 = vadd.xlane.f32.xlu1 %v2157_v2  ;;  %v2824_v40 = vadd.f32 1e-05, %v2760_v23  ;;  %v2698_v11 = vsub.f32 %v2570_v59, %v2634_v6  ;;  %v8694_v6 = vld [vmem:[#allocation117_spill] sm:$0xff] }
 0x47a   : > { %v2572_v59 = vmul.f32 0.00390625, %v8694_v6  ;;  %v2769_v34 = vmax.f32 %v2705_v52, 0.0  ;;  %v7592_v54 = vmul.f32 0.00390625, %v8696_v43  ;;  %v8697_v52 = vld [vmem:[#allocation138_spill] sm:$0xff]  ;;  %v8698_v6 = vld [vmem:[#allocation123_spill] sm:$0xff] }
 0x47b   : > { %v4434_v9 = vmax.f32 %v4306_v1, 0.0  ;;  %v4435_v60 = vmax.f32 %v4307_v38, 0.0  ;;  %4069 = vperm.xlu0 %5038, %v3207_v29   ;;  %v3081_v1 = vld [vmem:[%s6404_s15 + $0xc8] sm:$0xff]  ;;  %5286 = vrsqrt.f32 %v2824_v40  ;;  %v2762_v23 = vmax.f32 %v2698_v11, 0.0  ;;  %v8695_v29 = vld [vmem:[#allocation136_spill] sm:$0xff]  ;;  %v3083_v40 = vld [vmem:[%s6404_s15 + $0xd8] sm:$0xff] }
 0x47c   : > { %v8692_v38 = vld [vmem:[#allocation115_spill] sm:$0xff]  ;;  %v3209_v15 = vsub.f32 %v3081_v1, %v3145_v10  ;;  %5288 = vrsqrt.f32 %v2831_v8  ;;  %v2833_v1 = vadd.f32 1e-05, %v2769_v34  ;;  %v2952_v34 = vld [vmem:[%s6383_s13 + $0xc0] sm:$0xff] }
 0x47d   : > { %2478 = vadd.xlane.f32.xlu1 %v2477_v28  ;;  %4562 = vst [vmem:[%s7019_s22 + $0x110] sm:$0xff] %v4434_v9  ;;  %4563 = vst [vmem:[%s7019_s22 + $0x118] sm:$0xff] %v4435_v60  ;;  %v7576_v48 = vmul.f32 0.00390625, %v8692_v38  ;;  %v8693_v60 = vld [vmem:[#allocation134_spill] sm:$0xff]  ;;  %v2826_v9 = vadd.f32 1e-05, %v2762_v23  ;;  %v3147_v28 = vmul.f32 %v3019_v5, %v7508_v19  ;;  %v3014_v38 = vmul.f32 %v5283_v62, %v2950_v18 }
 0x47e   : > { %v7579_v24 = vmul.f32 0.00390625, %v8693_v60  ;;  %v2957_v11 = vld [vmem:[%s6383_s13 + $0xe8] sm:$0xff]  ;;  %v7595_v23 = vmul.f32 0.00390625, %v8697_v52  ;;  %v8700_v62 = vld [vmem:[#allocation140_spill] sm:$0xff] }
 0x47f   : > { %3503 = vperm.xlu0 %5038, %v3017_v37   ;;  %v2636_v2 = vmul.f32 %v7576_v48, %v7576_v48  ;;  %v2579_v37 = vmul.f32 0.00390625, %v8695_v29  ;;  %5290 = vrsqrt.f32 %v2826_v9  ;;  %v3211_v8 = vsub.f32 %v3083_v40, %v3147_v28  ;;  %v8699_v29 = vld [vmem:[#allocation127_spill] sm:$0xff] }
 0x480   : > { %v2643_v31 = vmul.f32 %v7579_v24, %v7579_v24  ;;  %v3021_v19 = vmul.f32 %v5285_v42, %v2957_v11  ;;  %5292 = vrsqrt.f32 %v2833_v1  ;;  %v2581_v9 = vmul.f32 0.00390625, %v8700_v62  ;;  %v3078_v42 = vld [vmem:[%s6404_s15 + $0xb0] sm:$0xff] }
 0x481   : > { %v2700_v10 = vsub.f32 %v2572_v59, %v2636_v2  ;;  %v2638_v2 = vmul.f32 %v7592_v54, %v7592_v54  ;;  %v2574_v59 = vmul.f32 0.00390625, %v8698_v6  ;;  %v3142_v18 = vmul.f32 %v3014_v38, %v7512_v30  ;;  %v8702_v6 = vld [vmem:[#allocation129_spill] sm:$0xff] }
 0x482   : > { %v2707_v0 = vsub.f32 %v2579_v37, %v2643_v31  ;;  %v3149_v31 = vmul.f32 %v3021_v19, %v7523_v14  ;;  %v2645_v11 = vmul.f32 %v7595_v23, %v7595_v23 }
 0x483   : > { %4079 = vperm.xlu0 %5038, %v3209_v15   ;;  %v2764_v60 = vmax.f32 %v2700_v10, 0.0  ;;  %v3085_v10 = vld [vmem:[%s6404_s15 + $0xe8] sm:$0xff]  ;;  %v2702_v1 = vsub.f32 %v2574_v59, %v2638_v2  ;;  %v3206_v56 = vsub.f32 %v3078_v42, %v3142_v18 }
 0x484   : > { %v2771_v37 = vmax.f32 %v2707_v0, 0.0  ;;  %v2709_v14 = vsub.f32 %v2581_v9, %v2645_v11  ;;  %v8705_v9 = vld [vmem:[#allocation131_spill] sm:$0xff] }
 0x485   : > { %v5287_v15 = vpop.eup %5286  ;;  %v2828_v52 = vadd.f32 1e-05, %v2764_v60  ;;  %v2766_v59 = vmax.f32 %v2702_v1, 0.0  ;;  %v7626_v11 = vmul.f32 0.00390625, %v8705_v9  ;;  %v8706_v42 = vld [vmem:[#allocation143_spill] sm:$0xff]  ;;  %v8709_v9 = vld [vmem:[#allocation173_spill] sm:$0xff] }
 0x486   : > { %v5289_v40 = vpop.eup %5288  ;;  %v3016_v43 = vmul.f32 %v5287_v15, %v2952_v34  ;;  %v2835_v30 = vadd.f32 1e-05, %v2771_v37  ;;  %v7620_v15 = vmul.f32 0.00390625, %v8704_v16  ;;  %v2954_v37 = vld [vmem:[%s6383_s13 + $0xd0] sm:$0xff]  ;;  %v2773_v18 = vmax.f32 %v2709_v14, 0.0 }
 0x487   : > { %3513 = vperm.xlu0 %5038, %v3019_v5   ;;  %v7601_v5 = vmul.f32 0.00390625, %v8699_v29  ;;  %v2576_v29 = vmul.f32 0.00390625, %v8702_v6  ;;  %5294 = vrsqrt.f32 %v2828_v52  ;;  %v2583_v16 = vmul.f32 0.00390625, %v8706_v42 }
 0x488   : > { %v3144_v60 = vmul.f32 %v3016_v43, %v7520_v17  ;;  %5296 = vrsqrt.f32 %v2835_v30  ;;  %v8708_v17 = vld [vmem:[#allocation26_spill] sm:$0xff]  ;;  %v2830_v30 = vadd.f32 1e-05, %v2766_v59  ;;  %v2837_v26 = vadd.f32 1e-05, %v2773_v18  ;;  %v8712_v59 = vld [vmem:[#allocation145_spill] sm:$0xff] }
 0x489   : > { %v2640_v0 = vmul.f32 %v7601_v5, %v7601_v5  ;;  %v5291_v2 = vpop.eup %5290 }
 0x48a   : > { %v5293_v52 = vpop.eup %5292  ;;  %v3018_v6 = vmul.f32 %v5291_v2, %v2954_v37  ;;  %5298 = vrsqrt.f32 %v2830_v30 }
 0x48b   : > { %4089 = vperm.xlu0 %5038, %v3211_v8   ;;  %v2959_v8 = vld [vmem:[%s6383_s13 + $0xf8] sm:$0xff]  ;;  %v2704_v34 = vsub.f32 %v2576_v29, %v2640_v0  ;;  %v2961_v29 = vld [vmem:[%s6383_s13 + $0x108] sm:$0xff]  ;;  %5300 = vrsqrt.f32 %v2837_v26 }
 0x48c   : > { %v7605_v28 = vpop.xlane.xlu1 %2146  ;;  %v3087_v0 = vld [vmem:[%s6404_s15 + $0xf8] sm:$0xff]  ;;  %v3146_v37 = vmul.f32 %v3018_v6, %v7543_v20  ;;  %v3089_v26 = vld [vmem:[%s6404_s15 + $0x108] sm:$0xff] }
 0x48d   : > { %8701 = vst [vmem:[#allocation9_spill] sm:$0xff] %v7605_v28  ;;  %v3213_v28 = vsub.f32 %v3085_v10, %v3149_v31  ;;  %v2768_v14 = vmax.f32 %v2704_v34, 0.0 }
 0x48e   : > { %3488 = vperm.xlu1 %5039, %v3014_v38   ;;  %v3023_v38 = vmul.f32 %v5289_v40, %v2959_v8 }
 0x48f   : > { %3523 = vperm.xlu0 %5038, %v3021_v19   ;;  %v3080_v19 = vld [vmem:[%s6404_s15 + $0xc0] sm:$0xff]  ;;  %v2832_v18 = vadd.f32 1e-05, %v2768_v14 }
 0x490   : > { %v7617_v62 = vpop.xlane.xlu1 %2466  ;;  %v3151_v8 = vmul.f32 %v3023_v38, %v7538_v22  ;;  %v3208_v1 = vsub.f32 %v3080_v19, %v3144_v60  ;;  %v8711_v22 = vld [vmem:[#allocation133_spill] sm:$0xff]  ;;  %v3025_v19 = vmul.f32 %v5293_v52, %v2961_v29  ;;  %v8714_v29 = vld [vmem:[#allocation135_spill] sm:$0xff] }
 0x491   : > { %8703 = vst [vmem:[#allocation10_spill] sm:$0xff] %v7617_v62  ;;  %v8710_v62 = vld [vmem:[#allocation174_spill] sm:$0xff]  ;;  %v7652_v30 = vmul.f32 0.00390625, %v8714_v29  ;;  %5302 = vrsqrt.f32 %v2832_v18 }
 0x492   : > { %4064 = vperm.xlu1 %5039, %v3206_v56   ;;  %v8707_v56 = vld [vmem:[#allocation25_spill] sm:$0xff]  ;;  %v3215_v2 = vsub.f32 %v3087_v0, %v3151_v8  ;;  %v5295_v8 = vpop.eup %5294  ;;  %v3084_v18 = vld [vmem:[%s6404_s15 + $0xe0] sm:$0xff] }
 0x493   : > { %4099 = vperm.xlu0 %5038, %v3213_v28   ;;  %v2647_v28 = vmul.f32 %v7620_v15, %v7620_v15  ;;  %v5297_v0 = vpop.eup %5296 }
 0x494   : > { %v3469_v31 = vpop.permute.xlu1 %3468 }
 0x495   : > { %v3732_v40 = vmul.f32 %v3469_v31, %v8707_v56  ;;  %v3733_v10 = vmul.f32 %v3469_v31, %v8708_v17  ;;  %v2642_v31 = vmul.f32 %v7626_v11, %v7626_v11  ;;  %v2578_v17 = vmul.f32 0.00390625, %v8711_v22 }
 0x496   : > { %3498 = vperm.xlu1 %5039, %v3016_v43   ;;  %v2711_v47 = vsub.f32 %v2583_v16, %v2647_v28  ;;  %v8713_v16 = vld [vmem:[#allocation147_spill] sm:$0xff]  ;;  %v3153_v28 = vmul.f32 %v3025_v19, %v7565_v55 }
 0x497   : > { %3533 = vperm.xlu0 %5038, %v3023_v38   ;;  %v3860_v42 = vadd.f32 %v3732_v40, %v8709_v9  ;;  %v3861_v56 = vadd.f32 %v3733_v10, %v8710_v62  ;;  %v7642_v38 = vmul.f32 0.00390625, %v8712_v59  ;;  %v2585_v40 = vmul.f32 0.00390625, %v8713_v16  ;;  %v3082_v10 = vld [vmem:[%s6404_s15 + $0xd0] sm:$0xff] }
 0x498   : > { %v4045_v25 = vpop.permute.xlu1 %4044  ;;  %v2706_v52 = vsub.f32 %v2578_v17, %v2642_v31  ;;  %v3210_v14 = vsub.f32 %v3082_v10, %v3146_v37  ;;  %v7659_v31 = vmul.f32 0.00390625, %v7076_v53  ;;  %v3217_v22 = vsub.f32 %v3089_v26, %v3153_v28  ;;  %v5299_v53 = vpop.eup %5298  ;;  %v2958_v16 = vld [vmem:[%s6383_s13 + $0xf0] sm:$0xff]  ;;  %v2965_v28 = vld [vmem:[%s6383_s13 + $0x128] sm:$0xff] }
 0x499   : > { %v4308_v43 = vadd.f32 %v4045_v25, %v3860_v42  ;;  %v4309_v60 = vadd.f32 %v4045_v25, %v3861_v56  ;;  %v2775_v25 = vmax.f32 %v2711_v47, 0.0  ;;  %v2649_v20 = vmul.f32 %v7642_v38, %v7642_v38  ;;  %v2963_v47 = vld [vmem:[%s6383_s13 + $0x118] sm:$0xff]  ;;  %v3474_v37 = vpop.permute.xlu0 %3473 }
 0x49a   : > { %4074 = vperm.xlu1 %5039, %v3208_v1   ;;  %v2956_v1 = vld [vmem:[%s6383_s13 + $0xe0] sm:$0xff]  ;;  %v2770_v55 = vmax.f32 %v2706_v52, 0.0  ;;  %v3027_v17 = vmul.f32 %v5297_v0, %v2963_v47  ;;  %v3091_v52 = vld [vmem:[%s6404_s15 + $0x118] sm:$0xff]  ;;  %v3022_v29 = vmul.f32 %v5299_v53, %v2958_v16 }
 0x49b   : > { %v4436_v62 = vmax.f32 %v4308_v43, 0.0  ;;  %v4437_v34 = vmax.f32 %v4309_v60, 0.0  ;;  %4109 = vperm.xlu0 %5038, %v3215_v2   ;;  %v2839_v9 = vadd.f32 1e-05, %v2775_v25  ;;  %v2713_v42 = vsub.f32 %v2585_v40, %v2649_v20  ;;  %v5301_v40 = vpop.eup %5300 }
 0x49c   : > { %v3020_v56 = vmul.f32 %v5295_v8, %v2956_v1  ;;  %v2644_v43 = vmul.f32 %v7652_v30, %v7652_v30  ;;  %v2587_v2 = vmul.f32 0.00390625, %v7078_v51  ;;  %v3155_v25 = vmul.f32 %v3027_v17, %v7579_v24  ;;  %v8716_v51 = vld [vmem:[#allocation139_spill] sm:$0xff] }
 0x49d   : > { %4564 = vst [vmem:[%s7019_s22 + $0x120] sm:$0xff] %v4436_v62  ;;  %4565 = vst [vmem:[%s7019_s22 + $0x128] sm:$0xff] %v4437_v34  ;;  %5304 = vrsqrt.f32 %v2839_v9  ;;  %v2834_v62 = vadd.f32 1e-05, %v2770_v55  ;;  %v2651_v34 = vmul.f32 %v7659_v31, %v7659_v31  ;;  %v7672_v8 = vmul.f32 0.00390625, %v8716_v51  ;;  %v2967_v51 = vld [vmem:[%s6383_s13 + $0x138] sm:$0xff] }
 0x49e   : > { %3508 = vperm.xlu1 %5039, %v3018_v6   ;;  %v8715_v6 = vld [vmem:[#allocation137_spill] sm:$0xff]  ;;  %v3148_v59 = vmul.f32 %v3020_v56, %v7576_v48  ;;  %v7677_v20 = vmul.f32 0.00390625, %v7141_v12  ;;  %v3219_v26 = vsub.f32 %v3091_v52, %v3155_v25  ;;  %v3029_v47 = vmul.f32 %v5301_v40, %v2965_v28  ;;  %v3093_v40 = vld [vmem:[%s6404_s15 + $0x128] sm:$0xff]  ;;  %v8719_v28 = vld [vmem:[#allocation146_spill] sm:$0xff] }
 0x49f   : > { %3543 = vperm.xlu0 %5038, %v3025_v19   ;;  %v2580_v60 = vmul.f32 0.00390625, %v8715_v6  ;;  %v2777_v19 = vmax.f32 %v2713_v42, 0.0  ;;  %v2715_v1 = vsub.f32 %v2587_v2, %v2651_v34  ;;  %5306 = vrsqrt.f32 %v2834_v62  ;;  %v3086_v62 = vld [vmem:[%s6404_s15 + $0xf0] sm:$0xff] }
 0x4a0   : > { %v3212_v0 = vsub.f32 %v3084_v18, %v3148_v59  ;;  %v2646_v42 = vmul.f32 %v7672_v8, %v7672_v8  ;;  %v2589_v12 = vmul.f32 0.00390625, %v7146_v63  ;;  %v2653_v59 = vmul.f32 %v7677_v20, %v7677_v20 }
 0x4a1   : > { %v2708_v10 = vsub.f32 %v2580_v60, %v2644_v43  ;;  %v2841_v48 = vadd.f32 1e-05, %v2777_v19  ;;  %v2779_v6 = vmax.f32 %v2715_v1, 0.0  ;;  %v2960_v60 = vld [vmem:[%s6383_s13 + $0x100] sm:$0xff]  ;;  %v3150_v19 = vmul.f32 %v3022_v29, %v7592_v54 }
 0x4a2   : > { %4084 = vperm.xlu1 %5039, %v3210_v14   ;;  %v5303_v14 = vpop.eup %5302  ;;  %v3157_v34 = vmul.f32 %v3029_v47, %v7595_v23  ;;  %v2584_v54 = vmul.f32 0.00390625, %v8719_v28 }
 0x4a3   : > { %4119 = vperm.xlu0 %5038, %v3217_v22   ;;  %v2772_v9 = vmax.f32 %v2708_v10, 0.0  ;;  %5308 = vrsqrt.f32 %v2841_v48  ;;  %v3024_v10 = vmul.f32 %v5303_v14, %v2960_v60  ;;  %v2843_v1 = vadd.f32 1e-05, %v2779_v6 }
 0x4a4   : > { %v2717_v48 = vsub.f32 %v2589_v12, %v2653_v59 }
 0x4a5   : > { %v2836_v25 = vadd.f32 1e-05, %v2772_v9  ;;  %v3214_v9 = vsub.f32 %v3086_v62, %v3150_v19  ;;  %v8722_v19 = vld [vmem:[#allocation175_spill] sm:$0xff]  ;;  %v3088_v62 = vld [vmem:[%s6404_s15 + $0x100] sm:$0xff] }
 0x4a6   : > { %3518 = vperm.xlu1 %5039, %v3020_v56   ;;  %v8717_v56 = vld [vmem:[#allocation141_spill] sm:$0xff]  ;;  %v2781_v60 = vmax.f32 %v2717_v48, 0.0 }
 0x4a7   : > { %3553 = vperm.xlu0 %5038, %v3027_v17   ;;  %v2582_v55 = vmul.f32 0.00390625, %v8717_v56  ;;  %v8718_v17 = vld [vmem:[#allocation144_spill] sm:$0xff]  ;;  %v5305_v18 = vpop.eup %5304  ;;  %5310 = vrsqrt.f32 %v2836_v25 }
 0x4a8   : > { %v7685_v43 = vmul.f32 0.00390625, %v8718_v17  ;;  %v3152_v17 = vmul.f32 %v3024_v10, %v7601_v5  ;;  %5312 = vrsqrt.f32 %v2843_v1  ;;  %v2845_v48 = vadd.f32 1e-05, %v2781_v60 }
 0x4a9   : > { %v2150_v24 = vpop.xlane.xlu0 %2149  ;;  %v2710_v16 = vsub.f32 %v2582_v55, %v2646_v42  ;;  %v3221_v42 = vsub.f32 %v3093_v40, %v3157_v34  ;;  %v3031_v55 = vmul.f32 %v5305_v18, %v2967_v51  ;;  %v5307_v6 = vpop.eup %5306  ;;  %v2962_v34 = vld [vmem:[%s6383_s13 + $0x110] sm:$0xff]  ;;  %v7713_v18 = vmul.f32 0.00390625, %v7068_v50  ;;  %v3095_v51 = vld [vmem:[%s6404_s15 + $0x138] sm:$0xff] }
 0x4aa   : > { %v7682_v22 = vmul.f32 0.00390625, %v2150_v24  ;;  %4094 = vperm.xlu1 %5039, %v3212_v0   ;;  %v2648_v52 = vmul.f32 %v7685_v43, %v7685_v43  ;;  %v8720_v0 = vld [vmem:[#allocation27_spill] sm:$0xff]  ;;  %v3216_v50 = vsub.f32 %v3088_v62, %v3152_v17  ;;  %v3026_v1 = vmul.f32 %v5307_v6, %v2962_v34  ;;  %v3090_v6 = vld [vmem:[%s6404_s15 + $0x110] sm:$0xff] }
 0x4ab   : > { %4129 = vperm.xlu0 %5038, %v3219_v26   ;;  %v3734_v24 = vmul.f32 %v3474_v37, %v8720_v0  ;;  %v8721_v26 = vld [vmem:[#allocation28_spill] sm:$0xff]  ;;  %v3159_v25 = vmul.f32 %v3031_v55, %v7620_v15 }
 0x4ac   : > { %v2668_v2 = vmul.f32 %v7682_v22, %v7682_v22  ;;  %v3735_v23 = vmul.f32 %v3474_v37, %v8721_v26  ;;  %v2712_v12 = vsub.f32 %v2584_v54, %v2648_v52  ;;  %v2591_v37 = vmul.f32 0.00390625, %v7207_v39  ;;  %v2969_v52 = vld [vmem:[%s6383_s13 + $0x148] sm:$0xff] }
 0x4ad   : > { %v2470_v53 = vpop.xlane.xlu0 %2469  ;;  %v3862_v59 = vadd.f32 %v3734_v24, %v8722_v19  ;;  %v3223_v26 = vsub.f32 %v3095_v51, %v3159_v25  ;;  %v2971_v19 = vld [vmem:[%s6383_s13 + $0x158] sm:$0xff] }
 0x4ae   : > { %v2604_v63 = vmul.f32 0.00390625, %v2470_v53  ;;  %3528 = vperm.xlu1 %5039, %v3022_v29   ;;  %v7704_v29 = vmul.f32 0.00390625, %v7205_v36  ;;  %v8723_v53 = vld [vmem:[#allocation176_spill] sm:$0xff]  ;;  %v2776_v54 = vmax.f32 %v2712_v12, 0.0  ;;  %v2964_v12 = vld [vmem:[%s6383_s13 + $0x120] sm:$0xff] }
 0x4af   : > { %3563 = vperm.xlu0 %5038, %v3029_v47   ;;  %v2774_v47 = vmax.f32 %v2710_v16, 0.0  ;;  %v3863_v36 = vadd.f32 %v3735_v23, %v8723_v53  ;;  %v5309_v16 = vpop.eup %5308 }
 0x4b0   : > { %v2732_v56 = vsub.f32 %v2604_v63, %v2668_v2  ;;  %v2655_v63 = vmul.f32 %v7704_v29, %v7704_v29  ;;  %v3033_v23 = vmul.f32 %v5309_v16, %v2969_v52 }
 0x4b1   : > { %v2838_v28 = vadd.f32 1e-05, %v2774_v47 }
 0x4b2   : > { %v2796_v14 = vmax.f32 %v2732_v56, 0.0  ;;  %4104 = vperm.xlu1 %5039, %v3214_v9   ;;  %v2719_v0 = vsub.f32 %v2591_v37, %v2655_v63  ;;  %v2650_v56 = vmul.f32 %v7713_v18, %v7713_v18  ;;  %v7724_v9 = vmul.f32 0.00390625, %v7262_v61 }
 0x4b3   : > { %4139 = vperm.xlu0 %5038, %v3221_v42   ;;  %v3154_v42 = vmul.f32 %v3026_v1, %v7626_v11  ;;  %v3161_v61 = vmul.f32 %v3033_v23, %v7642_v38  ;;  %v7734_v37 = vmul.f32 0.00390625, %v7124_v4  ;;  %v3097_v11 = vld [vmem:[%s6404_s15 + $0x148] sm:$0xff]  ;;  %v7742_v38 = vmul.f32 0.00390625, %v7319_v58 }
 0x4b4   : > { %v2860_v2 = vadd.f32 1e-05, %v2796_v14  ;;  %v2840_v14 = vadd.f32 1e-05, %v2776_v54  ;;  %v2783_v17 = vmax.f32 %v2719_v0, 0.0 }
 0x4b5   : > { %v4050_v5 = vpop.permute.xlu0 %4049  ;;  %v3218_v53 = vsub.f32 %v3090_v6, %v3154_v42  ;;  %v3225_v4 = vsub.f32 %v3097_v11, %v3161_v61  ;;  %v2652_v63 = vmul.f32 %v7734_v37, %v7734_v37  ;;  %v2659_v54 = vmul.f32 %v7742_v38, %v7742_v38 }
 0x4b6   : > { %5314 = vrsqrt.f32 %v2860_v2  ;;  %v4310_v39 = vadd.f32 %v4050_v5, %v3862_v59  ;;  %v4311_v40 = vadd.f32 %v4050_v5, %v3863_v36  ;;  %3538 = vperm.xlu1 %5039, %v3024_v10   ;;  %v2586_v10 = vmul.f32 0.00390625, %v7074_v46  ;;  %v2988_v59 = vld [vmem:[%s6383_s13 + $0x1e0] sm:$0xff] }
 0x4b7   : > { %3573 = vperm.xlu0 %5038, %v3031_v55   ;;  %5316 = vrsqrt.f32 %v2838_v28  ;;  %v5311_v55 = vpop.eup %5310  ;;  %v2593_v46 = vmul.f32 0.00390625, %v7269_v41  ;;  %v2657_v2 = vmul.f32 %v7724_v9, %v7724_v9  ;;  %v2847_v41 = vadd.f32 1e-05, %v2783_v17 }
 0x4b8   : > { %v4438_v15 = vmax.f32 %v4310_v39, 0.0  ;;  %v4439_v24 = vmax.f32 %v4311_v40, 0.0  ;;  %5318 = vrsqrt.f32 %v2845_v48  ;;  %v5313_v47 = vpop.eup %5312  ;;  %v2714_v60 = vsub.f32 %v2586_v10, %v2650_v56 }
 0x4b9   : > { %5320 = vrsqrt.f32 %v2840_v14  ;;  %v2721_v62 = vsub.f32 %v2593_v46, %v2657_v2  ;;  %v3028_v34 = vmul.f32 %v5311_v55, %v2964_v12  ;;  %v3035_v5 = vmul.f32 %v5313_v47, %v2971_v19  ;;  %v2968_v46 = vld [vmem:[%s6383_s13 + $0x140] sm:$0xff] }
 0x4ba   : > { %4114 = vperm.xlu1 %5039, %v3216_v50   ;;  %4566 = vst [vmem:[%s7019_s22 + $0x130] sm:$0xff] %v4438_v15  ;;  %4567 = vst [vmem:[%s7019_s22 + $0x138] sm:$0xff] %v4439_v24  ;;  %v2778_v16 = vmax.f32 %v2714_v60, 0.0  ;;  %v2588_v39 = vmul.f32 0.00390625, %v7137_v35  ;;  %v2595_v40 = vmul.f32 0.00390625, %v7326_v33  ;;  %5322 = vrsqrt.f32 %v2847_v41  ;;  %v3092_v50 = vld [vmem:[%s6404_s15 + $0x120] sm:$0xff] }
 0x4bb   : > { %4149 = vperm.xlu0 %5038, %v3223_v26   ;;  %v2785_v51 = vmax.f32 %v2721_v62, 0.0  ;;  %v3156_v52 = vmul.f32 %v3028_v34, %v7652_v30  ;;  %v3163_v35 = vmul.f32 %v3035_v5, %v7659_v31  ;;  %v3099_v15 = vld [vmem:[%s6404_s15 + $0x158] sm:$0xff]  ;;  %v7763_v24 = vmul.f32 0.00390625, %v7184_v27 }
 0x4bc   : > { %v2842_v33 = vadd.f32 1e-05, %v2778_v16  ;;  %v2716_v0 = vsub.f32 %v2588_v39, %v2652_v63  ;;  %v2723_v26 = vsub.f32 %v2595_v40, %v2659_v54  ;;  %v7768_v17 = vmul.f32 0.00390625, %v7376_v7  ;;  %v3094_v7 = vld [vmem:[%s6404_s15 + $0x130] sm:$0xff]  ;;  %v8724_v39 = vld [vmem:[#allocation29_spill] sm:$0xff] }
 0x4bd   : > { %v2849_v30 = vadd.f32 1e-05, %v2785_v51  ;;  %v3227_v42 = vsub.f32 %v3099_v15, %v3163_v35  ;;  %v2654_v27 = vmul.f32 %v7763_v24, %v7763_v24  ;;  %v2590_v6 = vmul.f32 0.00390625, %v7198_v44  ;;  %v3101_v44 = vld [vmem:[%s6404_s15 + $0x168] sm:$0xff]  ;;  %v8725_v51 = vld [vmem:[#allocation30_spill] sm:$0xff]  ;;  %v2970_v15 = vld [vmem:[%s6383_s13 + $0x150] sm:$0xff] }
 0x4be   : > { %3548 = vperm.xlu1 %5039, %v3026_v1   ;;  %v2966_v1 = vld [vmem:[%s6383_s13 + $0x130] sm:$0xff]  ;;  %5324 = vrsqrt.f32 %v2842_v33  ;;  %v2780_v14 = vmax.f32 %v2716_v0, 0.0  ;;  %v2787_v47 = vmax.f32 %v2723_v26, 0.0  ;;  %v2597_v61 = vmul.f32 0.00390625, %v7383_v3  ;;  %v8727_v33 = vld [vmem:[#allocation178_spill] sm:$0xff] }
 0x4bf   : > { %3583 = vperm.xlu0 %5038, %v3033_v23   ;;  %v3220_v23 = vsub.f32 %v3092_v50, %v3156_v52  ;;  %5326 = vrsqrt.f32 %v2849_v30  ;;  %v2718_v41 = vsub.f32 %v2590_v6, %v2654_v27  ;;  %v7785_v62 = vmul.f32 0.00390625, %v7240_v49 }
 0x4c0   : > { %v5315_v36 = vpop.eup %5314  ;;  %v2851_v3 = vadd.f32 1e-05, %v2787_v47  ;;  %v7789_v63 = vmul.f32 0.00390625, %v7430_v45  ;;  %v2592_v54 = vmul.f32 0.00390625, %v7246_v32  ;;  %v2599_v45 = vmul.f32 0.00390625, %v7433_v21  ;;  %v2977_v21 = vld [vmem:[%s6383_s13 + $0x188] sm:$0xff] }
 0x4c1   : > { %v7744_v25 = vmul.f32 %v5315_v36, %v2988_v59  ;;  %v5317_v28 = vpop.eup %5316  ;;  %v2844_v59 = vadd.f32 1e-05, %v2780_v14  ;;  %v2975_v36 = vld [vmem:[%s6383_s13 + $0x178] sm:$0xff]  ;;  %v2782_v52 = vmax.f32 %v2718_v41, 0.0 }
 0x4c2   : > { %4124 = vperm.xlu1 %5039, %v3218_v53   ;;  %v5319_v48 = vpop.eup %5318  ;;  %v3030_v56 = vmul.f32 %v5317_v28, %v2966_v1  ;;  %v2661_v53 = vmul.f32 %v7768_v17, %v7768_v17  ;;  %v2656_v28 = vmul.f32 %v7785_v62, %v7785_v62  ;;  %v8726_v1 = vld [vmem:[#allocation177_spill] sm:$0xff]  ;;  %v2663_v32 = vmul.f32 %v7789_v63, %v7789_v63 }
 0x4c3   : > { %4159 = vperm.xlu0 %5038, %v3225_v4   ;;  %v7752_v58 = vmul.f32 %v7744_v25, %v7682_v22  ;;  %v2973_v22 = vld [vmem:[%s6383_s13 + $0x168] sm:$0xff]  ;;  %v5321_v55 = vpop.eup %5320  ;;  %5328 = vrsqrt.f32 %v2844_v59 }
 0x4c4   : > { %v3037_v31 = vmul.f32 %v5319_v48, %v2973_v22  ;;  %v3158_v12 = vmul.f32 %v3030_v56, %v7672_v8  ;;  %v3032_v11 = vmul.f32 %v5321_v55, %v2968_v46  ;;  %v5323_v19 = vpop.eup %5322  ;;  %v2725_v8 = vsub.f32 %v2597_v61, %v2661_v53 }
 0x4c5   : > { %5330 = vrsqrt.f32 %v2851_v3  ;;  %v2846_v55 = vadd.f32 1e-05, %v2782_v52  ;;  %v2720_v14 = vsub.f32 %v2592_v54, %v2656_v28  ;;  %v7807_v46 = vmul.f32 0.00390625, %v7297_v13 }
 0x4c6   : > { %3558 = vperm.xlu1 %5039, %v3028_v34   ;;  %v3165_v2 = vmul.f32 %v3037_v31, %v7677_v20  ;;  %v3222_v34 = vsub.f32 %v3094_v7, %v3158_v12  ;;  %v3160_v16 = vmul.f32 %v3032_v11, %v7685_v43  ;;  %v3096_v43 = vld [vmem:[%s6404_s15 + $0x140] sm:$0xff]  ;;  %v2789_v35 = vmax.f32 %v2725_v8, 0.0  ;;  %v3098_v8 = vld [vmem:[%s6404_s15 + $0x150] sm:$0xff] }
 0x4c7   : > { %3593 = vperm.xlu0 %5038, %v3035_v5   ;;  %v3039_v5 = vmul.f32 %v5323_v19, %v2975_v36  ;;  %v2727_v6 = vsub.f32 %v2599_v45, %v2663_v32  ;;  %5332 = vrsqrt.f32 %v2846_v55  ;;  %v2658_v13 = vmul.f32 %v7807_v46, %v7807_v46  ;;  %v8728_v19 = vld [vmem:[#allocation3_spill] sm:$0xff]  ;;  %v8729_v36 = vld [vmem:[#allocation156_spill] sm:$0xff] }
 0x4c8   : > { %v3229_v20 = vsub.f32 %v3101_v44, %v3165_v2  ;;  %v5325_v50 = vpop.eup %5324  ;;  %v7810_v2 = vmul.f32 0.00390625, %v7478_v57  ;;  %v2594_v59 = vmul.f32 0.00390625, %v8728_v19  ;;  %v2601_v57 = vmul.f32 0.00390625, %v8729_v36  ;;  %v8734_v55 = vld [vmem:[#allocation87_spill] sm:$0xff] }
 0x4c9   : > { %v7765_v10 = vpop.xlane.xlu1 %2152  ;;  %v3167_v26 = vmul.f32 %v3039_v5, %v7704_v29  ;;  %v5327_v30 = vpop.eup %5326  ;;  %v3034_v27 = vmul.f32 %v5325_v50, %v2970_v15  ;;  %v2853_v29 = vadd.f32 1e-05, %v2789_v35  ;;  %v2791_v44 = vmax.f32 %v2727_v6, 0.0  ;;  %v8731_v35 = vld [vmem:[#allocation5_spill] sm:$0xff]  ;;  %v8733_v15 = vld [vmem:[#allocation10_spill] sm:$0xff]  ;;  %v2981_v6 = vld [vmem:[%s6383_s13 + $0x1a8] sm:$0xff] }
 0x4ca   : > { %4134 = vperm.xlu1 %5039, %v3220_v23   ;;  %v3041_v7 = vmul.f32 %v5327_v30, %v2977_v21  ;;  %v2596_v45 = vmul.f32 0.00390625, %v8731_v35 }
 0x4cb   : > { %4169 = vperm.xlu0 %5038, %v3227_v42   ;;  %v3224_v42 = vsub.f32 %v3096_v43, %v3160_v16  ;;  %5334 = vrsqrt.f32 %v2853_v29  ;;  %v3162_v41 = vmul.f32 %v3034_v27, %v7713_v18  ;;  %v2665_v16 = vmul.f32 %v7810_v2, %v7810_v2  ;;  %v3107_v29 = vld [vmem:[%s6404_s15 + $0x198] sm:$0xff] }
 0x4cc   : > { %v2855_v52 = vadd.f32 1e-05, %v2791_v44  ;;  %v8735_v44 = vld [vmem:[#allocation7_spill] sm:$0xff] }
 0x4cd   : > { %v7776_v60 = vpop.xlane.xlu1 %2472  ;;  %v5329_v53 = vpop.eup %5328  ;;  %v2729_v28 = vsub.f32 %v2601_v57, %v2665_v16  ;;  %v3226_v18 = vsub.f32 %v3098_v8, %v3162_v41  ;;  %v2598_v36 = vmul.f32 0.00390625, %v8735_v44  ;;  %v8736_v8 = vld [vmem:[#allocation31_spill] sm:$0xff] }
 0x4ce   : > { %3568 = vperm.xlu1 %5039, %v3030_v56   ;;  %v2605_v57 = vmul.f32 0.00390625, %v7776_v60  ;;  %v2985_v44 = vld [vmem:[%s6383_s13 + $0x1c8] sm:$0xff] }
 0x4cf   : > { %3603 = vperm.xlu0 %5038, %v3037_v31   ;;  %v3103_v31 = vld [vmem:[%s6404_s15 + $0x178] sm:$0xff]  ;;  %v5331_v3 = vpop.eup %5330 }
 0x4d0   : > { %v3231_v12 = vsub.f32 %v3103_v31, %v3167_v26  ;;  %v3484_v26 = vpop.permute.xlu0 %3483 }
 0x4d1   : > { %v3479_v4 = vpop.permute.xlu1 %3478  ;;  %v5333_v32 = vpop.eup %5332 }
 0x4d2   : > { %v3736_v40 = vmul.f32 %v3479_v4, %v8724_v39  ;;  %v3737_v49 = vmul.f32 %v3479_v4, %v8725_v51  ;;  %4144 = vperm.xlu1 %5039, %v3222_v34   ;;  %v3169_v34 = vmul.f32 %v3041_v7, %v7724_v9  ;;  %v2972_v4 = vld [vmem:[%s6383_s13 + $0x160] sm:$0xff]  ;;  %v3105_v39 = vld [vmem:[%s6404_s15 + $0x188] sm:$0xff] }
 0x4d3   : > { %4179 = vperm.xlu0 %5038, %v3229_v20   ;;  %v8730_v20 = vld [vmem:[#allocation90_spill] sm:$0xff]  ;;  %v3036_v54 = vmul.f32 %v5329_v53, %v2972_v4  ;;  %v8737_v4 = vld [vmem:[#allocation32_spill] sm:$0xff] }
 0x4d4   : > { %v3864_v48 = vadd.f32 %v3736_v40, %v8726_v1  ;;  %v3865_v0 = vadd.f32 %v3737_v49, %v8727_v33  ;;  %v2979_v40 = vld [vmem:[%s6383_s13 + $0x198] sm:$0xff]  ;;  %v2722_v49 = vsub.f32 %v2594_v59, %v2658_v13  ;;  %v3233_v43 = vsub.f32 %v3105_v39, %v3169_v34  ;;  %v3102_v39 = vld [vmem:[%s6404_s15 + $0x170] sm:$0xff] }
 0x4d5   : > { %v4055_v22 = vpop.permute.xlu1 %4054  ;;  %v3043_v9 = vmul.f32 %v5331_v3, %v2979_v40  ;;  %v8732_v1 = vld [vmem:[#allocation9_spill] sm:$0xff]  ;;  %v3164_v30 = vmul.f32 %v3036_v54, %v7734_v37  ;;  %v5335_v31 = vpop.eup %5334  ;;  %v3738_v34 = vmul.f32 %v3484_v26, %v8736_v8 }
 0x4d6   : > { %v4312_v23 = vadd.f32 %v4055_v22, %v3864_v48  ;;  %v4313_v56 = vadd.f32 %v4055_v22, %v3865_v0  ;;  %3578 = vperm.xlu1 %5039, %v3032_v11   ;;  %v2784_v11 = vmax.f32 %v2720_v14, 0.0  ;;  %v7833_v48 = vmul.f32 0.00390625, %v8732_v1  ;;  %v8739_v1 = vld [vmem:[#allocation179_spill] sm:$0xff] }
 0x4d7   : > { %3613 = vperm.xlu0 %5038, %v3039_v5   ;;  %v7823_v5 = vmul.f32 0.00390625, %v8730_v20  ;;  %v2786_v33 = vmax.f32 %v2722_v49, 0.0  ;;  %v2793_v0 = vmax.f32 %v2729_v28, 0.0  ;;  %v2603_v22 = vmul.f32 0.00390625, %v8733_v15  ;;  %v8738_v28 = vld [vmem:[#allocation8_spill] sm:$0xff] }
 0x4d8   : > { %v4440_v47 = vmax.f32 %v4312_v23, 0.0  ;;  %v4441_v61 = vmax.f32 %v4313_v56, 0.0  ;;  %v2848_v51 = vadd.f32 1e-05, %v2784_v11  ;;  %v3100_v23 = vld [vmem:[%s6404_s15 + $0x160] sm:$0xff]  ;;  %v3171_v56 = vmul.f32 %v3043_v9, %v7742_v38 }
 0x4d9   : > { %v2660_v50 = vmul.f32 %v7823_v5, %v7823_v5  ;;  %v7841_v14 = vmul.f32 0.00390625, %v8734_v55  ;;  %v7850_v11 = vmul.f32 0.00390625, %v7765_v10  ;;  %v3045_v19 = vmul.f32 %v5335_v31, %v2981_v6 }
 0x4da   : > { %4154 = vperm.xlu1 %5039, %v3224_v42   ;;  %4568 = vst [vmem:[%s7019_s22 + $0x140] sm:$0xff] %v4440_v47  ;;  %4569 = vst [vmem:[%s7019_s22 + $0x148] sm:$0xff] %v4441_v61  ;;  %5336 = vrsqrt.f32 %v2848_v51  ;;  %v2974_v42 = vld [vmem:[%s6383_s13 + $0x170] sm:$0xff]  ;;  %v2850_v47 = vadd.f32 1e-05, %v2786_v33  ;;  %v3235_v13 = vsub.f32 %v3107_v29, %v3171_v56  ;;  %v3739_v20 = vmul.f32 %v3484_v26, %v8737_v4  ;;  %v2976_v51 = vld [vmem:[%s6383_s13 + $0x180] sm:$0xff] }
 0x4db   : > { %4189 = vperm.xlu0 %5038, %v3231_v12   ;;  %5338 = vrsqrt.f32 %v2855_v52  ;;  %v2724_v21 = vsub.f32 %v2596_v45, %v2660_v50  ;;  %v2857_v61 = vadd.f32 1e-05, %v2793_v0  ;;  %v3038_v38 = vmul.f32 %v5333_v32, %v2974_v42 }
 0x4dc   : > { %v2662_v53 = vmul.f32 %v7841_v14, %v7841_v14  ;;  %5340 = vrsqrt.f32 %v2850_v47  ;;  %v2669_v16 = vmul.f32 %v7850_v11, %v7850_v11  ;;  %v3173_v40 = vmul.f32 %v3045_v19, %v7768_v17  ;;  %v8740_v17 = vld [vmem:[#allocation180_spill] sm:$0xff]  ;;  %v3104_v47 = vld [vmem:[%s6404_s15 + $0x180] sm:$0xff] }
 0x4dd   : > { %v2788_v59 = vmax.f32 %v2724_v21, 0.0  ;;  %5342 = vrsqrt.f32 %v2857_v61  ;;  %v3166_v10 = vmul.f32 %v3038_v38, %v7763_v24  ;;  %v3109_v24 = vld [vmem:[%s6404_s15 + $0x1a8] sm:$0xff]  ;;  %v3866_v33 = vadd.f32 %v3738_v34, %v8739_v1  ;;  %v8745_v34 = vld [vmem:[#allocation181_spill] sm:$0xff]  ;;  %v3106_v1 = vld [vmem:[%s6404_s15 + $0x190] sm:$0xff] }
 0x4de   : > { %3588 = vperm.xlu1 %5039, %v3034_v27   ;;  %v2667_v27 = vmul.f32 %v7833_v48, %v7833_v48  ;;  %v2726_v52 = vsub.f32 %v2598_v36, %v2662_v53  ;;  %v3867_v0 = vadd.f32 %v3739_v20, %v8740_v17  ;;  %v3237_v15 = vsub.f32 %v3109_v24, %v3173_v40  ;;  %v3111_v53 = vld [vmem:[%s6404_s15 + $0x1b8] sm:$0xff]  ;;  %v8746_v20 = vld [vmem:[#allocation182_spill] sm:$0xff] }
 0x4df   : > { %3623 = vperm.xlu0 %5038, %v3041_v7   ;;  %v3228_v7 = vsub.f32 %v3100_v23, %v3164_v30  ;;  %v2852_v49 = vadd.f32 1e-05, %v2788_v59  ;;  %v3230_v35 = vsub.f32 %v3102_v39, %v3166_v10  ;;  %v8741_v23 = vld [vmem:[#allocation155_spill] sm:$0xff]  ;;  %v8744_v10 = vld [vmem:[#allocation36_spill] sm:$0xff]  ;;  %v2980_v17 = vld [vmem:[%s6383_s13 + $0x1a0] sm:$0xff] }
 0x4e0   : > { %v2731_v37 = vsub.f32 %v2603_v22, %v2667_v27  ;;  %v2790_v26 = vmax.f32 %v2726_v52, 0.0  ;;  %v2600_v56 = vmul.f32 0.00390625, %v8741_v23  ;;  %v8748_v23 = vld [vmem:[#allocation39_spill] sm:$0xff] }
 0x4e1   : > { %5344 = vrsqrt.f32 %v2852_v49 }
 0x4e2   : > { %4164 = vperm.xlu1 %5039, %v3226_v18   ;;  %v2795_v41 = vmax.f32 %v2731_v37, 0.0  ;;  %v7865_v18 = vmul.f32 0.00390625, %v8738_v28  ;;  %v2978_v37 = vld [vmem:[%s6383_s13 + $0x190] sm:$0xff] }
 0x4e3   : > { %4199 = vperm.xlu0 %5038, %v3233_v43   ;;  %v2983_v43 = vld [vmem:[%s6383_s13 + $0x1b8] sm:$0xff] }
 0x4e4   : > { %v5337_v3 = vpop.eup %5336  ;;  %v2859_v50 = vadd.f32 1e-05, %v2795_v41  ;;  %v2664_v30 = vmul.f32 %v7865_v18, %v7865_v18 }
 0x4e5   : > { %v5339_v60 = vpop.eup %5338  ;;  %v3040_v45 = vmul.f32 %v5337_v3, %v2976_v51 }
 0x4e6   : > { %3598 = vperm.xlu1 %5039, %v3036_v54   ;;  %v7847_v12 = vpop.xlane.xlu0 %2155  ;;  %v3047_v22 = vmul.f32 %v5339_v60, %v2983_v43  ;;  %5346 = vrsqrt.f32 %v2859_v50  ;;  %v5341_v27 = vpop.eup %5340  ;;  %v2728_v36 = vsub.f32 %v2600_v56, %v2664_v30  ;;  %v8747_v60 = vld [vmem:[#allocation96_spill] sm:$0xff]  ;;  %v2987_v30 = vld [vmem:[%s6383_s13 + $0x1d8] sm:$0xff] }
 0x4e7   : > { %3633 = vperm.xlu0 %5038, %v3043_v9   ;;  %v2733_v9 = vsub.f32 %v2605_v57, %v2669_v16  ;;  %v3168_v55 = vmul.f32 %v3040_v45, %v7785_v62  ;;  %v8743_v57 = vld [vmem:[#allocation35_spill] sm:$0xff]  ;;  %v3042_v8 = vmul.f32 %v5341_v27, %v2978_v37  ;;  %v2602_v49 = vmul.f32 0.00390625, %v8747_v60 }
 0x4e8   : > { %v3175_v61 = vmul.f32 %v3047_v22, %v7789_v63  ;;  %v2792_v28 = vmax.f32 %v2728_v36, 0.0 }
 0x4e9   : > { %v2797_v42 = vmax.f32 %v2733_v9, 0.0  ;;  %v3232_v63 = vsub.f32 %v3104_v47, %v3168_v55  ;;  %v3170_v50 = vmul.f32 %v3042_v8, %v7807_v46  ;;  %v8750_v55 = vld [vmem:[#allocation183_spill] sm:$0xff] }
 0x4ea   : > { %4174 = vperm.xlu1 %5039, %v3228_v7   ;;  %v7867_v54 = vpop.xlane.xlu0 %2475  ;;  %v5343_v7 = vpop.eup %5342  ;;  %v3239_v39 = vsub.f32 %v3111_v53, %v3175_v61 }
 0x4eb   : > { %4209 = vperm.xlu0 %5038, %v3235_v13   ;;  %v8742_v13 = vld [vmem:[#allocation94_spill] sm:$0xff]  ;;  %v2861_v62 = vadd.f32 1e-05, %v2797_v42  ;;  %v3049_v40 = vmul.f32 %v5343_v7, %v2985_v44  ;;  %v5345_v9 = vpop.eup %5344  ;;  %v8749_v42 = vld [vmem:[#allocation40_spill] sm:$0xff]  ;;  %v3234_v46 = vsub.f32 %v3106_v1, %v3170_v50 }
 0x4ee   : > { %3608 = vperm.xlu1 %5039, %v3038_v38   ;;  %v2854_v38 = vadd.f32 1e-05, %v2790_v26  ;;  %v3113_v26 = vld [vmem:[%s6404_s15 + $0x1c8] sm:$0xff] }
 0x4ef   : > { %3643 = vperm.xlu0 %5038, %v3045_v19   ;;  %v7881_v19 = vmul.f32 0.00390625, %v8742_v13 }
 0x4f0   : > { %5348 = vrsqrt.f32 %v2854_v38 }
 0x4f1   : > { %v2666_v51 = vmul.f32 %v7881_v19, %v7881_v19  ;;  %5350 = vrsqrt.f32 %v2861_v62  ;;  %v3108_v62 = vld [vmem:[%s6404_s15 + $0x1a0] sm:$0xff] }
 0x4f2   : > { %v4060_v32 = vpop.permute.xlu0 %4059  ;;  %4184 = vperm.xlu1 %5039, %v3230_v35  }
 0x4f3   : > { %v4314_v31 = vadd.f32 %v4060_v32, %v3866_v33  ;;  %v4315_v21 = vadd.f32 %v4060_v32, %v3867_v0  ;;  %4219 = vperm.xlu0 %5038, %v3237_v15   ;;  %v3177_v33 = vmul.f32 %v3049_v40, %v7810_v2  ;;  %v5347_v0 = vpop.eup %5346  ;;  %v2730_v15 = vsub.f32 %v2602_v49, %v2666_v51  ;;  %v8751_v2 = vld [vmem:[#allocation184_spill] sm:$0xff]  ;;  %v8754_v49 = vld [vmem:[#allocation185_spill] sm:$0xff] }
 0x4f4   : > { %v2856_v32 = vadd.f32 1e-05, %v2792_v28  ;;  %v3051_v47 = vmul.f32 %v5347_v0, %v2987_v30 }
 0x4f5   : > { %v4442_v29 = vmax.f32 %v4314_v31, 0.0  ;;  %v4443_v6 = vmax.f32 %v4315_v21, 0.0  ;;  %v3044_v21 = vmul.f32 %v5345_v9, %v2980_v17  ;;  %v2794_v61 = vmax.f32 %v2730_v15, 0.0 }
 0x4f6   : > { %v3494_v59 = vpop.permute.xlu0 %3493  ;;  %3618 = vperm.xlu1 %5039, %v3040_v45   ;;  %5352 = vrsqrt.f32 %v2856_v32  ;;  %v2606_v9 = vmul.f32 0.00390625, %v7867_v54  ;;  %v3110_v32 = vld [vmem:[%s6404_s15 + $0x1b0] sm:$0xff] }
 0x4f7   : > { %v3742_v41 = vmul.f32 %v3494_v59, %v8743_v57  ;;  %v3743_v3 = vmul.f32 %v3494_v59, %v8744_v10  ;;  %3653 = vperm.xlu0 %5038, %v3047_v22   ;;  %4570 = vst [vmem:[%s7019_s22 + $0x150] sm:$0xff] %v4442_v29  ;;  %4571 = vst [vmem:[%s7019_s22 + $0x158] sm:$0xff] %v4443_v6  ;;  %v3241_v6 = vsub.f32 %v3113_v26, %v3177_v33  ;;  %v2989_v10 = vld [vmem:[%s6383_s13 + $0x1e8] sm:$0xff] }
 0x4f8   : > { %v3172_v59 = vmul.f32 %v3044_v21, %v7823_v5  ;;  %v3179_v57 = vmul.f32 %v3051_v47, %v7833_v48 }
 0x4f9   : > { %v3870_v4 = vadd.f32 %v3742_v41, %v8745_v34  ;;  %v3871_v16 = vadd.f32 %v3743_v3, %v8746_v20  ;;  %v2982_v41 = vld [vmem:[%s6383_s13 + $0x1b0] sm:$0xff]  ;;  %v2858_v3 = vadd.f32 1e-05, %v2794_v61  ;;  %v8752_v20 = vld [vmem:[#allocation43_spill] sm:$0xff] }
 0x4fa   : > { %v4070_v52 = vpop.permute.xlu0 %4069  ;;  %4194 = vperm.xlu1 %5039, %v3232_v63   ;;  %v5349_v13 = vpop.eup %5348  ;;  %v7912_v63 = vmul.f32 0.00390625, %v7847_v12  ;;  %v3236_v48 = vsub.f32 %v3108_v62, %v3172_v59  ;;  %v8755_v12 = vld [vmem:[#allocation186_spill] sm:$0xff] }
 0x4fb   : > { %v4318_v24 = vadd.f32 %v4070_v52, %v3870_v4  ;;  %v4319_v43 = vadd.f32 %v4070_v52, %v3871_v16  ;;  %4229 = vperm.xlu0 %5038, %v3239_v39   ;;  %v5351_v53 = vpop.eup %5350  ;;  %v3115_v4 = vld [vmem:[%s6404_s15 + $0x1d8] sm:$0xff]  ;;  %v8753_v16 = vld [vmem:[#allocation44_spill] sm:$0xff]  ;;  %v3046_v51 = vmul.f32 %v5349_v13, %v2982_v41  ;;  %5354 = vrsqrt.f32 %v2858_v3  ;;  %v8760_v13 = vld [vmem:[#allocation187_spill] sm:$0xff] }
 0x4fc   : > { %v3053_v60 = vmul.f32 %v5351_v53, %v2989_v10  ;;  %v8761_v53 = vld [vmem:[#allocation188_spill] sm:$0xff]  ;;  %v8763_v10 = vld [vmem:[#allocation190_spill] sm:$0xff] }
 0x4fd   : > { %v4446_v35 = vmax.f32 %v4318_v24, 0.0  ;;  %v4447_v45 = vmax.f32 %v4319_v43, 0.0  ;;  %v3243_v24 = vsub.f32 %v3115_v4, %v3179_v57  ;;  %v2670_v43 = vmul.f32 %v7912_v63, %v7912_v63 }
 0x4fe   : > { %v3504_v22 = vpop.permute.xlu0 %3503  ;;  %3628 = vperm.xlu1 %5039, %v3042_v8   ;;  %v3174_v0 = vmul.f32 %v3046_v51, %v7841_v14  ;;  %v3181_v15 = vmul.f32 %v3053_v60, %v7850_v11 }
 0x4ff   : > { %v3746_v56 = vmul.f32 %v3504_v22, %v8748_v23  ;;  %v3747_v31 = vmul.f32 %v3504_v22, %v8749_v42  ;;  %3663 = vperm.xlu0 %5038, %v3049_v40   ;;  %4574 = vst [vmem:[%s7019_s22 + $0x170] sm:$0xff] %v4446_v35  ;;  %4575 = vst [vmem:[%s7019_s22 + $0x178] sm:$0xff] %v4447_v45  ;;  %v3117_v23 = vld [vmem:[%s6404_s15 + $0x1e8] sm:$0xff]  ;;  %v2734_v42 = vsub.f32 %v2606_v9, %v2670_v43 }
 0x500   : > { %v5353_v22 = vpop.eup %5352  ;;  %v3238_v61 = vsub.f32 %v3110_v32, %v3174_v0  ;;  %v8764_v9 = vld [vmem:[#allocation51_spill] sm:$0xff]  ;;  %v8770_v32 = vld [vmem:[#allocation193_spill] sm:$0xff] }
 0x501   : > { %v3874_v27 = vadd.f32 %v3746_v56, %v8750_v55  ;;  %v3875_v29 = vadd.f32 %v3747_v31, %v8751_v2  ;;  %v2984_v56 = vld [vmem:[%s6383_s13 + $0x1c0] sm:$0xff]  ;;  %v8756_v55 = vld [vmem:[#allocation47_spill] sm:$0xff]  ;;  %v8757_v2 = vld [vmem:[#allocation48_spill] sm:$0xff]  ;;  %v2798_v57 = vmax.f32 %v2734_v42, 0.0 }
 0x502   : > { %v4080_v37 = vpop.permute.xlu0 %4079  ;;  %4204 = vperm.xlu1 %5039, %v3234_v46  }
 0x503   : > { %v4322_v7 = vadd.f32 %v4080_v37, %v3874_v27  ;;  %v4323_v38 = vadd.f32 %v4080_v37, %v3875_v29  ;;  %4239 = vperm.xlu0 %5038, %v3241_v6   ;;  %v8758_v29 = vld [vmem:[#allocation33_spill] sm:$0xff]  ;;  %v8759_v6 = vld [vmem:[#allocation34_spill] sm:$0xff]  ;;  %v3245_v37 = vsub.f32 %v3117_v23, %v3181_v15 }
 0x505   : > { %v4450_v44 = vmax.f32 %v4322_v7, 0.0  ;;  %v4451_v36 = vmax.f32 %v4323_v38, 0.0  ;;  %v3048_v7 = vmul.f32 %v5353_v22, %v2984_v56  ;;  %v8768_v22 = vld [vmem:[#allocation191_spill] sm:$0xff]  ;;  %v8771_v56 = vld [vmem:[#allocation194_spill] sm:$0xff] }
 0x506   : > { %v3514_v8 = vpop.permute.xlu0 %3513  ;;  %3638 = vperm.xlu1 %5039, %v3044_v21   ;;  %v2159_v34 = vpop.xlane.xlu1 %2158 }
 0x507   : > { %v3750_v5 = vmul.f32 %v3514_v8, %v8752_v20  ;;  %v3751_v39 = vmul.f32 %v3514_v8, %v8753_v16  ;;  %v7917_v40 = vmul.f32 0.00390625, %v2159_v34  ;;  %3673 = vperm.xlu0 %5038, %v3051_v47   ;;  %4578 = vst [vmem:[%s7019_s22 + $0x190] sm:$0xff] %v4450_v44  ;;  %4579 = vst [vmem:[%s7019_s22 + $0x198] sm:$0xff] %v4451_v36  ;;  %v8762_v36 = vld [vmem:[#allocation189_spill] sm:$0xff] }
 0x509   : > { %v3878_v52 = vadd.f32 %v3750_v5, %v8754_v49  ;;  %v3879_v28 = vadd.f32 %v3751_v39, %v8755_v12  ;;  %v2671_v45 = vmul.f32 %v7917_v40, %v7917_v40  ;;  %v5355_v5 = vpop.eup %5354  ;;  %v3176_v39 = vmul.f32 %v3048_v7, %v7865_v18  ;;  %v3112_v49 = vld [vmem:[%s6404_s15 + $0x1c0] sm:$0xff] }
 0x50a   : > { %v4090_v50 = vpop.permute.xlu0 %4089  ;;  %4214 = vperm.xlu1 %5039, %v3236_v48   ;;  %v2479_v35 = vpop.xlane.xlu1 %2478  ;;  %v2862_v12 = vadd.f32 1e-05, %v2798_v57  ;;  %v8767_v18 = vld [vmem:[#allocation38_spill] sm:$0xff]  ;;  %v8774_v57 = vld [vmem:[#allocation41_spill] sm:$0xff] }
 0x50b   : > { %v4326_v1 = vadd.f32 %v4090_v50, %v3878_v52  ;;  %v4327_v33 = vadd.f32 %v4090_v50, %v3879_v28  ;;  %v2607_v17 = vmul.f32 0.00390625, %v2479_v35  ;;  %4249 = vperm.xlu0 %5038, %v3243_v24   ;;  %v2986_v52 = vld [vmem:[%s6383_s13 + $0x1d0] sm:$0xff]  ;;  %v3240_v0 = vsub.f32 %v3112_v49, %v3176_v39  ;;  %v8778_v39 = vld [vmem:[#allocation197_spill] sm:$0xff] }
 0x50c   : > { %v8765_v35 = vld [vmem:[#allocation52_spill] sm:$0xff]  ;;  %v3050_v15 = vmul.f32 %v5355_v5, %v2986_v52 }
 0x50d   : > { %v4454_v26 = vmax.f32 %v4326_v1, 0.0  ;;  %v4455_v54 = vmax.f32 %v4327_v33, 0.0  ;;  %v2735_v30 = vsub.f32 %v2607_v17, %v2671_v45  ;;  %v8766_v1 = vld [vmem:[#allocation37_spill] sm:$0xff]  ;;  %v8777_v5 = vld [vmem:[#allocation196_spill] sm:$0xff] }
 0x50e   : > { %v3524_v31 = vpop.permute.xlu0 %3523  ;;  %3648 = vperm.xlu1 %5039, %v3046_v51   ;;  %v3489_v46 = vpop.permute.xlu1 %3488 }
 0x50f   : > { %v2799_v21 = vmax.f32 %v2735_v30, 0.0  ;;  %v3754_v27 = vmul.f32 %v3524_v31, %v8756_v55  ;;  %v3755_v14 = vmul.f32 %v3524_v31, %v8757_v2  ;;  %v3740_v11 = vmul.f32 %v3489_v46, %v8758_v29  ;;  %3683 = vperm.xlu0 %5038, %v3053_v60   ;;  %4582 = vst [vmem:[%s7019_s22 + $0x1b0] sm:$0xff] %v4454_v26 }
 0x510   : > { %4583 = vst [vmem:[%s7019_s22 + $0x1b8] sm:$0xff] %v4455_v54  ;;  %v3741_v47 = vmul.f32 %v3489_v46, %v8759_v6  ;;  %v8769_v54 = vld [vmem:[#allocation192_spill] sm:$0xff]  ;;  %v3178_v29 = vmul.f32 %v3050_v15, %v7881_v19 }
 0x511   : > { %v2863_v38 = vadd.f32 1e-05, %v2799_v21  ;;  %v3882_v59 = vadd.f32 %v3754_v27, %v8760_v13  ;;  %v3883_v44 = vadd.f32 %v3755_v14, %v8761_v53  ;;  %v3868_v62 = vadd.f32 %v3740_v11, %v8762_v36  ;;  %v2991_v14 = vld [vmem:[%s6383_s13 + $0x1f8] sm:$0xff]  ;;  %v8772_v53 = vld [vmem:[#allocation55_spill] sm:$0xff]  ;;  %v8773_v36 = vld [vmem:[#allocation56_spill] sm:$0xff] }
 0x512   : > { %v4100_v41 = vpop.permute.xlu0 %4099  ;;  %4224 = vperm.xlu1 %5039, %v3238_v61   ;;  %v3869_v3 = vadd.f32 %v3741_v47, %v8763_v10  ;;  %v4065_v8 = vpop.permute.xlu1 %4064 }
 0x513   : > { %5356 = vrsqrt.f32 %v2863_v38  ;;  %v4330_v34 = vadd.f32 %v4100_v41, %v3882_v59  ;;  %v4331_v4 = vadd.f32 %v4100_v41, %v3883_v44  ;;  %v4316_v20 = vadd.f32 %v4065_v8, %v3868_v62  ;;  %4259 = vperm.xlu0 %5038, %v3245_v37   ;;  %v8775_v41 = vld [vmem:[#allocation42_spill] sm:$0xff] }
 0x514   : > { %v4317_v16 = vadd.f32 %v4065_v8, %v3869_v3  ;;  %5358 = vrsqrt.f32 %v2862_v12  ;;  %v3119_v3 = vld [vmem:[%s6404_s15 + $0x1f8] sm:$0xff] }
 0x515   : > { %v4458_v48 = vmax.f32 %v4330_v34, 0.0  ;;  %v4459_v51 = vmax.f32 %v4331_v4, 0.0  ;;  %v4444_v60 = vmax.f32 %v4316_v20, 0.0  ;;  %v8776_v4 = vld [vmem:[#allocation195_spill] sm:$0xff] }
 0x516   : > { %v4445_v28 = vmax.f32 %v4317_v16, 0.0  ;;  %v3534_v24 = vpop.permute.xlu0 %3533  ;;  %3658 = vperm.xlu1 %5039, %v3048_v7   ;;  %v3499_v43 = vpop.permute.xlu1 %3498  ;;  %v3114_v7 = vld [vmem:[%s6404_s15 + $0x1d0] sm:$0xff] }
 0x517   : > { %v3758_v50 = vmul.f32 %v3534_v24, %v8764_v9  ;;  %v3759_v45 = vmul.f32 %v3534_v24, %v8765_v35  ;;  %v3744_v33 = vmul.f32 %v3499_v43, %v8766_v1  ;;  %v3745_v17 = vmul.f32 %v3499_v43, %v8767_v18  ;;  %4572 = vst [vmem:[%s7019_s22 + $0x160] sm:$0xff] %v4444_v60  ;;  %v2990_v18 = vld [vmem:[%s6383_s13 + $0x1f0] sm:$0xff] }
 0x518   : > { %4586 = vst [vmem:[%s7019_s22 + $0x1d0] sm:$0xff] %v4458_v48  ;;  %4587 = vst [vmem:[%s7019_s22 + $0x1d8] sm:$0xff] %v4459_v51  ;;  %v3242_v8 = vsub.f32 %v3114_v7, %v3178_v29  ;;  %v8779_v51 = vld [vmem:[#allocation198_spill] sm:$0xff] }
 0x519   : > { %4573 = vst [vmem:[%s7019_s22 + $0x168] sm:$0xff] %v4445_v28  ;;  %v3886_v26 = vadd.f32 %v3758_v50, %v8768_v22  ;;  %v3887_v30 = vadd.f32 %v3759_v45, %v8769_v54  ;;  %v3872_v23 = vadd.f32 %v3744_v33, %v8770_v32  ;;  %v3873_v42 = vadd.f32 %v3745_v17, %v8771_v56  ;;  %v3116_v33 = vld [vmem:[%s6404_s15 + $0x1e0] sm:$0xff] }
 0x51a   : > { %v4110_v31 = vpop.permute.xlu0 %4109  ;;  %4234 = vperm.xlu1 %5039, %v3240_v0   ;;  %v4075_v46 = vpop.permute.xlu1 %4074 }
 0x51b   : > { %v4334_v21 = vadd.f32 %v4110_v31, %v3886_v26  ;;  %v4335_v55 = vadd.f32 %v4110_v31, %v3887_v30  ;;  %v4320_v27 = vadd.f32 %v4075_v46, %v3872_v23  ;;  %v4321_v2 = vadd.f32 %v4075_v46, %v3873_v42  ;;  %v8781_v26 = vld [vmem:[#allocation60_spill] sm:$0xff]  ;;  %v8782_v30 = vld [vmem:[#allocation45_spill] sm:$0xff]  ;;  %v8783_v23 = vld [vmem:[#allocation46_spill] sm:$0xff] }
 0x51c   : > { %v3244_v42 = vsub.f32 %v3116_v33, %v7752_v58  ;;  %v8784_v46 = vld [vmem:[#allocation199_spill] sm:$0xff] }
 0x51d   : > { %v5357_v11 = vpop.eup %5356  ;;  %v4462_v6 = vmax.f32 %v4334_v21, 0.0  ;;  %v4463_v47 = vmax.f32 %v4335_v55, 0.0  ;;  %v4448_v61 = vmax.f32 %v4320_v27, 0.0  ;;  %v4449_v37 = vmax.f32 %v4321_v2, 0.0  ;;  %v8785_v55 = vld [vmem:[#allocation200_spill] sm:$0xff]  ;;  %v8786_v27 = vld [vmem:[#allocation201_spill] sm:$0xff] }
 0x51e   : > { %v3544_v38 = vpop.permute.xlu0 %3543  ;;  %3668 = vperm.xlu1 %5039, %v3050_v15   ;;  %v3509_v13 = vpop.permute.xlu1 %3508  ;;  %v3055_v59 = vmul.f32 %v5357_v11, %v2991_v14  ;;  %v8780_v15 = vld [vmem:[#allocation59_spill] sm:$0xff]  ;;  %v8787_v14 = vld [vmem:[#allocation202_spill] sm:$0xff] }
 0x51f   : > { %v3762_v44 = vmul.f32 %v3544_v38, %v8772_v53  ;;  %v3763_v62 = vmul.f32 %v3544_v38, %v8773_v36  ;;  %v3748_v19 = vmul.f32 %v3509_v13, %v8774_v57  ;;  %v3749_v10 = vmul.f32 %v3509_v13, %v8775_v41  ;;  %4576 = vst [vmem:[%s7019_s22 + $0x180] sm:$0xff] %v4448_v61  ;;  %v8788_v57 = vld [vmem:[#allocation63_spill] sm:$0xff]  ;;  %v8789_v41 = vld [vmem:[#allocation64_spill] sm:$0xff] }
 0x520   : > { %4577 = vst [vmem:[%s7019_s22 + $0x188] sm:$0xff] %v4449_v37  ;;  %4590 = vst [vmem:[%s7019_s22 + $0x1f0] sm:$0xff] %v4462_v6  ;;  %3693 = vperm.xlu0 %5038, %v3055_v59   ;;  %v3183_v34 = vmul.f32 %v3055_v59, %v7917_v40  ;;  %v5359_v40 = vpop.eup %5358 }
 0x521   : > { %4591 = vst [vmem:[%s7019_s22 + $0x1f8] sm:$0xff] %v4463_v47  ;;  %v3890_v20 = vadd.f32 %v3762_v44, %v8776_v4  ;;  %v3891_v16 = vadd.f32 %v3763_v62, %v8777_v5  ;;  %v3876_v48 = vadd.f32 %v3748_v19, %v8778_v39  ;;  %v3877_v60 = vadd.f32 %v3749_v10, %v8779_v51  ;;  %v3118_v44 = vld [vmem:[%s6404_s15 + $0x1f0] sm:$0xff] }
 0x522   : > { %v4120_v49 = vpop.permute.xlu0 %4119  ;;  %4244 = vperm.xlu1 %5039, %v3242_v8   ;;  %v4085_v52 = vpop.permute.xlu1 %4084  ;;  %v3247_v12 = vsub.f32 %v3119_v3, %v3183_v34  ;;  %v3054_v31 = vmul.f32 %v5359_v40, %v2990_v18  ;;  %v8790_v3 = vld [vmem:[#allocation49_spill] sm:$0xff]  ;;  %v8791_v34 = vld [vmem:[#allocation50_spill] sm:$0xff]  ;;  %v8796_v18 = vld [vmem:[#allocation67_spill] sm:$0xff] }
 0x523   : > { %v4338_v28 = vadd.f32 %v4120_v49, %v3890_v20  ;;  %v4339_v24 = vadd.f32 %v4120_v49, %v3891_v16  ;;  %v4324_v43 = vadd.f32 %v4085_v52, %v3876_v48  ;;  %v4325_v9 = vadd.f32 %v4085_v52, %v3877_v60  ;;  %v8792_v20 = vld [vmem:[#allocation203_spill] sm:$0xff]  ;;  %v8793_v16 = vld [vmem:[#allocation204_spill] sm:$0xff]  ;;  %v8794_v48 = vld [vmem:[#allocation205_spill] sm:$0xff] }
 0x524   : > { %4269 = vperm.xlu0 %5038, %v3247_v12   ;;  %v3182_v58 = vmul.f32 %v3054_v31, %v7912_v63  ;;  %v8795_v60 = vld [vmem:[#allocation206_spill] sm:$0xff] }
 0x525   : > { %v4466_v50 = vmax.f32 %v4338_v28, 0.0  ;;  %v4467_v35 = vmax.f32 %v4339_v24, 0.0  ;;  %v4452_v45 = vmax.f32 %v4324_v43, 0.0  ;;  %v4453_v1 = vmax.f32 %v4325_v9, 0.0 }
 0x526   : > { %v3554_v17 = vpop.permute.xlu0 %3553  ;;  %3678 = vperm.xlu1 %5039, %v7744_v25   ;;  %v3519_v0 = vpop.permute.xlu1 %3518  ;;  %v3246_v63 = vsub.f32 %v3118_v44, %v3182_v58  ;;  %v8806_v44 = vld [vmem:[#allocation57_spill] sm:$0xff] }
 0x527   : > { %v3766_v22 = vmul.f32 %v3554_v17, %v8780_v15  ;;  %v3767_v54 = vmul.f32 %v3554_v17, %v8781_v26  ;;  %v3752_v32 = vmul.f32 %v3519_v0, %v8782_v30  ;;  %v3753_v56 = vmul.f32 %v3519_v0, %v8783_v23  ;;  %4580 = vst [vmem:[%s7019_s22 + $0x1a0] sm:$0xff] %v4452_v45  ;;  %v8797_v0 = vld [vmem:[#allocation68_spill] sm:$0xff] }
 0x528   : > { %4581 = vst [vmem:[%s7019_s22 + $0x1a8] sm:$0xff] %v4453_v1  ;;  %4594 = vst [vmem:[%s7019_s22 + $0x210] sm:$0xff] %v4466_v50 }
 0x529   : > { %4595 = vst [vmem:[%s7019_s22 + $0x218] sm:$0xff] %v4467_v35  ;;  %v3894_v21 = vadd.f32 %v3766_v22, %v8784_v46  ;;  %v3895_v25 = vadd.f32 %v3767_v54, %v8785_v55  ;;  %v3880_v2 = vadd.f32 %v3752_v32, %v8786_v27  ;;  %v3881_v29 = vadd.f32 %v3753_v56, %v8787_v14  ;;  %v8798_v22 = vld [vmem:[#allocation53_spill] sm:$0xff]  ;;  %v8799_v54 = vld [vmem:[#allocation54_spill] sm:$0xff]  ;;  %v8800_v32 = vld [vmem:[#allocation207_spill] sm:$0xff] }
 0x52a   : > { %v4130_v11 = vpop.permute.xlu0 %4129  ;;  %4254 = vperm.xlu1 %5039, %v3244_v42   ;;  %v4095_v6 = vpop.permute.xlu1 %4094  ;;  %v8801_v56 = vld [vmem:[#allocation208_spill] sm:$0xff] }
 0x52b   : > { %v4342_v47 = vadd.f32 %v4130_v11, %v3894_v21  ;;  %v4343_v61 = vadd.f32 %v4130_v11, %v3895_v25  ;;  %v4328_v37 = vadd.f32 %v4095_v6, %v3880_v2  ;;  %v4329_v7 = vadd.f32 %v4095_v6, %v3881_v29  ;;  %v8803_v21 = vld [vmem:[#allocation210_spill] sm:$0xff] }
 0x52d   : > { %v4470_v38 = vmax.f32 %v4342_v47, 0.0  ;;  %v4471_v13 = vmax.f32 %v4343_v61, 0.0  ;;  %v4456_v59 = vmax.f32 %v4328_v37, 0.0  ;;  %v4457_v53 = vmax.f32 %v4329_v7, 0.0 }
 0x52e   : > { %v3564_v36 = vpop.permute.xlu0 %3563  ;;  %3688 = vperm.xlu1 %5039, %v3054_v31   ;;  %v3529_v62 = vpop.permute.xlu1 %3528  ;;  %v8802_v31 = vld [vmem:[#allocation209_spill] sm:$0xff] }
 0x52f   : > { %v3770_v19 = vmul.f32 %v3564_v36, %v8788_v57  ;;  %v3771_v10 = vmul.f32 %v3564_v36, %v8789_v41  ;;  %v3756_v8 = vmul.f32 %v3529_v62, %v8790_v3  ;;  %v3757_v4 = vmul.f32 %v3529_v62, %v8791_v34  ;;  %4584 = vst [vmem:[%s7019_s22 + $0x1c0] sm:$0xff] %v4456_v59  ;;  %v8805_v59 = vld [vmem:[#allocation72_spill] sm:$0xff]  ;;  %v8807_v62 = vld [vmem:[#allocation58_spill] sm:$0xff] }
 0x530   : > { %4585 = vst [vmem:[%s7019_s22 + $0x1c8] sm:$0xff] %v4457_v53  ;;  %4598 = vst [vmem:[%s7019_s22 + $0x230] sm:$0xff] %v4470_v38  ;;  %v8804_v38 = vld [vmem:[#allocation71_spill] sm:$0xff] }
 0x531   : > { %4599 = vst [vmem:[%s7019_s22 + $0x238] sm:$0xff] %v4471_v13  ;;  %v3898_v5 = vadd.f32 %v3770_v19, %v8792_v20  ;;  %v3899_v39 = vadd.f32 %v3771_v10, %v8793_v16  ;;  %v3884_v51 = vadd.f32 %v3756_v8, %v8794_v48  ;;  %v3885_v49 = vadd.f32 %v3757_v4, %v8795_v60  ;;  %v8808_v19 = vld [vmem:[#allocation211_spill] sm:$0xff]  ;;  %v8809_v10 = vld [vmem:[#allocation212_spill] sm:$0xff]  ;;  %v8810_v8 = vld [vmem:[#allocation213_spill] sm:$0xff] }
 0x532   : > { %v4140_v52 = vpop.permute.xlu0 %4139  ;;  %4264 = vperm.xlu1 %5039, %v3246_v63   ;;  %v4105_v12 = vpop.permute.xlu1 %4104  ;;  %v8811_v4 = vld [vmem:[#allocation214_spill] sm:$0xff] }
 0x533   : > { %v4346_v28 = vadd.f32 %v4140_v52, %v3898_v5  ;;  %v4347_v24 = vadd.f32 %v4140_v52, %v3899_v39  ;;  %v4332_v43 = vadd.f32 %v4105_v12, %v3884_v51  ;;  %v4333_v9 = vadd.f32 %v4105_v12, %v3885_v49 }
 0x535   : > { %v4474_v40 = vmax.f32 %v4346_v28, 0.0  ;;  %v4475_v50 = vmax.f32 %v4347_v24, 0.0  ;;  %v4460_v35 = vmax.f32 %v4332_v43, 0.0  ;;  %v4461_v45 = vmax.f32 %v4333_v9, 0.0  ;;  %v8812_v43 = vld [vmem:[#allocation75_spill] sm:$0xff] }
 0x536   : > { %v3574_v1 = vpop.permute.xlu0 %3573  ;;  %v3539_v33 = vpop.permute.xlu1 %3538 }
 0x537   : > { %v3774_v17 = vmul.f32 %v3574_v1, %v8796_v18  ;;  %v3775_v15 = vmul.f32 %v3574_v1, %v8797_v0  ;;  %v3760_v26 = vmul.f32 %v3539_v33, %v8798_v22  ;;  %v3761_v30 = vmul.f32 %v3539_v33, %v8799_v54  ;;  %4588 = vst [vmem:[%s7019_s22 + $0x1e0] sm:$0xff] %v4460_v35  ;;  %v8814_v35 = vld [vmem:[#allocation61_spill] sm:$0xff]  ;;  %v8815_v1 = vld [vmem:[#allocation62_spill] sm:$0xff]  ;;  %v8816_v18 = vld [vmem:[#allocation215_spill] sm:$0xff] }
 0x538   : > { %4589 = vst [vmem:[%s7019_s22 + $0x1e8] sm:$0xff] %v4461_v45  ;;  %4602 = vst [vmem:[%s7019_s22 + $0x250] sm:$0xff] %v4474_v40  ;;  %v8813_v40 = vld [vmem:[#allocation76_spill] sm:$0xff]  ;;  %v8818_v22 = vld [vmem:[#allocation217_spill] sm:$0xff] }
 0x539   : > { %4603 = vst [vmem:[%s7019_s22 + $0x258] sm:$0xff] %v4475_v50  ;;  %v3902_v23 = vadd.f32 %v3774_v17, %v8800_v32  ;;  %v3903_v42 = vadd.f32 %v3775_v15, %v8801_v56  ;;  %v3888_v46 = vadd.f32 %v3760_v26, %v8802_v31  ;;  %v3889_v55 = vadd.f32 %v3761_v30, %v8803_v21  ;;  %v8817_v0 = vld [vmem:[#allocation216_spill] sm:$0xff]  ;;  %v8819_v54 = vld [vmem:[#allocation218_spill] sm:$0xff] }
 0x53a   : > { %v4150_v25 = vpop.permute.xlu0 %4149  ;;  %v4115_v27 = vpop.permute.xlu1 %4114 }
 0x53b   : > { %v4350_v2 = vadd.f32 %v4150_v25, %v3902_v23  ;;  %v4351_v14 = vadd.f32 %v4150_v25, %v3903_v42  ;;  %v4336_v29 = vadd.f32 %v4115_v27, %v3888_v46  ;;  %v4337_v11 = vadd.f32 %v4115_v27, %v3889_v55 }
 0x53d   : > { %v4478_v6 = vmax.f32 %v4350_v2, 0.0  ;;  %v4479_v47 = vmax.f32 %v4351_v14, 0.0  ;;  %v4464_v61 = vmax.f32 %v4336_v29, 0.0  ;;  %v4465_v37 = vmax.f32 %v4337_v11, 0.0  ;;  %v8820_v29 = vld [vmem:[#allocation79_spill] sm:$0xff] }
 0x53e   : > { %v3584_v7 = vpop.permute.xlu0 %3583  ;;  %v3549_v58 = vpop.permute.xlu1 %3548 }
 0x53f   : > { %v3778_v13 = vmul.f32 %v3584_v7, %v8804_v38  ;;  %v3779_v53 = vmul.f32 %v3584_v7, %v8805_v59  ;;  %v3764_v36 = vmul.f32 %v3549_v58, %v8806_v44  ;;  %v3765_v57 = vmul.f32 %v3549_v58, %v8807_v62  ;;  %4592 = vst [vmem:[%s7019_s22 + $0x200] sm:$0xff] %v4464_v61  ;;  %v8822_v61 = vld [vmem:[#allocation65_spill] sm:$0xff]  ;;  %v8823_v7 = vld [vmem:[#allocation66_spill] sm:$0xff]  ;;  %v8824_v38 = vld [vmem:[#allocation219_spill] sm:$0xff] }
 0x540   : > { %4593 = vst [vmem:[%s7019_s22 + $0x208] sm:$0xff] %v4465_v37  ;;  %4606 = vst [vmem:[%s7019_s22 + $0x270] sm:$0xff] %v4478_v6  ;;  %v8821_v6 = vld [vmem:[#allocation80_spill] sm:$0xff]  ;;  %v8826_v44 = vld [vmem:[#allocation221_spill] sm:$0xff] }
 0x541   : > { %4607 = vst [vmem:[%s7019_s22 + $0x278] sm:$0xff] %v4479_v47  ;;  %v3906_v41 = vadd.f32 %v3778_v13, %v8808_v19  ;;  %v3907_v3 = vadd.f32 %v3779_v53, %v8809_v10  ;;  %v3892_v34 = vadd.f32 %v3764_v36, %v8810_v8  ;;  %v3893_v63 = vadd.f32 %v3765_v57, %v8811_v4  ;;  %v8825_v59 = vld [vmem:[#allocation220_spill] sm:$0xff]  ;;  %v8827_v62 = vld [vmem:[#allocation222_spill] sm:$0xff] }
 0x542   : > { %v4160_v20 = vpop.permute.xlu0 %4159  ;;  %v4125_v5 = vpop.permute.xlu1 %4124 }
 0x543   : > { %v4354_v16 = vadd.f32 %v4160_v20, %v3906_v41  ;;  %v4355_v39 = vadd.f32 %v4160_v20, %v3907_v3  ;;  %v4340_v48 = vadd.f32 %v4125_v5, %v3892_v34  ;;  %v4341_v51 = vadd.f32 %v4125_v5, %v3893_v63 }
 0x545   : > { %v4482_v60 = vmax.f32 %v4354_v16, 0.0  ;;  %v4483_v49 = vmax.f32 %v4355_v39, 0.0  ;;  %v4468_v52 = vmax.f32 %v4340_v48, 0.0  ;;  %v4469_v12 = vmax.f32 %v4341_v51, 0.0  ;;  %v8828_v48 = vld [vmem:[#allocation91_spill] sm:$0xff] }
 0x546   : > { %v3594_v28 = vpop.permute.xlu0 %3593  ;;  %v3559_v24 = vpop.permute.xlu1 %3558 }
 0x547   : > { %v3782_v9 = vmul.f32 %v3594_v28, %v8812_v43  ;;  %v3783_v50 = vmul.f32 %v3594_v28, %v8813_v40  ;;  %v3768_v45 = vmul.f32 %v3559_v24, %v8814_v35  ;;  %v3769_v33 = vmul.f32 %v3559_v24, %v8815_v1  ;;  %4596 = vst [vmem:[%s7019_s22 + $0x220] sm:$0xff] %v4468_v52  ;;  %v8830_v52 = vld [vmem:[#allocation69_spill] sm:$0xff]  ;;  %v8831_v28 = vld [vmem:[#allocation70_spill] sm:$0xff]  ;;  %v8832_v43 = vld [vmem:[#allocation223_spill] sm:$0xff] }
 0x548   : > { %4597 = vst [vmem:[%s7019_s22 + $0x228] sm:$0xff] %v4469_v12  ;;  %4610 = vst [vmem:[%s7019_s22 + $0x290] sm:$0xff] %v4482_v60  ;;  %v8829_v60 = vld [vmem:[#allocation93_spill] sm:$0xff]  ;;  %v8833_v40 = vld [vmem:[#allocation224_spill] sm:$0xff] }
 0x549   : > { %4611 = vst [vmem:[%s7019_s22 + $0x298] sm:$0xff] %v4483_v49  ;;  %v3910_v17 = vadd.f32 %v3782_v9, %v8816_v18  ;;  %v3911_v15 = vadd.f32 %v3783_v50, %v8817_v0  ;;  %v3896_v26 = vadd.f32 %v3768_v45, %v8818_v22  ;;  %v3897_v30 = vadd.f32 %v3769_v33, %v8819_v54  ;;  %v8834_v35 = vld [vmem:[#allocation225_spill] sm:$0xff]  ;;  %v8835_v1 = vld [vmem:[#allocation226_spill] sm:$0xff] }
 0x54a   : > { %v4170_v32 = vpop.permute.xlu0 %4169  ;;  %v4135_v23 = vpop.permute.xlu1 %4134 }
 0x54b   : > { %v4358_v56 = vadd.f32 %v4170_v32, %v3910_v17  ;;  %v4359_v42 = vadd.f32 %v4170_v32, %v3911_v15  ;;  %v4344_v31 = vadd.f32 %v4135_v23, %v3896_v26  ;;  %v4345_v46 = vadd.f32 %v4135_v23, %v3897_v30 }
 0x54d   : > { %v4486_v21 = vmax.f32 %v4358_v56, 0.0  ;;  %v4487_v55 = vmax.f32 %v4359_v42, 0.0  ;;  %v4472_v25 = vmax.f32 %v4344_v31, 0.0  ;;  %v4473_v27 = vmax.f32 %v4345_v46, 0.0  ;;  %v8836_v31 = vld [vmem:[#allocation124_spill] sm:$0xff] }
 0x54e   : > { %v3604_v2 = vpop.permute.xlu0 %3603  ;;  %v3569_v14 = vpop.permute.xlu1 %3568 }
 0x54f   : > { %v3786_v11 = vmul.f32 %v3604_v2, %v8820_v29  ;;  %v3787_v47 = vmul.f32 %v3604_v2, %v8821_v6  ;;  %v3772_v37 = vmul.f32 %v3569_v14, %v8822_v61  ;;  %v3773_v58 = vmul.f32 %v3569_v14, %v8823_v7  ;;  %4600 = vst [vmem:[%s7019_s22 + $0x240] sm:$0xff] %v4472_v25  ;;  %v8838_v25 = vld [vmem:[#allocation73_spill] sm:$0xff]  ;;  %v8839_v2 = vld [vmem:[#allocation74_spill] sm:$0xff]  ;;  %v8840_v29 = vld [vmem:[#allocation227_spill] sm:$0xff] }
 0x550   : > { %4601 = vst [vmem:[%s7019_s22 + $0x248] sm:$0xff] %v4473_v27  ;;  %4614 = vst [vmem:[%s7019_s22 + $0x2b0] sm:$0xff] %v4486_v21  ;;  %v8837_v21 = vld [vmem:[#allocation126_spill] sm:$0xff]  ;;  %v8841_v6 = vld [vmem:[#allocation228_spill] sm:$0xff] }
 0x551   : > { %4615 = vst [vmem:[%s7019_s22 + $0x2b8] sm:$0xff] %v4487_v55  ;;  %v3914_v13 = vadd.f32 %v3786_v11, %v8824_v38  ;;  %v3915_v53 = vadd.f32 %v3787_v47, %v8825_v59  ;;  %v3900_v36 = vadd.f32 %v3772_v37, %v8826_v44  ;;  %v3901_v57 = vadd.f32 %v3773_v58, %v8827_v62  ;;  %v8842_v61 = vld [vmem:[#allocation229_spill] sm:$0xff]  ;;  %v8843_v7 = vld [vmem:[#allocation230_spill] sm:$0xff] }
 0x552   : > { %v4180_v19 = vpop.permute.xlu0 %4179  ;;  %v4145_v41 = vpop.permute.xlu1 %4144 }
 0x553   : > { %v4362_v10 = vadd.f32 %v4180_v19, %v3914_v13  ;;  %v4363_v3 = vadd.f32 %v4180_v19, %v3915_v53  ;;  %v4348_v8 = vadd.f32 %v4145_v41, %v3900_v36  ;;  %v4349_v34 = vadd.f32 %v4145_v41, %v3901_v57 }
 0x555   : > { %v4490_v4 = vmax.f32 %v4362_v10, 0.0  ;;  %v4491_v63 = vmax.f32 %v4363_v3, 0.0  ;;  %v4476_v20 = vmax.f32 %v4348_v8, 0.0  ;;  %v4477_v5 = vmax.f32 %v4349_v34, 0.0  ;;  %v8844_v8 = vld [vmem:[#allocation266_spill] sm:$0xff] }
 0x556   : > { %v3614_v16 = vpop.permute.xlu0 %3613  ;;  %v3579_v39 = vpop.permute.xlu1 %3578 }
 0x557   : > { %v3790_v51 = vmul.f32 %v3614_v16, %v8828_v48  ;;  %v3791_v49 = vmul.f32 %v3614_v16, %v8829_v60  ;;  %v3776_v12 = vmul.f32 %v3579_v39, %v8830_v52  ;;  %v3777_v24 = vmul.f32 %v3579_v39, %v8831_v28  ;;  %4604 = vst [vmem:[%s7019_s22 + $0x260] sm:$0xff] %v4476_v20  ;;  %v8846_v20 = vld [vmem:[#allocation77_spill] sm:$0xff]  ;;  %v8847_v16 = vld [vmem:[#allocation78_spill] sm:$0xff]  ;;  %v8848_v48 = vld [vmem:[#allocation231_spill] sm:$0xff] }
 0x558   : > { %4605 = vst [vmem:[%s7019_s22 + $0x268] sm:$0xff] %v4477_v5  ;;  %4618 = vst [vmem:[%s7019_s22 + $0x2d0] sm:$0xff] %v4490_v4  ;;  %v8845_v4 = vld [vmem:[#allocation267_spill] sm:$0xff]  ;;  %v8849_v60 = vld [vmem:[#allocation232_spill] sm:$0xff] }
 0x559   : > { %4619 = vst [vmem:[%s7019_s22 + $0x2d8] sm:$0xff] %v4491_v63  ;;  %v3918_v9 = vadd.f32 %v3790_v51, %v8832_v43  ;;  %v3919_v50 = vadd.f32 %v3791_v49, %v8833_v40  ;;  %v3904_v45 = vadd.f32 %v3776_v12, %v8834_v35  ;;  %v3905_v33 = vadd.f32 %v3777_v24, %v8835_v1  ;;  %v8850_v52 = vld [vmem:[#allocation233_spill] sm:$0xff]  ;;  %v8851_v28 = vld [vmem:[#allocation234_spill] sm:$0xff] }
 0x55a   : > { %v4190_v18 = vpop.permute.xlu0 %4189  ;;  %v4155_v17 = vpop.permute.xlu1 %4154 }
 0x55b   : > { %v4366_v0 = vadd.f32 %v4190_v18, %v3918_v9  ;;  %v4367_v15 = vadd.f32 %v4190_v18, %v3919_v50  ;;  %v4352_v22 = vadd.f32 %v4155_v17, %v3904_v45  ;;  %v4353_v26 = vadd.f32 %v4155_v17, %v3905_v33 }
 0x55d   : > { %v4494_v54 = vmax.f32 %v4366_v0, 0.0  ;;  %v4495_v30 = vmax.f32 %v4367_v15, 0.0  ;;  %v4480_v32 = vmax.f32 %v4352_v22, 0.0  ;;  %v4481_v23 = vmax.f32 %v4353_v26, 0.0  ;;  %v8852_v22 = vld [vmem:[#allocation270_spill] sm:$0xff] }
 0x55e   : > { %v3624_v56 = vpop.permute.xlu0 %3623  ;;  %v3589_v42 = vpop.permute.xlu1 %3588 }
 0x55f   : > { %v3794_v46 = vmul.f32 %v3624_v56, %v8836_v31  ;;  %v3795_v55 = vmul.f32 %v3624_v56, %v8837_v21  ;;  %v3780_v27 = vmul.f32 %v3589_v42, %v8838_v25  ;;  %v3781_v14 = vmul.f32 %v3589_v42, %v8839_v2  ;;  %4608 = vst [vmem:[%s7019_s22 + $0x280] sm:$0xff] %v4480_v32  ;;  %v8854_v32 = vld [vmem:[#allocation85_spill] sm:$0xff]  ;;  %v8855_v56 = vld [vmem:[#allocation86_spill] sm:$0xff]  ;;  %v8856_v31 = vld [vmem:[#allocation235_spill] sm:$0xff] }
 0x560   : > { %4609 = vst [vmem:[%s7019_s22 + $0x288] sm:$0xff] %v4481_v23  ;;  %4622 = vst [vmem:[%s7019_s22 + $0x2f0] sm:$0xff] %v4494_v54  ;;  %v8853_v54 = vld [vmem:[#allocation271_spill] sm:$0xff]  ;;  %v8857_v21 = vld [vmem:[#allocation236_spill] sm:$0xff] }
 0x561   : > { %4623 = vst [vmem:[%s7019_s22 + $0x2f8] sm:$0xff] %v4495_v30  ;;  %v3922_v11 = vadd.f32 %v3794_v46, %v8840_v29  ;;  %v3923_v47 = vadd.f32 %v3795_v55, %v8841_v6  ;;  %v3908_v37 = vadd.f32 %v3780_v27, %v8842_v61  ;;  %v3909_v58 = vadd.f32 %v3781_v14, %v8843_v7  ;;  %v8858_v25 = vld [vmem:[#allocation237_spill] sm:$0xff]  ;;  %v8859_v2 = vld [vmem:[#allocation238_spill] sm:$0xff] }
 0x562   : > { %v4200_v38 = vpop.permute.xlu0 %4199  ;;  %v4165_v13 = vpop.permute.xlu1 %4164 }
 0x563   : > { %v4370_v59 = vadd.f32 %v4200_v38, %v3922_v11  ;;  %v4371_v53 = vadd.f32 %v4200_v38, %v3923_v47  ;;  %v4356_v44 = vadd.f32 %v4165_v13, %v3908_v37  ;;  %v4357_v36 = vadd.f32 %v4165_v13, %v3909_v58 }
 0x565   : > { %v4498_v62 = vmax.f32 %v4370_v59, 0.0  ;;  %v4499_v57 = vmax.f32 %v4371_v53, 0.0  ;;  %v4484_v19 = vmax.f32 %v4356_v44, 0.0  ;;  %v4485_v41 = vmax.f32 %v4357_v36, 0.0  ;;  %v8860_v44 = vld [vmem:[#allocation274_spill] sm:$0xff] }
 0x566   : > { %v3634_v10 = vpop.permute.xlu0 %3633  ;;  %v3599_v3 = vpop.permute.xlu1 %3598 }
 0x567   : > { %v3798_v34 = vmul.f32 %v3634_v10, %v8844_v8  ;;  %v3799_v63 = vmul.f32 %v3634_v10, %v8845_v4  ;;  %v3784_v5 = vmul.f32 %v3599_v3, %v8846_v20  ;;  %v3785_v39 = vmul.f32 %v3599_v3, %v8847_v16  ;;  %4612 = vst [vmem:[%s7019_s22 + $0x2a0] sm:$0xff] %v4484_v19  ;;  %v8862_v19 = vld [vmem:[#allocation118_spill] sm:$0xff]  ;;  %v8863_v10 = vld [vmem:[#allocation120_spill] sm:$0xff]  ;;  %v8864_v8 = vld [vmem:[#allocation239_spill] sm:$0xff] }
 0x568   : > { %4613 = vst [vmem:[%s7019_s22 + $0x2a8] sm:$0xff] %v4485_v41  ;;  %4626 = vst [vmem:[%s7019_s22 + $0x310] sm:$0xff] %v4498_v62  ;;  %v8861_v62 = vld [vmem:[#allocation275_spill] sm:$0xff]  ;;  %v8865_v4 = vld [vmem:[#allocation240_spill] sm:$0xff] }
 0x569   : > { %4627 = vst [vmem:[%s7019_s22 + $0x318] sm:$0xff] %v4499_v57  ;;  %v3926_v51 = vadd.f32 %v3798_v34, %v8848_v48  ;;  %v3927_v49 = vadd.f32 %v3799_v63, %v8849_v60  ;;  %v3912_v12 = vadd.f32 %v3784_v5, %v8850_v52  ;;  %v3913_v24 = vadd.f32 %v3785_v39, %v8851_v28  ;;  %v8866_v20 = vld [vmem:[#allocation241_spill] sm:$0xff]  ;;  %v8867_v16 = vld [vmem:[#allocation242_spill] sm:$0xff] }
 0x56a   : > { %v4210_v43 = vpop.permute.xlu0 %4209  ;;  %v4175_v9 = vpop.permute.xlu1 %4174 }
 0x56b   : > { %v4374_v40 = vadd.f32 %v4210_v43, %v3926_v51  ;;  %v4375_v50 = vadd.f32 %v4210_v43, %v3927_v49  ;;  %v4360_v35 = vadd.f32 %v4175_v9, %v3912_v12  ;;  %v4361_v45 = vadd.f32 %v4175_v9, %v3913_v24 }
 0x56d   : > { %v4502_v1 = vmax.f32 %v4374_v40, 0.0  ;;  %v4503_v33 = vmax.f32 %v4375_v50, 0.0  ;;  %v4488_v18 = vmax.f32 %v4360_v35, 0.0  ;;  %v4489_v17 = vmax.f32 %v4361_v45, 0.0  ;;  %v8868_v35 = vld [vmem:[#allocation2_spill] sm:$0xff] }
 0x56e   : > { %v3644_v0 = vpop.permute.xlu0 %3643  ;;  %v3609_v15 = vpop.permute.xlu1 %3608 }
 0x56f   : > { %v3802_v26 = vmul.f32 %v3644_v0, %v8852_v22  ;;  %v3803_v30 = vmul.f32 %v3644_v0, %v8853_v54  ;;  %v3788_v23 = vmul.f32 %v3609_v15, %v8854_v32  ;;  %v3789_v42 = vmul.f32 %v3609_v15, %v8855_v56  ;;  %4616 = vst [vmem:[%s7019_s22 + $0x2c0] sm:$0xff] %v4488_v18  ;;  %v8870_v18 = vld [vmem:[#allocation148_spill] sm:$0xff]  ;;  %v8871_v0 = vld [vmem:[#allocation262_spill] sm:$0xff]  ;;  %v8872_v22 = vld [vmem:[#allocation243_spill] sm:$0xff] }
 0x570   : > { %4617 = vst [vmem:[%s7019_s22 + $0x2c8] sm:$0xff] %v4489_v17  ;;  %4630 = vst [vmem:[%s7019_s22 + $0x330] sm:$0xff] %v4502_v1  ;;  %v8869_v1 = vld [vmem:[#allocation84_spill] sm:$0xff]  ;;  %v8874_v32 = vld [vmem:[#allocation245_spill] sm:$0xff] }
 0x571   : > { %4631 = vst [vmem:[%s7019_s22 + $0x338] sm:$0xff] %v4503_v33  ;;  %v3930_v46 = vadd.f32 %v3802_v26, %v8856_v31  ;;  %v3931_v55 = vadd.f32 %v3803_v30, %v8857_v21  ;;  %v3916_v27 = vadd.f32 %v3788_v23, %v8858_v25  ;;  %v3917_v14 = vadd.f32 %v3789_v42, %v8859_v2  ;;  %v8873_v54 = vld [vmem:[#allocation244_spill] sm:$0xff]  ;;  %v8875_v56 = vld [vmem:[#allocation246_spill] sm:$0xff] }
 0x572   : > { %v4220_v29 = vpop.permute.xlu0 %4219  ;;  %v4185_v11 = vpop.permute.xlu1 %4184 }
 0x573   : > { %v4378_v6 = vadd.f32 %v4220_v29, %v3930_v46  ;;  %v4379_v47 = vadd.f32 %v4220_v29, %v3931_v55  ;;  %v4364_v61 = vadd.f32 %v4185_v11, %v3916_v27  ;;  %v4365_v37 = vadd.f32 %v4185_v11, %v3917_v14 }
 0x575   : > { %v4506_v7 = vmax.f32 %v4378_v6, 0.0  ;;  %v4507_v58 = vmax.f32 %v4379_v47, 0.0  ;;  %v4492_v38 = vmax.f32 %v4364_v61, 0.0  ;;  %v4493_v13 = vmax.f32 %v4365_v37, 0.0  ;;  %v8876_v61 = vld [vmem:[#allocation81_spill] sm:$0xff] }
 0x576   : > { %v3654_v59 = vpop.permute.xlu0 %3653  ;;  %v3619_v53 = vpop.permute.xlu1 %3618 }
 0x577   : > { %v3806_v36 = vmul.f32 %v3654_v59, %v8860_v44  ;;  %v3807_v57 = vmul.f32 %v3654_v59, %v8861_v62  ;;  %v3792_v41 = vmul.f32 %v3619_v53, %v8862_v19  ;;  %v3793_v3 = vmul.f32 %v3619_v53, %v8863_v10  ;;  %4620 = vst [vmem:[%s7019_s22 + $0x2e0] sm:$0xff] %v4492_v38  ;;  %v8878_v38 = vld [vmem:[#allocation268_spill] sm:$0xff]  ;;  %v8879_v59 = vld [vmem:[#allocation269_spill] sm:$0xff]  ;;  %v8880_v44 = vld [vmem:[#allocation247_spill] sm:$0xff] }
 0x578   : > { %4621 = vst [vmem:[%s7019_s22 + $0x2e8] sm:$0xff] %v4493_v13  ;;  %4634 = vst [vmem:[%s7019_s22 + $0x350] sm:$0xff] %v4506_v7  ;;  %v8877_v7 = vld [vmem:[#allocation82_spill] sm:$0xff]  ;;  %v8881_v62 = vld [vmem:[#allocation248_spill] sm:$0xff] }
 0x579   : > { %4635 = vst [vmem:[%s7019_s22 + $0x358] sm:$0xff] %v4507_v58  ;;  %v3934_v34 = vadd.f32 %v3806_v36, %v8864_v8  ;;  %v3935_v63 = vadd.f32 %v3807_v57, %v8865_v4  ;;  %v3920_v5 = vadd.f32 %v3792_v41, %v8866_v20  ;;  %v3921_v39 = vadd.f32 %v3793_v3, %v8867_v16  ;;  %v8882_v19 = vld [vmem:[#allocation249_spill] sm:$0xff]  ;;  %v8883_v10 = vld [vmem:[#allocation250_spill] sm:$0xff] }
 0x57a   : > { %v4230_v48 = vpop.permute.xlu0 %4229  ;;  %v4195_v51 = vpop.permute.xlu1 %4194 }
 0x57b   : > { %v4382_v60 = vadd.f32 %v4230_v48, %v3934_v34  ;;  %v4383_v49 = vadd.f32 %v4230_v48, %v3935_v63  ;;  %v4368_v52 = vadd.f32 %v4195_v51, %v3920_v5  ;;  %v4369_v12 = vadd.f32 %v4195_v51, %v3921_v39 }
 0x57d   : > { %v4510_v28 = vmax.f32 %v4382_v60, 0.0  ;;  %v4511_v24 = vmax.f32 %v4383_v49, 0.0  ;;  %v4496_v43 = vmax.f32 %v4368_v52, 0.0  ;;  %v4497_v9 = vmax.f32 %v4369_v12, 0.0  ;;  %v8884_v52 = vld [vmem:[#allocation152_spill] sm:$0xff] }
 0x57e   : > { %v3664_v40 = vpop.permute.xlu0 %3663  ;;  %v3629_v50 = vpop.permute.xlu1 %3628 }
 0x57f   : > { %v3810_v45 = vmul.f32 %v3664_v40, %v8868_v35  ;;  %v3811_v33 = vmul.f32 %v3664_v40, %v8869_v1  ;;  %v3796_v17 = vmul.f32 %v3629_v50, %v8870_v18  ;;  %v3797_v15 = vmul.f32 %v3629_v50, %v8871_v0  ;;  %4624 = vst [vmem:[%s7019_s22 + $0x300] sm:$0xff] %v4496_v43  ;;  %v8886_v43 = vld [vmem:[#allocation272_spill] sm:$0xff]  ;;  %v8887_v40 = vld [vmem:[#allocation273_spill] sm:$0xff]  ;;  %v8888_v35 = vld [vmem:[#allocation251_spill] sm:$0xff] }
 0x580   : > { %4625 = vst [vmem:[%s7019_s22 + $0x308] sm:$0xff] %v4497_v9  ;;  %4638 = vst [vmem:[%s7019_s22 + $0x370] sm:$0xff] %v4510_v28  ;;  %v8885_v28 = vld [vmem:[#allocation88_spill] sm:$0xff]  ;;  %v8890_v18 = vld [vmem:[#allocation253_spill] sm:$0xff] }
 0x581   : > { %4639 = vst [vmem:[%s7019_s22 + $0x378] sm:$0xff] %v4511_v24  ;;  %v3938_v26 = vadd.f32 %v3810_v45, %v8872_v22  ;;  %v3939_v30 = vadd.f32 %v3811_v33, %v8873_v54  ;;  %v3924_v23 = vadd.f32 %v3796_v17, %v8874_v32  ;;  %v3925_v42 = vadd.f32 %v3797_v15, %v8875_v56  ;;  %v8889_v1 = vld [vmem:[#allocation252_spill] sm:$0xff]  ;;  %v8891_v0 = vld [vmem:[#allocation254_spill] sm:$0xff] }
 0x582   : > { %v4240_v31 = vpop.permute.xlu0 %4239  ;;  %v4205_v46 = vpop.permute.xlu1 %4204 }
 0x583   : > { %v4386_v21 = vadd.f32 %v4240_v31, %v3938_v26  ;;  %v4387_v55 = vadd.f32 %v4240_v31, %v3939_v30  ;;  %v4372_v25 = vadd.f32 %v4205_v46, %v3924_v23  ;;  %v4373_v27 = vadd.f32 %v4205_v46, %v3925_v42 }
 0x585   : > { %v4514_v2 = vmax.f32 %v4386_v21, 0.0  ;;  %v4515_v14 = vmax.f32 %v4387_v55, 0.0  ;;  %v4500_v29 = vmax.f32 %v4372_v25, 0.0  ;;  %v4501_v11 = vmax.f32 %v4373_v27, 0.0  ;;  %v8892_v55 = vld [vmem:[#allocation276_spill] sm:$0xff]  ;;  %v8893_v27 = vld [vmem:[#allocation277_spill] sm:$0xff] }
 0x586   : > { %v3674_v6 = vpop.permute.xlu0 %3673  ;;  %v3639_v47 = vpop.permute.xlu1 %3638 }
 0x587   : > { %v3814_v37 = vmul.f32 %v3674_v6, %v8876_v61  ;;  %v3815_v58 = vmul.f32 %v3674_v6, %v8877_v7  ;;  %v3800_v13 = vmul.f32 %v3639_v47, %v8878_v38  ;;  %v3801_v53 = vmul.f32 %v3639_v47, %v8879_v59  ;;  %4628 = vst [vmem:[%s7019_s22 + $0x320] sm:$0xff] %v4500_v29 }
 0x588   : > { %4629 = vst [vmem:[%s7019_s22 + $0x328] sm:$0xff] %v4501_v11  ;;  %4642 = vst [vmem:[%s7019_s22 + $0x390] sm:$0xff] %v4514_v2  ;;  %v8895_v11 = vld [vmem:[#allocation256_spill] sm:$0xff] }
 0x589   : > { %4643 = vst [vmem:[%s7019_s22 + $0x398] sm:$0xff] %v4515_v14  ;;  %v3942_v36 = vadd.f32 %v3814_v37, %v8880_v44  ;;  %v3943_v57 = vadd.f32 %v3815_v58, %v8881_v62  ;;  %v3928_v41 = vadd.f32 %v3800_v13, %v8882_v19  ;;  %v3929_v3 = vadd.f32 %v3801_v53, %v8883_v10  ;;  %v8894_v14 = vld [vmem:[#allocation255_spill] sm:$0xff]  ;;  %v8896_v13 = vld [vmem:[#allocation149_spill] sm:$0xff]  ;;  %v8897_v53 = vld [vmem:[#allocation150_spill] sm:$0xff] }
 0x58a   : > { %v4250_v8 = vpop.permute.xlu0 %4249  ;;  %v4215_v34 = vpop.permute.xlu1 %4214  ;;  %v8898_v62 = vld [vmem:[#allocation154_spill] sm:$0xff]  ;;  %v8899_v19 = vld [vmem:[#allocation83_spill] sm:$0xff]  ;;  %v8900_v10 = vld [vmem:[#allocation257_spill] sm:$0xff] }
 0x58b   : > { %v4390_v4 = vadd.f32 %v4250_v8, %v3942_v36  ;;  %v4391_v63 = vadd.f32 %v4250_v8, %v3943_v57  ;;  %v4376_v20 = vadd.f32 %v4215_v34, %v3928_v41  ;;  %v4377_v5 = vadd.f32 %v4215_v34, %v3929_v3  ;;  %v8901_v8 = vld [vmem:[#allocation258_spill] sm:$0xff] }
 0x58d   : > { %v4518_v16 = vmax.f32 %v4390_v4, 0.0  ;;  %v4519_v39 = vmax.f32 %v4391_v63, 0.0  ;;  %v4504_v48 = vmax.f32 %v4376_v20, 0.0  ;;  %v4505_v51 = vmax.f32 %v4377_v5, 0.0  ;;  %v8902_v63 = vld [vmem:[#allocation259_spill] sm:$0xff]  ;;  %v8903_v5 = vld [vmem:[#allocation260_spill] sm:$0xff] }
 0x58e   : > { %v3684_v60 = vpop.permute.xlu0 %3683  ;;  %v3649_v49 = vpop.permute.xlu1 %3648 }
 0x58f   : > { %v3818_v12 = vmul.f32 %v3684_v60, %v8884_v52  ;;  %v3819_v24 = vmul.f32 %v3684_v60, %v8885_v28  ;;  %v3804_v9 = vmul.f32 %v3649_v49, %v8886_v43  ;;  %v3805_v50 = vmul.f32 %v3649_v49, %v8887_v40  ;;  %4632 = vst [vmem:[%s7019_s22 + $0x340] sm:$0xff] %v4504_v48 }
 0x590   : > { %4633 = vst [vmem:[%s7019_s22 + $0x348] sm:$0xff] %v4505_v51  ;;  %4646 = vst [vmem:[%s7019_s22 + $0x3b0] sm:$0xff] %v4518_v16 }
 0x591   : > { %4647 = vst [vmem:[%s7019_s22 + $0x3b8] sm:$0xff] %v4519_v39  ;;  %v3946_v45 = vadd.f32 %v3818_v12, %v8888_v35  ;;  %v3947_v33 = vadd.f32 %v3819_v24, %v8889_v1  ;;  %v3932_v17 = vadd.f32 %v3804_v9, %v8890_v18  ;;  %v3933_v15 = vadd.f32 %v3805_v50, %v8891_v0  ;;  %v8904_v9 = vld [vmem:[#allocation4_spill] sm:$0xff]  ;;  %v8905_v50 = vld [vmem:[#allocation151_spill] sm:$0xff] }
 0x592   : > { %v4260_v22 = vpop.permute.xlu0 %4259  ;;  %v4225_v26 = vpop.permute.xlu1 %4224 }
 0x593   : > { %v4394_v54 = vadd.f32 %v4260_v22, %v3946_v45  ;;  %v4395_v30 = vadd.f32 %v4260_v22, %v3947_v33  ;;  %v4380_v32 = vadd.f32 %v4225_v26, %v3932_v17  ;;  %v4381_v23 = vadd.f32 %v4225_v26, %v3933_v15  ;;  %v8906_v45 = vld [vmem:[#allocation261_spill] sm:$0xff]  ;;  %v8907_v33 = vld [vmem:[#allocation263_spill] sm:$0xff] }
 0x595   : > { %v4522_v56 = vmax.f32 %v4394_v54, 0.0  ;;  %v4523_v42 = vmax.f32 %v4395_v30, 0.0  ;;  %v4508_v31 = vmax.f32 %v4380_v32, 0.0  ;;  %v4509_v46 = vmax.f32 %v4381_v23, 0.0  ;;  %v8908_v30 = vld [vmem:[#allocation6_spill] sm:$0xff]  ;;  %v8909_v23 = vld [vmem:[#allocation153_spill] sm:$0xff] }
 0x596   : > { %v3659_v21 = vpop.permute.xlu1 %3658 }
 0x597   : > { %v3808_v25 = vmul.f32 %v3659_v21, %v8892_v55  ;;  %v3809_v2 = vmul.f32 %v3659_v21, %v8893_v27  ;;  %4636 = vst [vmem:[%s7019_s22 + $0x360] sm:$0xff] %v4508_v31  ;;  %4637 = vst [vmem:[%s7019_s22 + $0x368] sm:$0xff] %v4509_v46  ;;  %v8911_v46 = vld [vmem:[#allocation265_spill] sm:$0xff] }
 0x598   : > { %4650 = vst [vmem:[%s7019_s22 + $0x3d0] sm:$0xff] %v4522_v56  ;;  %4651 = vst [vmem:[%s7019_s22 + $0x3d8] sm:$0xff] %v4523_v42  ;;  %v8910_v42 = vld [vmem:[#allocation264_spill] sm:$0xff] }
 0x599   : > { %v3936_v29 = vadd.f32 %v3808_v25, %v8894_v14  ;;  %v3937_v6 = vadd.f32 %v3809_v2, %v8895_v11 }
 0x59a   : > { %v4235_v47 = vpop.permute.xlu1 %4234 }
 0x59b   : > { %v4384_v61 = vadd.f32 %v4235_v47, %v3936_v29  ;;  %v4385_v37 = vadd.f32 %v4235_v47, %v3937_v6 }
 0x59d   : > { %v4512_v7 = vmax.f32 %v4384_v61, 0.0  ;;  %v4513_v58 = vmax.f32 %v4385_v37, 0.0 }
 0x59e   : > { %v3669_v38 = vpop.permute.xlu1 %3668 }
 0x59f   : > { %v3812_v59 = vmul.f32 %v3669_v38, %v8896_v13  ;;  %v3813_v44 = vmul.f32 %v3669_v38, %v8897_v53  ;;  %v3694_v36 = vpop.permute.xlu0 %3693  ;;  %4640 = vst [vmem:[%s7019_s22 + $0x380] sm:$0xff] %v4512_v7  ;;  %4641 = vst [vmem:[%s7019_s22 + $0x388] sm:$0xff] %v4513_v58 }
 0x5a0   : > { %v3822_v57 = vmul.f32 %v3694_v36, %v8898_v62  ;;  %v3823_v41 = vmul.f32 %v3694_v36, %v8899_v19 }
 0x5a1   : > { %v3940_v3 = vadd.f32 %v3812_v59, %v8900_v10  ;;  %v3941_v34 = vadd.f32 %v3813_v44, %v8901_v8 }
 0x5a2   : > { %v4245_v4 = vpop.permute.xlu1 %4244  ;;  %v3950_v20 = vadd.f32 %v3822_v57, %v8902_v63  ;;  %v3951_v16 = vadd.f32 %v3823_v41, %v8903_v5 }
 0x5a3   : > { %v4388_v39 = vadd.f32 %v4245_v4, %v3940_v3  ;;  %v4389_v48 = vadd.f32 %v4245_v4, %v3941_v34  ;;  %v4270_v51 = vpop.permute.xlu0 %4269 }
 0x5a4   : > { %v4398_v60 = vadd.f32 %v4270_v51, %v3950_v20  ;;  %v4399_v49 = vadd.f32 %v4270_v51, %v3951_v16 }
 0x5a5   : > { %v4516_v52 = vmax.f32 %v4388_v39, 0.0  ;;  %v4517_v12 = vmax.f32 %v4389_v48, 0.0 }
 0x5a6   : > { %v4526_v28 = vmax.f32 %v4398_v60, 0.0  ;;  %v4527_v24 = vmax.f32 %v4399_v49, 0.0  ;;  %v3679_v43 = vpop.permute.xlu1 %3678 }
 0x5a7   : > { %v3816_v40 = vmul.f32 %v3679_v43, %v8904_v9  ;;  %v3817_v35 = vmul.f32 %v3679_v43, %v8905_v50  ;;  %4644 = vst [vmem:[%s7019_s22 + $0x3a0] sm:$0xff] %v4516_v52  ;;  %4645 = vst [vmem:[%s7019_s22 + $0x3a8] sm:$0xff] %v4517_v12 }
 0x5a8   : > { %4654 = vst [vmem:[%s7019_s22 + $0x3f0] sm:$0xff] %v4526_v28  ;;  %4655 = vst [vmem:[%s7019_s22 + $0x3f8] sm:$0xff] %v4527_v24 }
 0x5a9   : > { %v3944_v1 = vadd.f32 %v3816_v40, %v8906_v45  ;;  %v3945_v18 = vadd.f32 %v3817_v35, %v8907_v33 }
 0x5aa   : > { %v4255_v17 = vpop.permute.xlu1 %4254 }
 0x5ab   : > { %v4392_v0 = vadd.f32 %v4255_v17, %v3944_v1  ;;  %v4393_v15 = vadd.f32 %v4255_v17, %v3945_v18 }
 0x5ad   : > { %v4520_v22 = vmax.f32 %v4392_v0, 0.0  ;;  %v4521_v26 = vmax.f32 %v4393_v15, 0.0 }
 0x5ae   : > { %v3689_v54 = vpop.permute.xlu1 %3688 }
 0x5af   : > { %v3820_v32 = vmul.f32 %v3689_v54, %v8908_v30  ;;  %v3821_v56 = vmul.f32 %v3689_v54, %v8909_v23  ;;  %4648 = vst [vmem:[%s7019_s22 + $0x3c0] sm:$0xff] %v4520_v22  ;;  %4649 = vst [vmem:[%s7019_s22 + $0x3c8] sm:$0xff] %v4521_v26 }
 0x5b1   : > { %v3948_v31 = vadd.f32 %v3820_v32, %v8910_v42  ;;  %v3949_v21 = vadd.f32 %v3821_v56, %v8911_v46 }
 0x5b2   : > { %v4265_v55 = vpop.permute.xlu1 %4264 }
 0x5b3   : > { %v4396_v25 = vadd.f32 %v4265_v55, %v3948_v31  ;;  %v4397_v27 = vadd.f32 %v4265_v55, %v3949_v21 }
 0x5b5   : > { %v4524_v2 = vmax.f32 %v4396_v25, 0.0  ;;  %v4525_v14 = vmax.f32 %v4397_v27, 0.0 }
 0x5b7   : > { %4652 = vst [vmem:[%s7019_s22 + $0x3e0] sm:$0xff] %v4524_v2  ;;  %4653 = vst [vmem:[%s7019_s22 + $0x3e8] sm:$0xff] %v4525_v14 }
 0x5b8 PF: > { %s15_s18 = sadd.s32 1, %s5366_s18  }
 0x5b9   : > { %p12_p4 = scmp.ge.s32.totalorder %s15_s18, 4  }
 0x5bb   :  { %14 = sbr.rel (!%p12_p4) target bundleno = 1 (0x1), region = 79 }

</bundles_post_ra>
